<compile_context>
chip_gen: v7x
topology: tpu7x:2x2x1
jax: 0.10.0
libtpu: 0.0.40
codegen_flags: <defaults>
</compile_context>

<pallas_src>
import functools

import jax
import jax.numpy as jnp
from jax.experimental import pallas as pl
from jax.experimental.pallas import tpu as pltpu

F32 = jnp.float32


def _vmem_capacity_bytes(default_bytes=64 << 20):
    """Physical VMEM of the attached TPU; conservative fallback if unavailable."""
    try:
        info = pltpu.get_tpu_info()
        cap = getattr(info, "vmem_capacity_bytes", None)
        if cap:
            return int(cap)
    except Exception:
        pass
    return default_bytes


# ----------------------------------------------------------------------------
# Fused kernel: QKV 1x1-conv projection + per-channel spatial attention
#               + residual add, for one batch slice.
# ----------------------------------------------------------------------------
def _fused_self_attention_kernel(x_ref, w_ref, b_ref, f_ref, o_ref, *,
                                 C, H, W, scale):
    HW = H * W
    x = x_ref[0].astype(F32)                                     # (C, HW)  lane-dense load
    w = w_ref[...].astype(F32)                                   # (3C, C)
    b = b_ref[...].astype(F32)                                   # (3C, 1)

    # Fused q/k/v 1x1-conv projection: one MXU matmul with HW on the lane axis.
    qkv = jnp.dot(w, x, preferred_element_type=F32) + b          # (3C, HW)

    # Single in-VMEM relayout to the (channel, H, W) view the attention needs;
    # q/k/v stay in VMEM only (never written back to HBM).
    qkv3 = qkv.reshape(3 * C, H, W)
    q = qkv3[0 * C:1 * C] * scale          # fold 1/sqrt(out_channels) into q
    k = qkv3[1 * C:2 * C]
    v = qkv3[2 * C:3 * C]

    # scores[c, i, j] = sum_w q[c, i, w] * k[c, j, w]      (batched over channels)
    s = jnp.einsum('chw,cxw->chx', q, k, preferred_element_type=F32)   # (C, H, H)
    s = s - jnp.max(s, axis=-1, keepdims=True)
    p = jnp.exp(s)
    denom = jnp.sum(p, axis=-1, keepdims=True)
    p = p * pl.reciprocal(denom, approx=True)                    # EUP slot, not VALU

    att = jnp.einsum('chx,cxw->chw', p, v, preferred_element_type=F32)  # (C, H, W)

    out = f_ref[0].astype(F32) + att.reshape(C, HW)              # fused residual add
    o_ref[0] = out.astype(o_ref.dtype)                           # lane-dense store (HW lanes)


# ----------------------------------------------------------------------------
# Module forward (public interface matches PyTorch: NCHW in, NCHW out)
# ----------------------------------------------------------------------------
def self_attention_forward(feature, feature_map, params):
    """feature, feature_map: (B, C, H, W)."""
    B, C, H, W = feature.shape
    HW = H * W
    w_qkv = params["w_qkv"]                                      # (3C, C)
    b_qkv = params["b_qkv"]                                      # (3C, 1)
    C3 = w_qkv.shape[0]

    # Contiguous trailing-dim merges -> free metadata reshapes in the wrapper.
    x = feature.reshape(B, C, HW)
    f = feature_map.reshape(B, C, HW)

    # Explicit, generation-aware VMEM budget so the same tiling is portable
    # across v5e (16 MiB scoped default), v6e (32 MiB) and v7x (64 MiB physical).
    lanes, item = 128, 4
    per_step = (
        2 * (3 * C * HW + C3 * C + C3) * item          # double-buffered HBM blocks
        + 3 * C * HW * item                            # qkv (lane-dense, in VMEM)
        + 4 * C * H * max(W, lanes) * item             # q, k, v, att in (C,H,W) layout
        + 2 * C * H * max(H, lanes) * item             # scores + probs
    )
    vmem_limit = int(min(_vmem_capacity_bytes() // 2,
                         max(2 * per_step, 16 << 20)))

    kernel = functools.partial(_fused_self_attention_kernel,
                               C=C, H=H, W=W, scale=params["scale"])

    # grid=(B,): with B>=2 the "parallel" axis keeps both v7x TensorCores busy.
    out = pl.pallas_call(
        kernel,
        out_shape=jax.ShapeDtypeStruct((B, C, HW), feature_map.dtype),
        grid=(B,),
        in_specs=[
            pl.BlockSpec((1, C, HW), lambda b: (b, 0, 0)),       # feature (lane-dense)
            pl.BlockSpec((C3, C), lambda b: (0, 0)),             # fused QKV weight
            pl.BlockSpec((C3, 1), lambda b: (0, 0)),             # fused QKV bias
            pl.BlockSpec((1, C, HW), lambda b: (b, 0, 0)),       # feature_map (residual)
        ],
        out_specs=pl.BlockSpec((1, C, HW), lambda b: (b, 0, 0)),
        compiler_params=pltpu.CompilerParams(
            dimension_semantics=("parallel",),
            vmem_limit_bytes=vmem_limit),
    )(x, w_qkv, b_qkv, f)
    return out.reshape(B, C, H, W)


# ----------------------------------------------------------------------------
# deterministic synthetic parameters (Conv2d 1x1 weights as (Cout, Cin))
# ----------------------------------------------------------------------------
def make_params(in_channels, out_channels, key, w_scale=0.05):
    C = in_channels
    kq, kk, kv, kbq, kbk, kbv = jax.random.split(key, 6)
    wq = (w_scale * jax.random.normal(kq, (C, C))).astype(F32)
    wk = (w_scale * jax.random.normal(kk, (C, C))).astype(F32)
    wv = (w_scale * jax.random.normal(kv, (C, C))).astype(F32)
    bq = (w_scale * jax.random.normal(kbq, (C,))).astype(F32)
    bk = (w_scale * jax.random.normal(kbk, (C,))).astype(F32)
    bv = (w_scale * jax.random.normal(kbv, (C,))).astype(F32)
    return dict(
        w_qkv=jnp.concatenate([wq, wk, wv], axis=0),             # (3C, C)
        b_qkv=jnp.concatenate([bq, bk, bv], axis=0).reshape(3 * C, 1),
        scale=float(1.0 / (out_channels ** 0.5)),                # static python float
    )


# ----------------------------------------------------------------------------
# pure-JAX reference (for a sanity check of the Pallas path)
# ----------------------------------------------------------------------------
def self_attention_reference(feature, feature_map, params):
    B, C, H, W = feature.shape
    hp = jax.lax.Precision.HIGHEST
    w = params["w_qkv"]
    b = params["b_qkv"].reshape(3 * C)
    x = feature.reshape(B, C, H * W)
    qkv = jnp.einsum('mc,bcn->bmn', w, x, precision=hp) + b[None, :, None]
    q = qkv[:, 0 * C:1 * C].reshape(B, C, H, W)
    k = qkv[:, 1 * C:2 * C].reshape(B, C, H, W)
    v = qkv[:, 2 * C:3 * C].reshape(B, C, H, W)
    s = jnp.einsum('bchw,bcxw->bchx', q, k, precision=hp) * params["scale"]
    p = jax.nn.softmax(s, axis=-1)
    att = jnp.einsum('bchx,bcxw->bchw', p, v, precision=hp)
    return feature_map + att


# ----------------------------------------------------------------------------
if __name__ == "__main__":
    B, C, H, W = 2, 32, 16, 16
    key = jax.random.PRNGKey(0)
    kp, kf, km = jax.random.split(key, 3)
    params = make_params(C, C, kp)                     # in_channels = out_channels = C
    feature = jax.random.normal(kf, (B, C, H, W), dtype=F32)
    feature_map = jax.random.normal(km, (B, C, H, W), dtype=F32)

    fwd = jax.jit(functools.partial(self_attention_forward, params=params))
    y = fwd(feature, feature_map)
    jax.block_until_ready(y)

    assert y.shape == feature.shape and y.dtype == feature.dtype
    assert bool(jnp.all(jnp.isfinite(y)))

    ref = self_attention_reference(feature, feature_map, params)
    err = float(jnp.max(jnp.abs(y - ref)))
    # tolerance covers MXU f32 multi-pass matmul + approx EUP reciprocal in the
    # softmax normalisation vs the HIGHEST-precision XLA reference
    assert err < 5e-3, f"max abs error vs reference: {err}"

    print("KERNEL_OK")
</pallas_src>

<mosaic_0001>
module attributes {stable_mosaic.version = 11 : i64} {
  func.func @_fused_self_attention_kernel(%arg0: i32, %arg1: memref<1x32x256xf32, #tpu.memory_space<vmem>>, %arg2: memref<96x32xf32, #tpu.memory_space<vmem>>, %arg3: memref<96x1xf32, #tpu.memory_space<vmem>>, %arg4: memref<1x32x256xf32, #tpu.memory_space<vmem>>, %arg5: memref<1x32x256xf32, #tpu.memory_space<vmem>>) attributes {dimension_semantics = [#tpu.dimension_semantics<parallel>], iteration_bounds = array<i64: 2>, scalar_prefetch = 0 : i64, scratch_operands = 0 : i64, tpu.core_type = #tpu.core_type<tc>, window_params = [{transform_indices = @transform_0, window_bounds = array<i64: 1, 32, 256>}, {pipeline_mode = #tpu.pipeline_mode<synchronous>, transform_indices = @transform_1, window_bounds = array<i64: 96, 32>}, {pipeline_mode = #tpu.pipeline_mode<synchronous>, transform_indices = @transform_2, window_bounds = array<i64: 96, 1>}, {transform_indices = @transform_3, window_bounds = array<i64: 1, 32, 256>}, {transform_indices = @transform_4, window_bounds = array<i64: 1, 32, 256>}]} {
    %c0 = arith.constant 0 : index
    %c0_0 = arith.constant 0 : index
    %c0_1 = arith.constant 0 : index
    %0 = vector.load %arg1[%c0, %c0_0, %c0_1] : memref<1x32x256xf32, #tpu.memory_space<vmem>>, vector<1x32x256xf32>
    %1 = vector.shape_cast %0 : vector<1x32x256xf32> to vector<32x256xf32>
    %c0_2 = arith.constant 0 : index
    %c0_3 = arith.constant 0 : index
    %2 = vector.load %arg2[%c0_2, %c0_3] : memref<96x32xf32, #tpu.memory_space<vmem>>, vector<96x32xf32>
    %c0_4 = arith.constant 0 : index
    %c0_5 = arith.constant 0 : index
    %3 = vector.load %arg3[%c0_4, %c0_5] : memref<96x1xf32, #tpu.memory_space<vmem>>, vector<96x1xf32>
    %cst = arith.constant dense<0.000000e+00> : vector<96x256xf32>
    %4 = tpu.matmul %2, %1, %cst {dimension_numbers = #tpu.dot_dimension_numbers<[1], [0], [0], [1], [0, 0, 1, 1], [], []>} : vector<96x32xf32>, vector<32x256xf32>, vector<96x256xf32> -> vector<96x256xf32>
    %5 = vector.broadcast %3 : vector<96x1xf32> to vector<96x256xf32>
    %6 = arith.addf %4, %5 : vector<96x256xf32>
    %7 = vector.shape_cast %6 : vector<96x256xf32> to vector<96x16x16xf32>
    %8 = vector.extract_strided_slice %7 {offsets = [0, 0, 0], sizes = [32, 16, 16], strides = [1, 1, 1]} : vector<96x16x16xf32> to vector<32x16x16xf32>
    %cst_6 = arith.constant 0.176776692 : f32
    %9 = vector.broadcast %cst_6 : f32 to vector<32x16x16xf32>
    %10 = arith.mulf %8, %9 : vector<32x16x16xf32>
    %11 = vector.extract_strided_slice %7 {offsets = [32, 0, 0], sizes = [32, 16, 16], strides = [1, 1, 1]} : vector<96x16x16xf32> to vector<32x16x16xf32>
    %12 = vector.extract_strided_slice %7 {offsets = [64, 0, 0], sizes = [32, 16, 16], strides = [1, 1, 1]} : vector<96x16x16xf32> to vector<32x16x16xf32>
    "tpu.trace_start"() <{level = 10 : i32, message = "chw,cxw->chx"}> : () -> ()
    %cst_7 = arith.constant dense<0.000000e+00> : vector<32x16x16xf32>
    %13 = tpu.matmul %10, %11, %cst_7 {dimension_numbers = #tpu.dot_dimension_numbers<[2], [2], [1], [1], [0, 0, 0, 1, 1, 1], [0], [0]>} : vector<32x16x16xf32>, vector<32x16x16xf32>, vector<32x16x16xf32> -> vector<32x16x16xf32>
    "tpu.trace_stop"() : () -> ()
    %cst_8 = arith.constant dense<0xFF800000> : vector<32x16xf32>
    %14 = vector.multi_reduction <maximumf>, %13, %cst_8 [2] : vector<32x16x16xf32> to vector<32x16xf32>
    %15 = vector.shape_cast %14 : vector<32x16xf32> to vector<32x16x1xf32>
    %16 = vector.broadcast %15 : vector<32x16x1xf32> to vector<32x16x16xf32>
    %17 = arith.subf %13, %16 : vector<32x16x16xf32>
    %18 = math.exp %17 : vector<32x16x16xf32>
    %cst_9 = arith.constant dense<0.000000e+00> : vector<32x16xf32>
    %19 = vector.multi_reduction <add>, %18, %cst_9 [2] : vector<32x16x16xf32> to vector<32x16xf32>
    %20 = vector.shape_cast %19 : vector<32x16xf32> to vector<32x16x1xf32>
    %21 = tpu.reciprocal %20 {approx = true} : vector<32x16x1xf32> -> vector<32x16x1xf32>
    %22 = vector.broadcast %21 : vector<32x16x1xf32> to vector<32x16x16xf32>
    %23 = arith.mulf %18, %22 : vector<32x16x16xf32>
    "tpu.trace_start"() <{level = 10 : i32, message = "chx,cxw->chw"}> : () -> ()
    %cst_10 = arith.constant dense<0.000000e+00> : vector<32x16x16xf32>
    %24 = tpu.matmul %23, %12, %cst_10 {dimension_numbers = #tpu.dot_dimension_numbers<[2], [1], [1], [2], [0, 0, 0, 1, 1, 2], [0], [0]>} : vector<32x16x16xf32>, vector<32x16x16xf32>, vector<32x16x16xf32> -> vector<32x16x16xf32>
    "tpu.trace_stop"() : () -> ()
    %c0_11 = arith.constant 0 : index
    %c0_12 = arith.constant 0 : index
    %c0_13 = arith.constant 0 : index
    %25 = vector.load %arg4[%c0_11, %c0_12, %c0_13] : memref<1x32x256xf32, #tpu.memory_space<vmem>>, vector<1x32x256xf32>
    %26 = vector.shape_cast %25 : vector<1x32x256xf32> to vector<32x256xf32>
    %27 = vector.shape_cast %24 : vector<32x16x16xf32> to vector<32x256xf32>
    %28 = arith.addf %26, %27 : vector<32x256xf32>
    %c0_14 = arith.constant 0 : index
    %c0_15 = arith.constant 0 : index
    %c0_16 = arith.constant 0 : index
    %29 = vector.load %arg5[%c0_14, %c0_15, %c0_16] : memref<1x32x256xf32, #tpu.memory_space<vmem>>, vector<1x32x256xf32>
    %30 = vector.shape_cast %29 : vector<1x32x256xf32> to vector<32x256xf32>
    %31 = vector.shape_cast %28 : vector<32x256xf32> to vector<1x32x256xf32>
    tpu.vector_store %arg5[%c0_14, %c0_15, %c0_16], %31 {strides = array<i32>} : memref<1x32x256xf32, #tpu.memory_space<vmem>>, vector<1x32x256xf32>,
    return
  }
  func.func @transform_0(%arg0: i32) -> (i32, i32, i32) {
    %c0_i32 = arith.constant 0 : i32
    %c0_i32_0 = arith.constant 0 : i32
    %c0_i32_1 = arith.constant 0 : i32
    return %arg0, %c0_i32, %c0_i32_0 : i32, i32, i32
  }
  func.func @transform_1(%arg0: i32) -> (i32, i32) {
    %c0_i32 = arith.constant 0 : i32
    %c0_i32_0 = arith.constant 0 : i32
    %c0_i32_1 = arith.constant 0 : i32
    return %c0_i32, %c0_i32_0 : i32, i32
  }
  func.func @transform_2(%arg0: i32) -> (i32, i32) {
    %c0_i32 = arith.constant 0 : i32
    %c0_i32_0 = arith.constant 0 : i32
    %c0_i32_1 = arith.constant 0 : i32
    return %c0_i32, %c0_i32_0 : i32, i32
  }
  func.func @transform_3(%arg0: i32) -> (i32, i32, i32) {
    %c0_i32 = arith.constant 0 : i32
    %c0_i32_0 = arith.constant 0 : i32
    %c0_i32_1 = arith.constant 0 : i32
    return %arg0, %c0_i32, %c0_i32_0 : i32, i32, i32
  }
  func.func @transform_4(%arg0: i32) -> (i32, i32, i32) {
    %c0_i32 = arith.constant 0 : i32
    %c0_i32_0 = arith.constant 0 : i32
    %c0_i32_1 = arith.constant 0 : i32
    return %arg0, %c0_i32, %c0_i32_0 : i32, i32, i32
  }
}

</mosaic_0001>

<bundles_post_ra>
// kernel: self_attention_forward.1
= control target key start
LH: loop header
LB: loop body
LE: loop exit
PB: predicated region body
PF: predicated region fallthrough
CT: control target
= control target key end

     0   :  { %s13458_s15 = smov 0   ;;  %s17894_s0 = inlined_call_operand.vmem [shape: f32[2,32,256], index: 0, kind: input, shape index: {}]   ;;  %s17895_s1 = inlined_call_operand.vmem [shape: f32[96,32], index: 1, kind: input, shape index: {}]   ;;  %s17896_s2 = inlined_call_operand.vmem [shape: f32[96,1], index: 2, kind: input, shape index: {}]   ;;  %s17897_s3 = inlined_call_operand.vmem [shape: f32[2,32,256], index: 3, kind: input, shape index: {}]   ;;  %s17898_s4 = inlined_call_operand.vmem [shape: f32[2,32,256], index: 4, kind: output, shape index: {}]  }
   0x1 LB: > { %s11885_s16 = sadd.s32 4294967295, %s13420_s15   ;;  %p11889_p0 = scmp.ge.s32.totalorder %s13420_s15, 1  ;;  %s13420_s15 = sphi %s13458_s15, %s14_s15  }
   0x2   : > { %p172_p1 = scmp.lt.s32.totalorder %s13420_s15, 3 }
   0x4   : > { %p173_p2 = pnand %p11889_p0, %p172_p1 }
   0x6   : > { %176 = sbr.rel (%p173_p2) target bundleno = 1691 (0x69b), region = 36 }
   0xd   : > { %p203_p3 = scmp.lt.s32.totalorder %s11885_s16, 1  ;;  %v13422_v0 = vmov 0.0   ;;  %v13423_v1 = vmov 0   ;;  %v242_v2 = vld [vmem:[%s17896_s2 + $0x20] sm:$0xff]  ;;  %v243_v4 = vld [vmem:[%s17896_s2 + $0x28] sm:$0xff]  ;;  %v244_v17 = vld [vmem:[%s17896_s2 + $0x30] sm:$0xff] }
   0xe   : > { %411 = vmatprep.mubr.f32.mxu0 %v13422_v0  ;;  %13156 = vset.pattern.permute.xlu0 %v13423_v1  ;;  %v238_v3 = vld [vmem:[%s17896_s2] sm:$0xff]  ;;  %v239_v5 = vld [vmem:[%s17896_s2 + $0x8] sm:$0xff]  ;;  %v240_v19 = vld [vmem:[%s17896_s2 + $0x10] sm:$0xff]  ;;  %vm310_vm0 = vcmask 261120   ;;  %s13424_s5 = smov 96   ;;  %s13425_s6 = smov 112  }
   0xf   : > { %s18538_s16 = smov (!%p203_p3, %s11885_s16), 1  ;;  %13157 = vset.pattern.permute.xlu1 %v13423_v1  ;;  %272 = vperm.xlu0 %13156, %v242_v2   ;;  %v245_v20 = vld [vmem:[%s17896_s2 + $0x38] sm:$0xff]  ;;  %v226_v21 = vld [vmem:[%s17895_s1] sm:$0xff]  ;;  %v227_v23 = vld [vmem:[%s17895_s1 + $0x8] sm:$0xff]  ;;  %s13426_s9 = smov 64   ;;  %vm4340_vm1 = vcmask 130048  }
  0x10   : > { %s13470_s19 = sshll.u32 %s18538_s16, 6  ;;  %277 = vperm.xlu1 %13157, %v243_v4   ;;  %v241_v22 = vld [vmem:[%s17896_s2 + $0x18] sm:$0xff]  ;;  %v228_v24 = vld [vmem:[%s17895_s1 + $0x10] sm:$0xff]  ;;  %v230_v26 = vld [vmem:[%s17895_s1 + $0x20] sm:$0xff]  ;;  %s13427_s10 = smov 80   ;;  %vm11749_vm3 = vcmask 392192  }
  0x11   : > { %s207_s26 = scalar_lea.vmem %s17894_s0, %s13470_s19  ;;  %v229_v25 = vld [vmem:[%s17895_s1 + $0x18] sm:$0xff]  ;;  %v231_v27 = vld [vmem:[%s17895_s1 + $0x28] sm:$0xff]  ;;  %v232_v28 = vld [vmem:[%s17895_s1 + $0x30] sm:$0xff]  ;;  %s13428_s13 = smov 32   ;;  %v13431_v1 = vmov 1983009808  }
  0x12   : > { %v219_v6 = vld [vmem:[%s207_s26 + $0x8] sm:$0xff]  ;;  %v221_v7 = vld [vmem:[%s207_s26 + $0x18] sm:$0xff]  ;;  %v218_v8 = vld [vmem:[%s207_s26] sm:$0xff]  ;;  %s13429_s14 = smov 48   ;;  %s13430_s18 = smov 16   ;;  %v1015_v2 = vunpack.c.l.s4 %v13431_v1  ;;  %vm11754_vm4 = vcmask 523264  }
  0x13   : > { %v12809_v9 = vpack.c.bf16 %v221_v7, %v219_v6  ;;  %v220_v10 = vld [vmem:[%s207_s26 + $0x10] sm:$0xff]  ;;  %v223_v11 = vld [vmem:[%s207_s26 + $0x28] sm:$0xff]  ;;  %v225_v12 = vld [vmem:[%s207_s26 + $0x38] sm:$0xff]  ;;  %252 = vperm.xlu0 %13156, %v238_v3   ;;  %v1017_v3 = vlaneseq  ;;  %vm11759_vm5 = vcmask 654336   ;;  %s17690_s30 = scalar_lea.vmem %s17897_s3, %s13470_s19  ;;  %vm11764_vm6 = vcmask 785408   ;;  %s17701_s11 = scalar_lea.vmem %s17898_s4, %s13470_s19 }
  0x14   : > { %v12811_v13 = vpack.c.bf16 %v220_v10, %v218_v8  ;;  %v12813_v14 = vpack.c.bf16 %v225_v12, %v223_v11  ;;  %v222_v15 = vld [vmem:[%s207_s26 + $0x20] sm:$0xff]  ;;  %v224_v16 = vld [vmem:[%s207_s26 + $0x30] sm:$0xff]  ;;  %257 = vperm.xlu1 %13157, %v239_v5   ;;  %v233_v29 = vld [vmem:[%s17895_s1 + $0x38] sm:$0xff]  ;;  %v1016_v6 = vunpack.c.0.s8 %v1015_v2  ;;  %vm11769_vm7 = vcmask 916480  }
  0x15   : > { %12810 = vmatprep.subr.bf16.mxu0 %v12809_v9  ;;  %v12815_v18 = vpack.c.bf16 %v224_v16, %v222_v15  ;;  %v234_v35 = vld [vmem:[%s17895_s1 + $0x40] sm:$0xff]  ;;  %v235_v38 = vld [vmem:[%s17895_s1 + $0x48] sm:$0xff]  ;;  %v236_v41 = vld [vmem:[%s17895_s1 + $0x50] sm:$0xff]  ;;  %v1018_v7 = vshrl.u32 %v1017_v3, 7 }
  0x16   : > { %12812 = vmatpush1.bf16.msra.mxu0 %v12811_v13  ;;  %v237_v45 = vld [vmem:[%s17895_s1 + $0x58] sm:$0xff]  ;;  %vm14229_vm2 = vmpackc.low %vm4340_vm1, %vm4340_vm1 }
  0x17   : > { %12814 = vmatprep.subr.bf16.mxu0 %v12813_v14  ;;  %282 = vperm.xlu0 %13156, %v244_v17   ;;  %v13727_v10 = vsub.s32 %v1016_v6, %v1018_v7 }
  0x18   : > { %262 = vperm.xlu1 %13157, %v240_v19  }
  0x19   : > { %18097 = vst [vmem:[#allocation5_spill] sm:$0xff] %v13727_v10 }
  0x1a   : > { %12816 = vmatpush1.bf16.msra.mxu0 %v12815_v18  ;;  %v13432_v18 = vmov 1934713408  }
  0x1b   : > { %287 = vperm.xlu0 %13156, %v245_v20   ;;  %v1079_v19 = vunpack.c.l.s4 %v13432_v18 }
  0x1c   : > { %267 = vperm.xlu1 %13157, %v241_v22  }
  0x1d   : > { %11896 = vmatmul.mubr.msk.f32.vlgmr.msra.gmra.mrb[0].mxu0 %vm310_vm0, %v226_v21 }
  0x1e   : > { %417 = vmatprep.mubr.f32.mxu0 %v13422_v0 }
  0x21   : > { %11897 = vmatmul.mubr.msk.f32.gmra.mrb[2].mxu0 %vm310_vm0, %v227_v23 }
  0x22   : > { %423 = vmatprep.mubr.f32.mxu0 %v13422_v0 }
  0x25   : > { %11898 = vmatmul.mubr.msk.f32.gmra.mrb[4].mxu0 %vm310_vm0, %v228_v24 }
  0x26   : > { %429 = vmatprep.mubr.f32.mxu0 %v13422_v0 }
  0x29   : > { %11899 = vmatmul.mubr.msk.f32.gmra.mrb[6].mxu0 %vm310_vm0, %v229_v25 }
  0x2a   : > { %435 = vmatprep.mubr.f32.mxu0 %v13422_v0 }
  0x2d   : > { %11900 = vmatmul.mubr.msk.f32.gmra.mrb[8].mxu0 %vm310_vm0, %v230_v26 }
  0x2e   : > { %441 = vmatprep.mubr.f32.mxu0 %v13422_v0 }
  0x31   : > { %11901 = vmatmul.mubr.msk.f32.gmra.mrb[10].mxu0 %vm310_vm0, %v231_v27 }
  0x32   : > { %447 = vmatprep.mubr.f32.mxu0 %v13422_v0 }
  0x35   : > { %11902 = vmatmul.mubr.msk.f32.gmra.mrb[12].mxu0 %vm310_vm0, %v232_v28  ;;  %v1080_v28 = vunpack.c.0.s8 %v1079_v19 }
  0x36   : > { %453 = vmatprep.mubr.f32.mxu0 %v13422_v0 }
  0x39   : > { %11903 = vmatmul.mubr.msk.f32.gmra.mrb[14].mxu0 %vm310_vm0, %v233_v29 }
  0x3a   : > { %459 = vmatprep.mubr.f32.mxu0 %v13422_v0 }
  0x3d   : > { %11904 = vmatmul.mubr.msk.f32.gmra.mrb[16].mxu0 %vm310_vm0, %v234_v35  ;;  %v13749_v35 = vsub.s32 %v1080_v28, %v1018_v7 }
  0x3e   : > { %465 = vmatprep.mubr.f32.mxu0 %v13422_v0 }
  0x3f   : > { %18099 = vst [vmem:[#allocation7_spill] sm:$0xff] %v13749_v35 }
  0x41   : > { %11905 = vmatmul.mubr.msk.f32.gmra.mrb[18].mxu0 %vm310_vm0, %v235_v38 }
  0x42   : > { %471 = vmatprep.mubr.f32.mxu0 %v13422_v0 }
  0x45   : > { %11906 = vmatmul.mubr.msk.f32.gmra.mrb[20].mxu0 %vm310_vm0, %v236_v41 }
  0x46   : > { %477 = vmatprep.mubr.f32.mxu0 %v13422_v0 }
  0x49   : > { %11907 = vmatmul.mubr.msk.f32.gmra.mrb[22].mxu0 %vm310_vm0, %v237_v45 }
  0x8e   : > { %v13537_v30 = vpop.permute.xlu0 %272 }
  0x8f   : > { %v13592_v50 = vpop.permute.xlu1 %277 }
  0x92   : > { %v253_v31 = vpop.permute.xlu0 %252 }
  0x93   : > { %v258_v53 = vpop.permute.xlu1 %257 }
  0x96   : > { %v13701_v63 = vpop.permute.xlu0 %282 }
  0x97   : > { %v263_v58 = vpop.permute.xlu1 %262 }
  0x9a   : > { %v13713_v4 = vpop.permute.xlu0 %287 }
  0x9b   : > { %v13707_v0 = vpop.permute.xlu1 %267 }
  0xf0   : > { %v413_v32 = vpop.f32.mrb[0].mxu0 }
  0xf1   : > { %v13539_v33 = vadd.f32 %v413_v32, %v253_v31  ;;  %v415_v34 = vpop.f32.mrb[1].mxu0 }
  0xf2   : > { %v13572_v43 = vadd.f32 %v415_v34, %v253_v31 }
  0xf3   : > { %532 = vrot.lane.b32.xlu1 %v13539_v33, %s13424_s5  ;;  %496 = vrot.lane.b32.xlu0 %v13539_v33, %s13425_s6 }
  0xf4   : > { %v419_v36 = vpop.f32.mrb[2].mxu0 }
  0xf5   : > { %v421_v37 = vpop.f32.mrb[3].mxu0  ;;  %v13608_v55 = vadd.f32 %v419_v36, %v258_v53 }
  0xf6   : > { %v13624_v57 = vadd.f32 %v421_v37, %v258_v53 }
  0xf7   : > { %604 = vrot.lane.b32.xlu1 %v13539_v33, %s13426_s9  ;;  %568 = vrot.lane.b32.xlu0 %v13539_v33, %s13427_s10 }
  0xf8   : > { %v425_v39 = vpop.f32.mrb[4].mxu0 }
  0xf9   : > { %v13559_v40 = vpop.f32.mrb[5].mxu0  ;;  %v13642_v59 = vadd.f32 %v425_v39, %v263_v58 }
  0xfa   : > { %v13691_v62 = vadd.f32 %v13559_v40, %v263_v58 }
  0xfb   : > { %676 = vrot.lane.b32.xlu1 %v13539_v33, %s13428_s13  ;;  %640 = vrot.lane.b32.xlu0 %v13539_v33, %s13429_s14  ;;  %18094 = vst [vmem:[#allocation2_spill] sm:$0xff] %v13642_v59 }
  0xfc   : > { %v13569_v42 = vpop.f32.mrb[6].mxu0  ;;  %18095 = vst [vmem:[#allocation3_spill] sm:$0xff] %v13691_v62 }
  0xfd   : > { %v13574_v44 = vpop.f32.mrb[7].mxu0  ;;  %v13717_v5 = vadd.f32 %v13569_v42, %v13707_v0 }
  0xff   : > { %760 = vrot.lane.b32.xlu1 %v13572_v43, %s13425_s6  ;;  %712 = vrot.lane.b32.xlu0 %v13539_v33, %s13430_s18  ;;  %18096 = vst [vmem:[#allocation4_spill] sm:$0xff] %v13717_v5 }
 0x100   : > { %v437_v46 = vpop.f32.mrb[8].mxu0 }
 0x101   : > { %v439_v47 = vpop.f32.mrb[9].mxu0  ;;  %v13653_v60 = vadd.f32 %v437_v46, %v13537_v30 }
 0x102   : > { %v13668_v61 = vadd.f32 %v439_v47, %v13537_v30 }
 0x103   : > { %832 = vrot.lane.b32.xlu1 %v13572_v43, %s13427_s10  ;;  %796 = vrot.lane.b32.xlu0 %v13572_v43, %s13424_s5 }
 0x104   : > { %v13588_v48 = vpop.f32.mrb[10].mxu0 }
 0x105   : > { %v13590_v49 = vpop.f32.mrb[11].mxu0  ;;  %v13733_v13 = vadd.f32 %v13588_v48, %v13592_v50 }
 0x106   : > { %v13787_v6 = vadd.f32 %v13590_v49, %v13592_v50 }
 0x107   : > { %904 = vrot.lane.b32.xlu1 %v13572_v43, %s13429_s14  ;;  %868 = vrot.lane.b32.xlu0 %v13572_v43, %s13426_s9  ;;  %18098 = vst [vmem:[#allocation6_spill] sm:$0xff] %v13733_v13 }
 0x108   : > { %v13598_v51 = vpop.f32.mrb[12].mxu0  ;;  %18100 = vst [vmem:[#allocation8_spill] sm:$0xff] %v13787_v6 }
 0x109   : > { %v13600_v52 = vpop.f32.mrb[13].mxu0 }
 0x10b   : > { %976 = vrot.lane.b32.xlu1 %v13572_v43, %s13430_s18  ;;  %940 = vrot.lane.b32.xlu0 %v13572_v43, %s13428_s13 }
 0x10c   : > { %v13606_v54 = vpop.f32.mrb[14].mxu0 }
 0x10d   : > { %v13610_v56 = vpop.f32.mrb[15].mxu0 }
 0x10f   : > { %534 = vrot.lane.b32.xlu1 %v13608_v55, %s13424_s5  ;;  %498 = vrot.lane.b32.xlu0 %v13608_v55, %s13425_s6 }
 0x113   : > { %606 = vrot.lane.b32.xlu1 %v13608_v55, %s13426_s9  ;;  %570 = vrot.lane.b32.xlu0 %v13608_v55, %s13427_s10 }
 0x117   : > { %678 = vrot.lane.b32.xlu1 %v13608_v55, %s13428_s13  ;;  %642 = vrot.lane.b32.xlu0 %v13608_v55, %s13429_s14 }
 0x11b   : > { %762 = vrot.lane.b32.xlu1 %v13624_v57, %s13425_s6  ;;  %714 = vrot.lane.b32.xlu0 %v13608_v55, %s13430_s18 }
 0x11f   : > { %834 = vrot.lane.b32.xlu1 %v13624_v57, %s13427_s10  ;;  %798 = vrot.lane.b32.xlu0 %v13624_v57, %s13424_s5 }
 0x123   : > { %906 = vrot.lane.b32.xlu1 %v13624_v57, %s13429_s14  ;;  %870 = vrot.lane.b32.xlu0 %v13624_v57, %s13426_s9 }
 0x127   : > { %978 = vrot.lane.b32.xlu1 %v13624_v57, %s13430_s18  ;;  %942 = vrot.lane.b32.xlu0 %v13624_v57, %s13428_s13 }
 0x12b   : > { %536 = vrot.lane.b32.xlu1 %v13642_v59, %s13424_s5  ;;  %500 = vrot.lane.b32.xlu0 %v13642_v59, %s13425_s6 }
 0x12f   : > { %608 = vrot.lane.b32.xlu1 %v13642_v59, %s13426_s9  ;;  %572 = vrot.lane.b32.xlu0 %v13642_v59, %s13427_s10 }
 0x133   : > { %540 = vrot.lane.b32.xlu1 %v13653_v60, %s13424_s5  ;;  %644 = vrot.lane.b32.xlu0 %v13642_v59, %s13429_s14 }
 0x137   : > { %612 = vrot.lane.b32.xlu1 %v13653_v60, %s13426_s9  ;;  %504 = vrot.lane.b32.xlu0 %v13653_v60, %s13425_s6 }
 0x13b   : > { %684 = vrot.lane.b32.xlu1 %v13653_v60, %s13428_s13  ;;  %576 = vrot.lane.b32.xlu0 %v13653_v60, %s13427_s10 }
 0x13f   : > { %768 = vrot.lane.b32.xlu1 %v13668_v61, %s13425_s6  ;;  %648 = vrot.lane.b32.xlu0 %v13653_v60, %s13429_s14 }
 0x143   : > { %840 = vrot.lane.b32.xlu1 %v13668_v61, %s13427_s10  ;;  %720 = vrot.lane.b32.xlu0 %v13653_v60, %s13430_s18 }
 0x147   : > { %912 = vrot.lane.b32.xlu1 %v13668_v61, %s13429_s14  ;;  %804 = vrot.lane.b32.xlu0 %v13668_v61, %s13424_s5 }
 0x14b   : > { %984 = vrot.lane.b32.xlu1 %v13668_v61, %s13430_s18  ;;  %876 = vrot.lane.b32.xlu0 %v13668_v61, %s13426_s9 }
 0x14f   : > { %680 = vrot.lane.b32.xlu1 %v13642_v59, %s13428_s13  ;;  %948 = vrot.lane.b32.xlu0 %v13668_v61, %s13428_s13 }
 0x153   : > { %764 = vrot.lane.b32.xlu1 %v13691_v62, %s13425_s6  ;;  %716 = vrot.lane.b32.xlu0 %v13642_v59, %s13430_s18 }
 0x157   : > { %836 = vrot.lane.b32.xlu1 %v13691_v62, %s13427_s10  ;;  %800 = vrot.lane.b32.xlu0 %v13691_v62, %s13424_s5 }
 0x15b   : > { %908 = vrot.lane.b32.xlu1 %v13691_v62, %s13429_s14  ;;  %872 = vrot.lane.b32.xlu0 %v13691_v62, %s13426_s9 }
 0x15f   : > { %980 = vrot.lane.b32.xlu1 %v13691_v62, %s13430_s18  ;;  %944 = vrot.lane.b32.xlu0 %v13691_v62, %s13428_s13 }
 0x163   : > { %538 = vrot.lane.b32.xlu1 %v13717_v5, %s13424_s5  ;;  %502 = vrot.lane.b32.xlu0 %v13717_v5, %s13425_s6 }
 0x165   : > { %v533_v8 = vpop.permute.xlu1 %532  ;;  %v497_v9 = vpop.permute.xlu0 %496 }
 0x166   : > { %v1012_v11 = vcombine.low %v13539_v33, %v533_v8  ;;  %v1013_v12 = vcombine.high %v13539_v33, %v533_v8 }
 0x167   : > { %610 = vrot.lane.b32.xlu1 %v13717_v5, %s13426_s9  ;;  %574 = vrot.lane.b32.xlu0 %v13717_v5, %s13427_s10 }
 0x168   : > { %v1020_v20 = vrot.slane %v1012_v11, %v13727_v10  ;;  %v1027_v21 = vrot.slane %v1013_v12, %v13727_v10 }
 0x169   : > { %v605_v14 = vpop.permute.xlu1 %604  ;;  %v569_v15 = vpop.permute.xlu0 %568 }
 0x16a   : > { %v1028_v16 = vcombine.low %v497_v9, %v569_v15  ;;  %v1029_v17 = vcombine.high %v497_v9, %v569_v15 }
 0x16b   : > { %506 = vrot.lane.b32.xlu1 %v13733_v13, %s13425_s6  ;;  %646 = vrot.lane.b32.xlu0 %v13717_v5, %s13429_s14 }
 0x16c   : > { %v1036_v22 = vrot.slane %v1028_v16, %v13727_v10  ;;  %v1043_v23 = vrot.slane %v1029_v17, %v13727_v10 }
 0x16d   : > { %v677_v24 = vpop.permute.xlu1 %676  ;;  %v641_v25 = vpop.permute.xlu0 %640 }
 0x16e   : > { %v1077_v26 = vcombine.high %v1020_v20, %v1036_v22  ;;  %v1092_v27 = vcombine.low %v1027_v21, %v1043_v23  ;;  %v1044_v29 = vcombine.low %v605_v14, %v677_v24  ;;  %v1045_v30 = vcombine.high %v605_v14, %v677_v24 }
 0x16f   : > { %578 = vrot.lane.b32.xlu1 %v13733_v13, %s13427_s10  ;;  %542 = vrot.lane.b32.xlu0 %v13733_v13, %s13424_s5  ;;  %v1093_v36 = vcombine.high %v1027_v21, %v1043_v23  ;;  %v1076_v9 = vcombine.low %v1020_v20, %v1036_v22 }
 0x170   : > { %v1052_v37 = vrot.slane %v1044_v29, %v13727_v10  ;;  %v1059_v38 = vrot.slane %v1045_v30, %v13727_v10  ;;  %v13764_v48 = vrot.slane %v1077_v26, %v13749_v35  ;;  %v13767_v53 = vrot.slane %v1092_v27, %v13749_v35 }
 0x171   : > { %v13747_v31 = vpop.permute.xlu1 %760  ;;  %v713_v32 = vpop.permute.xlu0 %712  ;;  %v13774_v58 = vrot.slane %v1093_v36, %v13749_v35  ;;  %v13813_v19 = vrot.slane %v1076_v9, %v13749_v35  ;;  %v13847_v29 = vadd.f32 %v13598_v51, %v13701_v63  ;;  %v13911_v9 = vadd.f32 %v13574_v44, %v13707_v0 }
 0x172   : > { %v1060_v33 = vcombine.low %v641_v25, %v713_v32  ;;  %v1061_v34 = vcombine.high %v641_v25, %v713_v32 }
 0x173   : > { %650 = vrot.lane.b32.xlu1 %v13733_v13, %s13429_s14  ;;  %614 = vrot.lane.b32.xlu0 %v13733_v13, %s13426_s9  ;;  %18101 = vst [vmem:[#allocation9_spill] sm:$0xff] %v13847_v29  ;;  %18107 = vst [vmem:[#allocation15_spill] sm:$0xff] %v13911_v9 }
 0x174   : > { %v1068_v39 = vrot.slane %v1060_v33, %v13727_v10  ;;  %v1075_v40 = vrot.slane %v1061_v34, %v13727_v10 }
 0x175   : > { %v13759_v41 = vpop.permute.xlu1 %832  ;;  %v13761_v42 = vpop.permute.xlu0 %796 }
 0x176   : > { %v1109_v45 = vcombine.high %v1052_v37, %v1068_v39  ;;  %v1124_v46 = vcombine.low %v1059_v38, %v1075_v40  ;;  %v1125_v47 = vcombine.high %v1059_v38, %v1075_v40  ;;  %v1108_v11 = vcombine.low %v1052_v37, %v1068_v39 }
 0x177   : > { %722 = vrot.lane.b32.xlu1 %v13733_v13, %s13430_s18  ;;  %686 = vrot.lane.b32.xlu0 %v13733_v13, %s13428_s13  ;;  %v13875_v37 = vadd.f32 %v13600_v52, %v13701_v63  ;;  %v1164_v26 = vcombine.low %v13747_v31, %v13759_v41  ;;  %v1165_v16 = vcombine.high %v13747_v31, %v13759_v41 }
 0x178   : > { %v13777_v1 = vrot.slane %v1109_v45, %v13749_v35  ;;  %v13780_v2 = vrot.slane %v1124_v46, %v13749_v35  ;;  %v13783_v3 = vrot.slane %v1125_v47, %v13749_v35  ;;  %v13806_v49 = vrot.slane %v1108_v11, %v13749_v35 }
 0x179   : > { %v13789_v7 = vpop.permute.xlu1 %904  ;;  %v13791_v8 = vpop.permute.xlu0 %868  ;;  %18102 = vst [vmem:[#allocation10_spill] sm:$0xff] %v13875_v37  ;;  %v1149_v15 = vcombine.high %v13572_v43, %v13761_v42  ;;  %v1172_v31 = vrot.slane %v1164_v26, %v13727_v10  ;;  %v13975_v26 = vadd.f32 %v13610_v56, %v13713_v4 }
 0x17a   : > { %v1146_v12 = vcombine.low %v13774_v58, %v13783_v3  ;;  %v1140_v20 = vcombine.low %v13813_v19, %v13806_v49 }
 0x17b   : > { %806 = vrot.lane.b32.xlu1 %v13787_v6, %s13424_s5  ;;  %770 = vrot.lane.b32.xlu0 %v13787_v6, %s13425_s6  ;;  %18110 = vst [vmem:[#allocation18_spill] sm:$0xff] %v13975_v26 }
 0x17c   : > { %v4288_v50 = vmul.f32 0.17677669, %v1146_v12  ;;  %v4276_v23 = vmul.f32 0.17677669, %v1140_v20 }
 0x17d   : > { %v13808_v17 = vpop.permute.xlu1 %976  ;;  %v13810_v18 = vpop.permute.xlu0 %940 }
 0x17e   : > { %12407 = vmatprep.mubr.msk.f32.mxu0 %vm4340_vm1, %v4288_v50  ;;  %12365 = vmatprep.mubr.msk.f32.mxu1 %vm4340_vm1, %v4276_v23  ;;  %v13923_v50 = vadd.f32 %v13606_v54, %v13713_v4  ;;  %v1148_v54 = vcombine.low %v13572_v43, %v13761_v42  ;;  %v1196_v22 = vcombine.low %v13789_v7, %v13808_v17 }
 0x17f   : > { %878 = vrot.lane.b32.xlu1 %v13787_v6, %s13426_s9  ;;  %842 = vrot.lane.b32.xlu0 %v13787_v6, %s13427_s10  ;;  %v1180_v21 = vcombine.low %v13791_v8, %v13810_v18  ;;  %v1197_v14 = vcombine.high %v13789_v7, %v13808_v17  ;;  %v1179_v7 = vrot.slane %v1165_v16, %v13727_v10 }
 0x180   : > { %18109 = vst [vmem:[#allocation17_spill] sm:$0xff] %v13923_v50  ;;  %v1156_v43 = vrot.slane %v1148_v54, %v13727_v10  ;;  %v1204_v41 = vrot.slane %v1196_v22, %v13727_v10  ;;  %v1163_v17 = vrot.slane %v1149_v15, %v13727_v10 }
 0x181   : > { %v13826_v24 = vpop.permute.xlu1 %534  ;;  %v13828_v25 = vpop.permute.xlu0 %498  ;;  %v1188_v42 = vrot.slane %v1180_v21, %v13727_v10 }
 0x182   : > { %v1212_v16 = vcombine.low %v1156_v43, %v1172_v31  ;;  %v1228_v13 = vcombine.low %v1163_v17, %v1179_v7  ;;  %v1229_v62 = vcombine.high %v1163_v17, %v1179_v7  ;;  %v1284_v56 = vcombine.low %v13608_v55, %v13826_v24 }
 0x183   : > { %950 = vrot.lane.b32.xlu1 %v13787_v6, %s13428_s13  ;;  %914 = vrot.lane.b32.xlu0 %v13787_v6, %s13429_s14  ;;  %v1244_v54 = vcombine.low %v1188_v42, %v1204_v41  ;;  %v1245_v15 = vcombine.high %v1188_v42, %v1204_v41 }
 0x184   : > { %v13996_v42 = vrot.slane %v1212_v16, %v13749_v35 }
 0x185   : > { %v13837_v27 = vpop.permute.xlu1 %606  ;;  %v13839_v28 = vpop.permute.xlu0 %570  ;;  %v13999_v7 = vrot.slane %v1244_v54, %v13749_v35  ;;  %v14002_v17 = vrot.slane %v1245_v15, %v13749_v35 }
 0x187   : > { %682 = vrot.lane.b32.xlu1 %v13717_v5, %s13428_s13  ;;  %718 = vrot.lane.b32.xlu0 %v13717_v5, %s13430_s18 }
 0x189   : > { %v13849_v30 = vpop.permute.xlu1 %678  ;;  %v13851_v32 = vpop.permute.xlu0 %642 }
 0x18b   : > { %544 = vrot.lane.b32.xlu1 %v13847_v29, %s13424_s5  ;;  %986 = vrot.lane.b32.xlu0 %v13787_v6, %s13430_s18  ;;  %v1213_v6 = vcombine.high %v1156_v43, %v1172_v31  ;;  %v18113_v31 = vcombine.high %v13764_v48, %v13777_v1 }
 0x18d   : > { %v13857_v33 = vpop.permute.xlu1 %762  ;;  %v13859_v34 = vpop.permute.xlu0 %714  ;;  %v13993_v43 = vmul.f32 0.17677669, %v18113_v31 }
 0x18f   : > { %616 = vrot.lane.b32.xlu1 %v13847_v29, %s13426_s9  ;;  %508 = vrot.lane.b32.xlu0 %v13847_v29, %s13425_s6  ;;  %18114 = vst [vmem:[#allocation20_spill] sm:$0xff] %v13993_v43  ;;  %v1301_v43 = vcombine.high %v13828_v25, %v13839_v28 }
 0x191   : > { %v13865_v51 = vpop.permute.xlu1 %834  ;;  %v13867_v36 = vpop.permute.xlu0 %798 }
 0x193   : > { %688 = vrot.lane.b32.xlu1 %v13847_v29, %s13428_s13  ;;  %580 = vrot.lane.b32.xlu0 %v13847_v29, %s13427_s10 }
 0x195   : > { %v13877_v38 = vpop.permute.xlu1 %906  ;;  %v13879_v39 = vpop.permute.xlu0 %870 }
 0x197   : > { %772 = vrot.lane.b32.xlu1 %v13875_v37, %s13425_s6  ;;  %652 = vrot.lane.b32.xlu0 %v13847_v29, %s13429_s14 }
 0x199   : > { %v13885_v40 = vpop.permute.xlu1 %978  ;;  %v13887_v45 = vpop.permute.xlu0 %942 }
 0x19b   : > { %844 = vrot.lane.b32.xlu1 %v13875_v37, %s13427_s10  ;;  %724 = vrot.lane.b32.xlu0 %v13847_v29, %s13430_s18  ;;  %v1181_v29 = vcombine.high %v13791_v8, %v13810_v18  ;;  %v1211_v8 = vrot.slane %v1197_v14, %v13727_v10 }
 0x19d   : > { %v13893_v52 = vpop.permute.xlu1 %536  ;;  %v13895_v63 = vpop.permute.xlu0 %500  ;;  %v1195_v18 = vrot.slane %v1181_v29, %v13727_v10 }
 0x19e   : > { %18103 = vst [vmem:[#allocation11_spill] sm:$0xff] %v13893_v52  ;;  %18104 = vst [vmem:[#allocation12_spill] sm:$0xff] %v13895_v63 }
 0x19f   : > { %916 = vrot.lane.b32.xlu1 %v13875_v37, %s13429_s14  ;;  %808 = vrot.lane.b32.xlu0 %v13875_v37, %s13424_s5  ;;  %v1260_v14 = vcombine.low %v1195_v18, %v1211_v8  ;;  %v1261_v29 = vcombine.high %v1195_v18, %v1211_v8  ;;  %v1285_v8 = vcombine.high %v13608_v55, %v13826_v24 }
 0x1a0   : > { %v14010_v18 = vrot.slane %v1228_v13, %v13749_v35  ;;  %v18117_v55 = vcombine.high %v13813_v19, %v13806_v49  ;;  %v18120_v24 = vcombine.high %v13774_v58, %v13783_v3  ;;  %v14046_v49 = vrot.slane %v1284_v56, %v13727_v10 }
 0x1a1   : > { %v13901_v46 = vpop.permute.xlu1 %608  ;;  %v13903_v47 = vpop.permute.xlu0 %572  ;;  %v14023_v54 = vrot.slane %v1260_v14, %v13749_v35  ;;  %v14043_v14 = vrot.slane %v1261_v29, %v13749_v35  ;;  %v14056_v3 = vrot.slane %v1285_v8, %v13727_v10 }
 0x1a2   : > { %18105 = vst [vmem:[#allocation13_spill] sm:$0xff] %v13901_v46  ;;  %18106 = vst [vmem:[#allocation14_spill] sm:$0xff] %v13903_v47  ;;  %v14040_v15 = vmul.f32 0.17677669, %v18120_v24 }
 0x1a3   : > { %988 = vrot.lane.b32.xlu1 %v13875_v37, %s13430_s18  ;;  %880 = vrot.lane.b32.xlu0 %v13875_v37, %s13426_s9 }
 0x1a4   : > { %18121 = vst [vmem:[#allocation23_spill] sm:$0xff] %v14040_v15 }
 0x1a5   : > { %v13913_v11 = vpop.permute.xlu1 %540  ;;  %v13915_v12 = vpop.permute.xlu0 %644 }
 0x1a6   : > { %18108 = vst [vmem:[#allocation16_spill] sm:$0xff] %v13915_v12  ;;  %v18111_v12 = vcombine.low %v13764_v48, %v13777_v1  ;;  %v14013_v48 = vrot.slane %v1229_v62, %v13749_v35  ;;  %v18115_v1 = vcombine.low %v13767_v53, %v13780_v2  ;;  %v18118_v62 = vcombine.high %v13767_v53, %v13780_v2 }
 0x1a7   : > { %766 = vrot.lane.b32.xlu1 %v13911_v9, %s13425_s6  ;;  %952 = vrot.lane.b32.xlu0 %v13875_v37, %s13428_s13  ;;  %v2100_v8 = vcombine.low %v13653_v60, %v13913_v11 }
 0x1a8   : > { %v13988_v41 = vmul.f32 0.17677669, %v18111_v12  ;;  %v14007_v12 = vrot.slane %v1213_v6, %v13749_v35  ;;  %v14020_v16 = vmul.f32 0.17677669, %v18115_v1  ;;  %v14028_v6 = vmul.f32 0.17677669, %v18117_v55 }
 0x1a9   : > { %v13925_v20 = vpop.permute.xlu1 %612  ;;  %v13927_v23 = vpop.permute.xlu0 %504  ;;  %v14035_v13 = vmul.f32 0.17677669, %v18118_v62 }
 0x1aa   : > { %18112 = vst [vmem:[#allocation19_spill] sm:$0xff] %v13988_v41  ;;  %18116 = vst [vmem:[#allocation21_spill] sm:$0xff] %v14020_v16 }
 0x1ab   : > { %546 = vrot.lane.b32.xlu1 %v13923_v50, %s13424_s5  ;;  %802 = vrot.lane.b32.xlu0 %v13911_v9, %s13424_s5  ;;  %18119 = vst [vmem:[#allocation22_spill] sm:$0xff] %v14035_v13 }
 0x1ad   : > { %v13933_v44 = vpop.permute.xlu1 %684  ;;  %v13935_v0 = vpop.permute.xlu0 %576 }
 0x1ae   : > { %v2132_v19 = vcombine.low %v13925_v20, %v13933_v44  ;;  %v2133_v56 = vcombine.high %v13925_v20, %v13933_v44  ;;  %v2116_v55 = vcombine.low %v13927_v23, %v13935_v0  ;;  %v2117_v62 = vcombine.high %v13927_v23, %v13935_v0 }
 0x1af   : > { %618 = vrot.lane.b32.xlu1 %v13923_v50, %s13426_s9  ;;  %510 = vrot.lane.b32.xlu0 %v13923_v50, %s13425_s6 }
 0x1b0   : > { %v14076_v44 = vrot.slane %v2132_v19, %v13727_v10  ;;  %v14091_v19 = vrot.slane %v2133_v56, %v13727_v10  ;;  %v14094_v15 = vrot.slane %v2116_v55, %v13727_v10 }
 0x1b1   : > { %v13957_v37 = vpop.permute.xlu1 %768  ;;  %v13959_v5 = vpop.permute.xlu0 %648 }
 0x1b3   : > { %690 = vrot.lane.b32.xlu1 %v13923_v50, %s13428_s13  ;;  %582 = vrot.lane.b32.xlu0 %v13923_v50, %s13427_s10 }
 0x1b5   : > { %v13977_v22 = vpop.permute.xlu1 %840  ;;  %v721_v21 = vpop.permute.xlu0 %720 }
 0x1b6   : > { %v2148_v31 = vcombine.low %v13959_v5, %v721_v21  ;;  %v2149_v29 = vcombine.high %v13959_v5, %v721_v21  ;;  %v2101_v5 = vcombine.high %v13653_v60, %v13913_v11  ;;  %v2252_v23 = vcombine.low %v13957_v37, %v13977_v22 }
 0x1b7   : > { %774 = vrot.lane.b32.xlu1 %v13975_v26, %s13425_s6  ;;  %654 = vrot.lane.b32.xlu0 %v13923_v50, %s13429_s14  ;;  %v2253_v60 = vcombine.high %v13957_v37, %v13977_v22 }
 0x1b8   : > { %v14081_v0 = vrot.slane %v2148_v31, %v13727_v10  ;;  %v14097_v31 = vrot.slane %v2117_v62, %v13727_v10 }
 0x1b9   : > { %v913_v4 = vpop.permute.xlu1 %912  ;;  %v805_v46 = vpop.permute.xlu0 %804 }
 0x1ba   : > { %v2236_v24 = vcombine.low %v13668_v61, %v805_v46  ;;  %v2237_v21 = vcombine.high %v13668_v61, %v805_v46  ;;  %v14088_v61 = vrot.slane %v2149_v29, %v13727_v10  ;;  %v14122_v29 = vrot.slane %v2101_v5, %v13727_v10 }
 0x1bb   : > { %846 = vrot.lane.b32.xlu1 %v13975_v26, %s13427_s10  ;;  %726 = vrot.lane.b32.xlu0 %v13923_v50, %s13430_s18 }
 0x1bc   : > { %v14105_v37 = vrot.slane %v2237_v21, %v13727_v10  ;;  %18123 = vst [vmem:[#allocation25_spill] sm:$0xff] %v14122_v29  ;;  %v14134_v21 = vrot.slane %v2252_v23, %v13727_v10  ;;  %v2181_v13 = vcombine.high %v14122_v29, %v14097_v31 }
 0x1bd   : > { %v985_v1 = vpop.permute.xlu1 %984  ;;  %v877_v53 = vpop.permute.xlu0 %876 }
 0x1be   : > { %v2285_v20 = vcombine.high %v913_v4, %v985_v1  ;;  %v2284_v58 = vcombine.low %v913_v4, %v985_v1  ;;  %v14100_v4 = vrot.slane %v2236_v24, %v13727_v10  ;;  %v2196_v24 = vcombine.low %v14076_v44, %v14081_v0 }
 0x1bf   : > { %918 = vrot.lane.b32.xlu1 %v13975_v26, %s13429_s14  ;;  %810 = vrot.lane.b32.xlu0 %v13975_v26, %s13424_s5 }
 0x1c0   : > { %v14125_v56 = vrot.slane %v2284_v58, %v13727_v10  ;;  %v2300_v16 = vcombine.low %v14100_v4, %v14134_v21  ;;  %v2204_v52 = vrot.slane %v2196_v24, %v13749_v35 }
 0x1c1   : > { %v14083_v2 = vpop.permute.xlu1 %680  ;;  %v949_v50 = vpop.permute.xlu0 %948 }
 0x1c2   : > { %18122 = vst [vmem:[#allocation24_spill] sm:$0xff] %v14083_v2  ;;  %v2268_v46 = vcombine.low %v877_v53, %v949_v50  ;;  %v2269_v11 = vcombine.high %v877_v53, %v949_v50  ;;  %v14108_v50 = vrot.slane %v2285_v20, %v13727_v10  ;;  %v14119_v53 = vrot.slane %v2100_v8, %v13727_v10 }
 0x1c3   : > { %990 = vrot.lane.b32.xlu1 %v13975_v26, %s13430_s18  ;;  %882 = vrot.lane.b32.xlu0 %v13975_v26, %s13426_s9  ;;  %v14137_v20 = vrot.slane %v2253_v60, %v13727_v10  ;;  %v2213_v8 = vcombine.high %v14091_v19, %v14088_v61  ;;  %v1316_v2 = vcombine.low %v13837_v27, %v13849_v30 }
 0x1c4   : > { %v14111_v22 = vrot.slane %v2268_v46, %v13727_v10  ;;  %v14114_v1 = vrot.slane %v2269_v11, %v13727_v10  ;;  %v1332_v46 = vcombine.low %v13851_v32, %v13859_v34  ;;  %v2164_v23 = vcombine.low %v14119_v53, %v14094_v15 }
 0x1c5   : > { %v14127_v55 = vpop.permute.xlu1 %764  ;;  %v14129_v62 = vpop.permute.xlu0 %716  ;;  %v1300_v11 = vcombine.low %v13828_v25, %v13839_v28  ;;  %v2317_v5 = vcombine.high %v14105_v37, %v14137_v20  ;;  %v14177_v63 = vrot.slane %v2213_v8, %v13749_v35  ;;  %v1282_v28 = vcombine.low %v14013_v48, %v14043_v14 }
 0x1c6   : > { %18124 = vst [vmem:[#allocation26_spill] sm:$0xff] %v14127_v55  ;;  %18125 = vst [vmem:[#allocation27_spill] sm:$0xff] %v14129_v62  ;;  %v2349_v58 = vcombine.high %v14114_v1, %v14108_v50  ;;  %v2332_v60 = vcombine.low %v14111_v22, %v14125_v56  ;;  %v2172_v24 = vrot.slane %v2164_v23, %v13749_v35 }
 0x1c7   : > { %838 = vrot.lane.b32.xlu1 %v13911_v9, %s13427_s10  ;;  %954 = vrot.lane.b32.xlu0 %v13975_v26, %s13428_s13  ;;  %v14194_v8 = vrot.slane %v1300_v11, %v13727_v10  ;;  %v14209_v26 = vrot.slane %v1316_v2, %v13727_v10  ;;  %v1333_v23 = vcombine.high %v13851_v32, %v13859_v34 }
 0x1c8   : > { %v14180_v55 = vrot.slane %v2349_v58, %v13749_v35  ;;  %v2340_v25 = vrot.slane %v2332_v60, %v13749_v35  ;;  %v14197_v58 = vrot.slane %v2181_v13, %v13749_v35  ;;  %v14200_v60 = vrot.slane %v2317_v5, %v13749_v35 }
 0x1c9   : > { %v14169_v62 = vpop.permute.xlu1 %836  ;;  %v14171_v59 = vpop.permute.xlu0 %800  ;;  %v2228_v5 = vcombine.low %v2172_v24, %v2204_v52  ;;  %v2333_v32 = vcombine.high %v14111_v22, %v14125_v56 }
 0x1ca   : > { %18126 = vst [vmem:[#allocation28_spill] sm:$0xff] %v14169_v62  ;;  %18127 = vst [vmem:[#allocation29_spill] sm:$0xff] %v14171_v59  ;;  %v14188_v59 = vrot.slane %v1332_v46, %v13727_v10  ;;  %v2308_v46 = vrot.slane %v2300_v16, %v13749_v35  ;;  %v14206_v62 = vrot.slane %v1301_v43, %v13727_v10 }
 0x1cb   : > { %18128 = vst [vmem:[#allocation30_spill] sm:$0xff] %v14180_v55  ;;  %910 = vrot.lane.b32.xlu1 %v13911_v9, %s13429_s14  ;;  %18129 = vst [vmem:[#allocation31_spill] sm:$0xff] %v14197_v58  ;;  %874 = vrot.lane.b32.xlu0 %v13911_v9, %s13426_s9  ;;  %v2234_v29 = vcombine.low %v14197_v58, %v14177_v63  ;;  %v2370_v43 = vcombine.low %v14200_v60, %v14180_v55 }
 0x1cc   : > { %18130 = vst [vmem:[#allocation32_spill] sm:$0xff] %v14200_v60  ;;  %v2364_v47 = vcombine.low %v2308_v46, %v2340_v25  ;;  %v2365_v41 = vcombine.high %v2308_v46, %v2340_v25  ;;  %v1317_v16 = vcombine.high %v13837_v27, %v13849_v30  ;;  %v1380_v2 = vcombine.low %v14209_v26, %v14188_v59  ;;  %v14237_v46 = vpop.f32.mrb[16].mxu0 }
 0x1cd   : > { %v14213_v11 = vpop.permute.xlu1 %908  ;;  %v14215_v13 = vpop.permute.xlu0 %872  ;;  %v1276_v25 = vcombine.low %v13996_v42, %v13999_v7  ;;  %18135 = vst [vmem:[#allocation35_spill] sm:$0xff] %v14237_v46  ;;  %v1348_v27 = vcombine.low %v14046_v49, %v14194_v8  ;;  %v2229_v30 = vcombine.high %v2172_v24, %v2204_v52  ;;  %v12853_v22 = vpack.c.bf16 %v2370_v43, %v2234_v29  ;;  %v246_v52 = vld [vmem:[%s17896_s2 + $0x40] sm:$0xff] }
 0x1ce   : > { %18131 = vst [vmem:[#allocation33_spill] sm:$0xff] %v14213_v11  ;;  %18132 = vst [vmem:[#allocation34_spill] sm:$0xff] %v14215_v13  ;;  %v12817_v60 = vpack.c.bf16 %v2364_v47, %v2228_v5  ;;  %v14243_v56 = vpop.f32.mrb[17].mxu0  ;;  %v1349_v55 = vcombine.high %v14046_v49, %v14194_v8  ;;  %v2197_v13 = vcombine.high %v14076_v44, %v14081_v0  ;;  %v4289_v24 = vmul.f32 0.17677669, %v1282_v28 }
 0x1cf   : > { %982 = vrot.lane.b32.xlu1 %v13911_v9, %s13430_s18  ;;  %946 = vrot.lane.b32.xlu0 %v13911_v9, %s13428_s13  ;;  %18136 = vst [vmem:[#allocation36_spill] sm:$0xff] %v14243_v56  ;;  %v2301_v46 = vcombine.high %v14100_v4, %v14134_v21  ;;  %v18137_v47 = vcombine.high %v13996_v42, %v13999_v7  ;;  %v249_v4 = vld [vmem:[%s17896_s2 + $0x58] sm:$0xff]  ;;  %v14280_v21 = vpop.f32.mrb[18].mxu0 }
 0x1d0   : > { %v1364_v49 = vcombine.low %v14056_v3, %v14206_v62  ;;  %v14266_v44 = vrot.slane %v1333_v23, %v13727_v10  ;;  %12819 = vmatprep.subr.msk.bf16.mxu1 %vm14229_vm2, %v12817_v60  ;;  %12855 = vmatprep.subr.msk.bf16.mxu0 %vm14229_vm2, %v12853_v22  ;;  %v12823_v0 = vpack.c.bf16 %v2365_v41, %v2229_v30  ;;  %v14294_v5 = vpop.f32.mrb[19].mxu0 }
 0x1d1   : > { %v14251_v11 = vpop.permute.xlu1 %980  ;;  %v14253_v58 = vpop.permute.xlu0 %944  ;;  %v14261_v29 = vmul.f32 0.17677669, %v18137_v47  ;;  %v18138_v42 = vcombine.low %v14007_v12, %v14002_v17  ;;  %18139 = vst [vmem:[#allocation37_spill] sm:$0xff] %v14280_v21  ;;  %v14283_v8 = vrot.slane %v1380_v2, %v13749_v35  ;;  %v2165_v23 = vcombine.high %v14119_v53, %v14094_v15  ;;  %12822 = vmatpush3.bf16.xpose.msk.msra.mxu1 %vm14229_vm2, %v12817_v60 }
 0x1d2   : > { %v14288_v41 = vrot.slane %v2333_v32, %v13749_v35  ;;  %12858 = vmatpush3.bf16.xpose.msk.msra.mxu0 %vm14229_vm2, %v12853_v22  ;;  %18140 = vst [vmem:[#allocation38_spill] sm:$0xff] %v14294_v5  ;;  %v14297_v43 = vrot.slane %v1348_v27, %v13749_v35  ;;  %v1365_v28 = vcombine.high %v14056_v3, %v14206_v62  ;;  %v14309_v60 = vpop.f32.mrb[20].mxu0 }
 0x1d3   : > { %v14278_v7 = vmul.f32 0.17677669, %v18138_v42  ;;  %v1331_v2 = vrot.slane %v1317_v16, %v13727_v10  ;;  %12825 = vmatprep.subr.msk.bf16.mxu1 %vm14229_vm2, %v12823_v0  ;;  %292 = vperm.xlu1 %13157, %v246_v52   ;;  %v18141_v15 = vcombine.high %v14007_v12, %v14002_v17  ;;  %18142 = vst [vmem:[#allocation39_spill] sm:$0xff] %v14309_v60  ;;  %v247_v12 = vld [vmem:[%s17896_s2 + $0x48] sm:$0xff]  ;;  %v14339_v47 = vpop.f32.mrb[21].mxu0 }
 0x1d4   : > { %v1436_v32 = vcombine.low %v13857_v33, %v13865_v51  ;;  %v1420_v27 = vcombine.low %v13624_v57, %v13867_v36  ;;  %v14316_v3 = vrot.slane %v2197_v13, %v13749_v35  ;;  %v14319_v62 = vrot.slane %v2301_v46, %v13749_v35  ;;  %307 = vperm.xlu0 %13156, %v249_v4  }
 0x1d5   : > { %v14307_v53 = vmul.f32 0.17677669, %v18141_v15  ;;  %v14321_v16 = vpop.permute.xlu1 %538  ;;  %v14323_v17 = vpop.permute.xlu0 %502  ;;  %v1381_v30 = vcombine.high %v14209_v26, %v14188_v59  ;;  %v1437_v22 = vcombine.high %v13857_v33, %v13865_v51  ;;  %v1421_v13 = vcombine.high %v13624_v57, %v13867_v36  ;;  %18144 = vst [vmem:[#allocation40_spill] sm:$0xff] %v14339_v47 }
 0x1d6   : > { %v18143_v46 = vcombine.low %v14010_v18, %v14023_v54  ;;  %v1396_v4 = vcombine.low %v1331_v2, %v14266_v44  ;;  %v14343_v42 = vrot.slane %v2165_v23, %v13749_v35  ;;  %v1412_v59 = vcombine.low %v14297_v43, %v14283_v8  ;;  %v14349_v51 = vpop.f32.mrb[22].mxu0 }
 0x1d7   : > { %v2366_v33 = vcombine.low %v14319_v62, %v14288_v41  ;;  %18145 = vst [vmem:[#allocation41_spill] sm:$0xff] %v14349_v51  ;;  %v14352_v57 = vrot.slane %v1349_v55, %v13749_v35  ;;  %v14355_v36 = vrot.slane %v1364_v49, %v13749_v35  ;;  %v14358_v26 = vrot.slane %v1365_v28, %v13749_v35  ;;  %v14360_v23 = vpop.f32.mrb[23].mxu0 }
 0x1d8   : > { %v14337_v52 = vmul.f32 0.17677669, %v18143_v46  ;;  %v4277_v15 = vmul.f32 0.17677669, %v1276_v25  ;;  %297 = vperm.xlu1 %13157, %v247_v12   ;;  %18146 = vst [vmem:[#allocation42_spill] sm:$0xff] %v14360_v23  ;;  %v1397_v46 = vcombine.high %v1331_v2, %v14266_v44  ;;  %v1444_v47 = vrot.slane %v1436_v32, %v13727_v10  ;;  %v18270_v34 = vld [vmem:[#allocation37_spill] sm:$0xff] }
 0x1d9   : > { %v1428_v60 = vrot.slane %v1420_v27, %v13727_v10  ;;  %v2230_v55 = vcombine.low %v14343_v42, %v14316_v3  ;;  %v14367_v51 = vpop.permute.xlu1 %610  ;;  %v14369_v49 = vpop.permute.xlu0 %574  ;;  %v1451_v28 = vrot.slane %v1437_v22, %v13727_v10  ;;  %v1435_v25 = vrot.slane %v1421_v13, %v13727_v10  ;;  %12408 = vmatmul.mubr.msk.f32.vlgmr.msra.gmra.mrb[24].mxu0 %vm4340_vm1, %v4289_v24  ;;  %v248_v13 = vld [vmem:[%s17896_s2 + $0x50] sm:$0xff] }
 0x1da   : > { %18147 = vst [vmem:[#allocation43_spill] sm:$0xff] %v14367_v51  ;;  %v1468_v12 = vcombine.low %v13877_v38, %v13885_v40  ;;  %v1452_v44 = vcombine.low %v13879_v39, %v13887_v45  ;;  %12366 = vmatmul.mubr.msk.f32.vlgmr.msra.gmra.mrb[0].mxu1 %vm4340_vm1, %v4277_v15  ;;  %v14379_v2 = vrot.slane %v1381_v30, %v13749_v35  ;;  %v4292_v27 = vmul.f32 0.17677669, %v1412_v59 }
 0x1db   : > { %v14382_v32 = vrot.slane %v1396_v4, %v13749_v35  ;;  %v12829_v22 = vpack.c.bf16 %v2366_v33, %v2230_v55  ;;  %v1469_v23 = vcombine.high %v13877_v38, %v13885_v40  ;;  %v1453_v15 = vcombine.high %v13879_v39, %v13887_v45  ;;  %12828 = vmatpush3.bf16.xpose.msk.msra.mxu1 %vm14229_vm2, %v12823_v0 }
 0x1dc   : > { %12372 = vmatprep.mubr.msk.f32.mxu1 %vm4340_vm1, %v14028_v6  ;;  %v18148_v24 = vcombine.high %v14010_v18, %v14023_v54  ;;  %v1413_v4 = vcombine.high %v14297_v43, %v14283_v8  ;;  %v14404_v59 = vrot.slane %v1397_v46, %v13749_v35  ;;  %v1484_v38 = vcombine.low %v1428_v60, %v1444_v47 }
 0x1dd   : > { %v1485_v40 = vcombine.high %v1428_v60, %v1444_v47  ;;  %12421 = vmatprep.mubr.msk.f32.mxu0 %vm4340_vm1, %v4292_v27  ;;  %12831 = vmatprep.subr.msk.bf16.mxu1 %vm14229_vm2, %v12829_v22  ;;  %v14409_v39 = vpop.permute.xlu1 %506  ;;  %v14411_v45 = vpop.permute.xlu0 %646  ;;  %v18150_v18 = vcombine.high %v14013_v48, %v14043_v14  ;;  %v1500_v6 = vcombine.low %v1435_v25, %v1451_v28  ;;  %v18153_v27 = vld [vmem:[#allocation19_spill] sm:$0xff] }
 0x1de   : > { %v14399_v30 = vmul.f32 0.17677669, %v18148_v24  ;;  %18149 = vst [vmem:[#allocation44_spill] sm:$0xff] %v14411_v45  ;;  %v1501_v0 = vcombine.high %v1435_v25, %v1451_v28  ;;  %v1476_v8 = vrot.slane %v1468_v12, %v13727_v10  ;;  %v1460_v43 = vrot.slane %v1452_v44, %v13727_v10  ;;  %302 = vperm.xlu1 %13157, %v248_v13  }
 0x1df   : > { %v14416_v54 = vmul.f32 0.17677669, %v18150_v18  ;;  %v2348_v60 = vcombine.low %v14114_v1, %v14108_v50  ;;  %v2367_v47 = vcombine.high %v14319_v62, %v14288_v41  ;;  %v1414_v33 = vcombine.low %v14352_v57, %v14379_v2 }
 0x1e0   : > { %v1415_v48 = vcombine.high %v14352_v57, %v14379_v2  ;;  %v1483_v14 = vrot.slane %v1469_v23, %v13727_v10  ;;  %v1467_v46 = vrot.slane %v1453_v15, %v13727_v10  ;;  %v14430_v55 = vmul.f32 0.17677669, %v1413_v4  ;;  %v18155_v4 = vld [vmem:[#allocation14_spill] sm:$0xff] }
 0x1e1   : > { %v1416_v28 = vcombine.low %v14355_v36, %v14382_v32  ;;  %v14435_v50 = vrot.slane %v1484_v38, %v13749_v35  ;;  %v2212_v1 = vcombine.low %v14091_v19, %v14088_v61  ;;  %v2316_v41 = vcombine.low %v14105_v37, %v14137_v20  ;;  %v14443_v57 = vpop.permute.xlu1 %578  ;;  %v14445_v23 = vpop.permute.xlu0 %542  ;;  %v18152_v37 = vld [vmem:[#allocation25_spill] sm:$0xff]  ;;  %v18156_v38 = vld [vmem:[#allocation12_spill] sm:$0xff] }
 0x1e2   : > { %v2231_v62 = vcombine.high %v14343_v42, %v14316_v3  ;;  %v14448_v25 = vrot.slane %v1485_v40, %v13749_v35  ;;  %v14451_v12 = vrot.slane %v1500_v6, %v13749_v35  ;;  %v14454_v44 = vrot.slane %v1501_v0, %v13749_v35  ;;  %12373 = vmatmul.mubr.msk.f32.vlgmr.msra.gmra.mrb[2].mxu1 %vm4340_vm1, %v14261_v29  ;;  %v18158_v0 = vld [vmem:[#allocation2_spill] sm:$0xff] }
 0x1e3   : > { %v1516_v61 = vcombine.low %v1460_v43, %v1476_v8  ;;  %v1517_v19 = vcombine.high %v1460_v43, %v1476_v8  ;;  %v2180_v20 = vcombine.low %v18152_v37, %v14097_v31  ;;  %v14459_v3 = vrot.slane %v2348_v60, %v13749_v35  ;;  %12834 = vmatpush3.bf16.xpose.msk.msra.mxu1 %vm14229_vm2, %v12829_v22 }
 0x1e4   : > { %18151 = vst [vmem:[#allocation45_spill] sm:$0xff] %v14454_v44  ;;  %v12835_v42 = vpack.c.bf16 %v2367_v47, %v2231_v62  ;;  %v1532_v2 = vcombine.low %v1467_v46, %v1483_v14  ;;  %12379 = vmatprep.mubr.msk.f32.mxu1 %vm4340_vm1, %v18153_v27  ;;  %v14467_v13 = vmul.f32 0.17677669, %v1414_v33  ;;  %v1417_v15 = vcombine.high %v14355_v36, %v14382_v32  ;;  %v18157_v32 = vld [vmem:[#allocation11_spill] sm:$0xff] }
 0x1e5   : > { %v1418_v31 = vcombine.low %v14358_v26, %v14404_v59  ;;  %v1533_v24 = vcombine.high %v1467_v46, %v1483_v14  ;;  %v1572_v29 = vcombine.low %v18156_v38, %v18155_v4  ;;  %v14476_v40 = vrot.slane %v2212_v1, %v13749_v35  ;;  %v14483_v18 = vpop.permute.xlu1 %650  ;;  %v14485_v6 = vpop.permute.xlu0 %614 }
 0x1e6   : > { %18154 = vst [vmem:[#allocation25_spill] sm:$0xff] %v14467_v13  ;;  %v14479_v22 = vrot.slane %v2316_v41, %v13749_v35  ;;  %12837 = vmatprep.subr.msk.bf16.mxu1 %vm14229_vm2, %v12835_v42  ;;  %v14488_v36 = vrot.slane %v1516_v61, %v13749_v35  ;;  %v1556_v8 = vcombine.low %v18158_v0, %v18157_v32  ;;  %v14494_v60 = vmul.f32 0.17677669, %v1415_v48 }
 0x1e7   : > { %v1557_v43 = vcombine.high %v18158_v0, %v18157_v32  ;;  %v14497_v47 = vrot.slane %v1517_v19, %v13749_v35  ;;  %v1573_v33 = vcombine.high %v18156_v38, %v18155_v4  ;;  %v2188_v14 = vrot.slane %v2180_v20, %v13749_v35 }
 0x1e8   : > { %18159 = vst [vmem:[#allocation19_spill] sm:$0xff] %v14494_v60  ;;  %v2368_v46 = vcombine.low %v14479_v22, %v14459_v3  ;;  %v14504_v1 = vmul.f32 0.17677669, %v1416_v28  ;;  %v14506_v41 = vmul.f32 0.17677669, %v1417_v15  ;;  %v1419_v48 = vcombine.high %v14358_v26, %v14404_v59  ;;  %v18164_v59 = vld [vmem:[#allocation27_spill] sm:$0xff] }
 0x1e9   : > { %v14508_v62 = vmul.f32 0.17677669, %v1418_v31  ;;  %v14513_v61 = vrot.slane %v1532_v2, %v13749_v35  ;;  %v14516_v19 = vrot.slane %v1533_v24, %v13749_v35  ;;  %v1580_v37 = vrot.slane %v1572_v29, %v13727_v10  ;;  %v14520_v27 = vpop.permute.xlu1 %722  ;;  %v14522_v28 = vpop.permute.xlu0 %686  ;;  %v18165_v2 = vld [vmem:[#allocation16_spill] sm:$0xff] }
 0x1ea   : > { %18160 = vst [vmem:[#allocation14_spill] sm:$0xff] %v14504_v1  ;;  %18161 = vst [vmem:[#allocation12_spill] sm:$0xff] %v14506_v41  ;;  %v2232_v20 = vcombine.low %v2188_v14, %v14476_v40  ;;  %v1548_v15 = vcombine.low %v14435_v50, %v14488_v36  ;;  %v1564_v31 = vrot.slane %v1556_v8, %v13727_v10  ;;  %12380 = vmatmul.mubr.msk.f32.vlgmr.msra.gmra.mrb[4].mxu1 %vm4340_vm1, %v14278_v7  ;;  %v18166_v8 = vld [vmem:[#allocation24_spill] sm:$0xff] }
 0x1eb   : > { %18162 = vst [vmem:[#allocation11_spill] sm:$0xff] %v14508_v62  ;;  %18163 = vst [vmem:[#allocation2_spill] sm:$0xff] %v14516_v19  ;;  %v1571_v26 = vrot.slane %v1557_v43, %v13727_v10  ;;  %v1604_v4 = vcombine.low %v18165_v2, %v18164_v59  ;;  %v1549_v24 = vcombine.high %v14435_v50, %v14488_v36  ;;  %v18167_v43 = vld [vmem:[#allocation13_spill] sm:$0xff]  ;;  %12840 = vmatpush3.bf16.xpose.msk.msra.mxu1 %vm14229_vm2, %v12835_v42  ;;  %v18168_v50 = vld [vmem:[#allocation20_spill] sm:$0xff] }
 0x1ec   : > { %v1587_v29 = vrot.slane %v1573_v33, %v13727_v10  ;;  %v12841_v32 = vpack.c.bf16 %v2368_v46, %v2232_v20  ;;  %v1588_v5 = vcombine.low %v18167_v43, %v18166_v8  ;;  %v1605_v21 = vcombine.high %v18165_v2, %v18164_v59  ;;  %12386 = vmatprep.mubr.msk.f32.mxu1 %vm4340_vm1, %v18168_v50  ;;  %v18170_v42 = vld [vmem:[#allocation28_spill] sm:$0xff] }
 0x1ed   : > { %v14547_v36 = vmul.f32 0.17677669, %v1419_v48  ;;  %v1620_v20 = vcombine.low %v1564_v31, %v1580_v37  ;;  %v14557_v59 = vpop.permute.xlu1 %806  ;;  %v1621_v48 = vcombine.high %v1564_v31, %v1580_v37  ;;  %v1589_v2 = vcombine.high %v18167_v43, %v18166_v8  ;;  %v14564_v7 = vpop.permute.xlu0 %770  ;;  %v18171_v37 = vld [vmem:[#allocation26_spill] sm:$0xff]  ;;  %v18173_v8 = vld [vmem:[#allocation3_spill] sm:$0xff]  ;;  %v18185_v41 = vld [vmem:[#allocation32_spill] sm:$0xff] }
 0x1ee   : > { %12843 = vmatprep.subr.msk.bf16.mxu1 %vm14229_vm2, %v12841_v32  ;;  %v1612_v50 = vrot.slane %v1604_v4, %v13727_v10  ;;  %v1636_v33 = vcombine.low %v1571_v26, %v1587_v29  ;;  %v1637_v0 = vcombine.high %v1571_v26, %v1587_v29  ;;  %v2369_v46 = vcombine.high %v14479_v22, %v14459_v3 }
 0x1ef   : > { %18169 = vst [vmem:[#allocation27_spill] sm:$0xff] %v14547_v36  ;;  %v14568_v38 = vmul.f32 0.17677669, %v1548_v15  ;;  %v1596_v56 = vrot.slane %v1588_v5, %v13727_v10  ;;  %v1619_v9 = vrot.slane %v1605_v21, %v13727_v10  ;;  %v1708_v31 = vcombine.low %v18171_v37, %v18170_v42  ;;  %v18172_v36 = vld [vmem:[#allocation29_spill] sm:$0xff] }
 0x1f0   : > { %v1692_v43 = vcombine.low %v18173_v8, %v18172_v36  ;;  %v14577_v4 = vrot.slane %v1620_v20, %v13749_v35  ;;  %v1709_v26 = vcombine.high %v18171_v37, %v18170_v42  ;;  %v1693_v3 = vcombine.high %v18173_v8, %v18172_v36  ;;  %v18181_v37 = vld [vmem:[#allocation34_spill] sm:$0xff] }
 0x1f1   : > { %v2233_v22 = vcombine.high %v2188_v14, %v14476_v40  ;;  %v14584_v5 = vpop.permute.xlu1 %878  ;;  %v14587_v21 = vrot.slane %v1621_v48, %v13749_v35  ;;  %v1603_v15 = vrot.slane %v1589_v2, %v13727_v10  ;;  %v1652_v29 = vcombine.low %v1596_v56, %v1612_v50  ;;  %v14590_v62 = vpop.permute.xlu0 %842  ;;  %v18177_v14 = vld [vmem:[#allocation31_spill] sm:$0xff] }
 0x1f2   : > { %v1653_v45 = vcombine.high %v1596_v56, %v1612_v50  ;;  %v14593_v20 = vrot.slane %v1636_v33, %v13749_v35  ;;  %v14596_v42 = vrot.slane %v1637_v0, %v13749_v35  ;;  %12387 = vmatmul.mubr.msk.f32.vlgmr.msra.gmra.mrb[6].mxu1 %vm4340_vm1, %v14307_v53  ;;  %v2235_v36 = vcombine.high %v18177_v14, %v14177_v63  ;;  %v18178_v33 = vld [vmem:[#allocation21_spill] sm:$0xff] }
 0x1f3   : > { %18174 = vst [vmem:[#allocation16_spill] sm:$0xff] %v14587_v21  ;;  %v12847_v40 = vpack.c.bf16 %v2369_v46, %v2233_v22  ;;  %v1668_v48 = vcombine.low %v1603_v15, %v1619_v9  ;;  %v1716_v2 = vrot.slane %v1708_v31, %v13727_v10  ;;  %v1700_v56 = vrot.slane %v1692_v43, %v13727_v10  ;;  %v18180_v46 = vld [vmem:[#allocation33_spill] sm:$0xff] }
 0x1f4   : > { %18175 = vst [vmem:[#allocation24_spill] sm:$0xff] %v14593_v20  ;;  %18176 = vst [vmem:[#allocation13_spill] sm:$0xff] %v14596_v42  ;;  %12846 = vmatpush3.bf16.xpose.msk.msra.mxu1 %vm14229_vm2, %v12841_v32  ;;  %12393 = vmatprep.mubr.msk.f32.mxu1 %vm4340_vm1, %v18178_v33  ;;  %v14608_v0 = vmul.f32 0.17677669, %v1549_v24  ;;  %v1723_v50 = vrot.slane %v1709_v26, %v13727_v10  ;;  %v1707_v53 = vrot.slane %v1693_v3, %v13727_v10  ;;  %v18183_v33 = vld [vmem:[#allocation6_spill] sm:$0xff] }
 0x1f5   : > { %v1740_v63 = vcombine.low %v18180_v46, %v14251_v11  ;;  %v1724_v31 = vcombine.low %v18181_v37, %v14253_v58  ;;  %12849 = vmatprep.subr.msk.bf16.mxu1 %vm14229_vm2, %v12847_v40  ;;  %v14618_v8 = vpop.permute.xlu1 %950  ;;  %v14621_v32 = vrot.slane %v1652_v29, %v13749_v35  ;;  %v14624_v24 = vrot.slane %v1653_v45, %v13749_v35  ;;  %v14628_v3 = vpop.permute.xlu0 %914  ;;  %v18184_v29 = vld [vmem:[#allocation30_spill] sm:$0xff] }
 0x1f6   : > { %18179 = vst [vmem:[#allocation20_spill] sm:$0xff] %v14608_v0  ;;  %v1669_v43 = vcombine.high %v1603_v15, %v1619_v9  ;;  %v1741_v26 = vcombine.high %v18180_v46, %v14251_v11  ;;  %v1725_v22 = vcombine.high %v18181_v37, %v14253_v58  ;;  %v2388_v14 = vcombine.low %v14409_v39, %v14443_v57 }
 0x1f7   : > { %18182 = vst [vmem:[#allocation28_spill] sm:$0xff] %v14624_v24  ;;  %v2372_v42 = vcombine.low %v18183_v33, %v14445_v23  ;;  %v2371_v1 = vcombine.high %v18185_v41, %v18184_v29  ;;  %v14639_v45 = vrot.slane %v1668_v48, %v13749_v35  ;;  %v1756_v9 = vcombine.low %v1700_v56, %v1716_v2 }
 0x1f8   : > { %v2420_v11 = vcombine.low %v14483_v18, %v14520_v27  ;;  %v2404_v15 = vcombine.low %v14485_v6, %v14522_v28  ;;  %v1757_v58 = vcombine.high %v1700_v56, %v1716_v2  ;;  %v1772_v46 = vcombine.low %v1707_v53, %v1723_v50 }
 0x1f9   : > { %18186 = vst [vmem:[#allocation26_spill] sm:$0xff] %v14639_v45  ;;  %v14646_v37 = vrot.slane %v1740_v63, %v13727_v10  ;;  %v14649_v51 = vrot.slane %v1724_v31, %v13727_v10  ;;  %v14651_v20 = vpop.permute.xlu1 %682  ;;  %v14654_v41 = vrot.slane %v1669_v43, %v13749_v35  ;;  %v1773_v48 = vcombine.high %v1707_v53, %v1723_v50  ;;  %v14661_v2 = vpop.permute.xlu0 %718 }
 0x1fa   : > { %18187 = vst [vmem:[#allocation29_spill] sm:$0xff] %v14651_v20  ;;  %v14657_v29 = vrot.slane %v1741_v26, %v13727_v10  ;;  %v2524_v45 = vcombine.low %v14564_v7, %v14590_v62  ;;  %18189 = vst [vmem:[#allocation31_spill] sm:$0xff] %v14661_v2  ;;  %v14664_v56 = vrot.slane %v1725_v22, %v13727_v10  ;;  %v18190_v26 = vld [vmem:[#allocation8_spill] sm:$0xff]  ;;  %v18191_v22 = vld [vmem:[#allocation22_spill] sm:$0xff] }
 0x1fb   : > { %18188 = vst [vmem:[#allocation3_spill] sm:$0xff] %v14654_v41  ;;  %v2396_v63 = vrot.slane %v2388_v14, %v13727_v10  ;;  %v2380_v31 = vrot.slane %v2372_v42, %v13727_v10  ;;  %12394 = vmatmul.mubr.msk.f32.vlgmr.msra.gmra.mrb[8].mxu1 %vm4340_vm1, %v14337_v52  ;;  %v12859_v43 = vpack.c.bf16 %v2371_v1, %v2235_v36  ;;  %v18196_v20 = vld [vmem:[#allocation4_spill] sm:$0xff] }
 0x1fc   : > { %v2428_v50 = vrot.slane %v2420_v11, %v13727_v10  ;;  %v2412_v53 = vrot.slane %v2404_v15, %v13727_v10  ;;  %v2508_v41 = vcombine.low %v18190_v26, %v14557_v59  ;;  %12852 = vmatpush3.bf16.xpose.msk.msra.mxu1 %vm14229_vm2, %v12847_v40  ;;  %12400 = vmatprep.mubr.msk.f32.mxu1 %vm4340_vm1, %v18191_v22 }
 0x1fd   : > { %v18192_v42 = vcombine.low %v14448_v25, %v14497_v47  ;;  %v14684_v52 = vrot.slane %v1756_v9, %v13749_v35  ;;  %v14687_v1 = vrot.slane %v1757_v58, %v13749_v35  ;;  %v14690_v36 = vrot.slane %v1772_v46, %v13749_v35  ;;  %12861 = vmatprep.subr.msk.bf16.mxu1 %vm14229_vm2, %v12859_v43  ;;  %v14696_v11 = vpop.permute.xlu1 %544  ;;  %v987_v22 = vpop.permute.xlu0 %986 }
 0x1fe   : > { %v1788_v40 = vcombine.low %v14649_v51, %v14646_v37  ;;  %v14699_v15 = vrot.slane %v1773_v48, %v13749_v35  ;;  %v2532_v58 = vrot.slane %v2524_v45, %v13727_v10  ;;  %v2540_v46 = vcombine.low %v14584_v5, %v14618_v8 }
 0x1ff   : > { %v14681_v14 = vmul.f32 0.17677669, %v18192_v42  ;;  %18194 = vst [vmem:[#allocation33_spill] sm:$0xff] %v14690_v36  ;;  %v2436_v21 = vcombine.low %v2380_v31, %v2396_v63  ;;  %v2468_v9 = vcombine.low %v2412_v53, %v2428_v50  ;;  %v2516_v45 = vrot.slane %v2508_v41, %v13727_v10 }
 0x200   : > { %18195 = vst [vmem:[#allocation34_spill] sm:$0xff] %v14699_v15  ;;  %v2556_v24 = vcombine.low %v14628_v3, %v987_v22  ;;  %v14717_v60 = vrot.slane %v1788_v40, %v13749_v35  ;;  %v2389_v42 = vcombine.high %v14409_v39, %v14443_v57  ;;  %v2437_v13 = vcombine.high %v2380_v31, %v2396_v63 }
 0x201   : > { %18193 = vst [vmem:[#allocation21_spill] sm:$0xff] %v14681_v14  ;;  %v2421_v2 = vcombine.high %v14483_v18, %v14520_v27  ;;  %v14723_v14 = vpop.permute.xlu1 %616  ;;  %v2405_v48 = vcombine.high %v14485_v6, %v14522_v28  ;;  %v2572_v19 = vcombine.low %v2516_v45, %v2532_v58  ;;  %v2548_v41 = vrot.slane %v2540_v46, %v13727_v10  ;;  %v14729_v0 = vpop.permute.xlu0 %508 }
 0x202   : > { %v2564_v44 = vrot.slane %v2556_v24, %v13727_v10  ;;  %v2373_v40 = vcombine.high %v18183_v33, %v14445_v23  ;;  %v2469_v39 = vcombine.high %v2412_v53, %v2428_v50  ;;  %v2573_v57 = vcombine.high %v2516_v45, %v2532_v58  ;;  %v18197_v33 = vld [vmem:[#allocation23_spill] sm:$0xff] }
 0x203   : > { %v2557_v63 = vcombine.high %v14628_v3, %v987_v22  ;;  %12401 = vmatmul.mubr.msk.f32.vlgmr.msra.gmra.mrb[10].mxu1 %vm4340_vm1, %v14399_v30  ;;  %v2444_v18 = vrot.slane %v2436_v21, %v13749_v35  ;;  %v2476_v6 = vrot.slane %v2468_v9, %v13749_v35  ;;  %v2451_v24 = vrot.slane %v2437_v13, %v13749_v35 }
 0x204   : > { %v2604_v27 = vcombine.low %v2548_v41, %v2564_v44  ;;  %v2605_v28 = vcombine.high %v2548_v41, %v2564_v44  ;;  %12864 = vmatpush3.bf16.xpose.msk.msra.mxu1 %vm14229_vm2, %v12859_v43  ;;  %v14742_v23 = vrot.slane %v2421_v2, %v13727_v10  ;;  %v2525_v3 = vcombine.high %v14564_v7, %v14590_v62 }
 0x205   : > { %v2541_v30 = vcombine.high %v14584_v5, %v14618_v8  ;;  %12414 = vmatprep.mubr.msk.f32.mxu1 %vm4340_vm1, %v18197_v33  ;;  %v14750_v21 = vpop.permute.xlu1 %688  ;;  %v14753_v44 = vrot.slane %v2405_v48, %v13727_v10  ;;  %v2580_v31 = vrot.slane %v2572_v19, %v13749_v35  ;;  %v14758_v43 = vpop.permute.xlu0 %580  ;;  %v2483_v62 = vrot.slane %v2469_v39, %v13749_v35 }
 0x206   : > { %v2612_v13 = vrot.slane %v2604_v27, %v13749_v35  ;;  %v2619_v2 = vrot.slane %v2605_v28, %v13749_v35  ;;  %v2509_v7 = vcombine.high %v18190_v26, %v14557_v59  ;;  %v2587_v5 = vrot.slane %v2573_v57, %v13749_v35 }
 0x207   : > { %v14765_v8 = vrot.slane %v2557_v63, %v13727_v10  ;;  %v2500_v50 = vcombine.low %v2444_v18, %v2476_v6  ;;  %v2501_v9 = vcombine.high %v2444_v18, %v2476_v6  ;;  %v14768_v58 = vrot.slane %v2525_v3, %v13727_v10 }
 0x208   : > { %v2636_v53 = vcombine.low %v2580_v31, %v2612_v13  ;;  %v2637_v19 = vcombine.high %v2580_v31, %v2612_v13  ;;  %v14771_v46 = vrot.slane %v2541_v30, %v13727_v10  ;;  %v2638_v48 = vcombine.low %v2587_v5, %v2619_v2  ;;  %v18223_v15 = vld [vmem:[#allocation21_spill] sm:$0xff] }
 0x209   : > { %v14773_v22 = vpop.permute.xlu1 %772  ;;  %v2639_v45 = vcombine.high %v2587_v5, %v2619_v2  ;;  %v14776_v59 = vrot.slane %v2389_v42, %v13727_v10  ;;  %v14779_v26 = vrot.slane %v2373_v40, %v13727_v10  ;;  %v14781_v41 = vpop.permute.xlu0 %652  ;;  %v14784_v63 = vrot.slane %v2509_v7, %v13727_v10 }
 0x20a   : > { %v12865_v39 = vpack.c.bf16 %v2636_v53, %v2500_v50  ;;  %v12871_v57 = vpack.c.bf16 %v2637_v19, %v2501_v9  ;;  %v2620_v18 = vcombine.low %v14771_v46, %v14765_v8  ;;  %v2502_v6 = vcombine.low %v2451_v24, %v2483_v62  ;;  %v18218_v19 = vld [vmem:[#allocation19_spill] sm:$0xff] }
 0x20b   : > { %12415 = vmatmul.mubr.msk.f32.vlgmr.msra.gmra.mrb[12].mxu1 %vm4340_vm1, %v14416_v54  ;;  %v2503_v27 = vcombine.high %v2451_v24, %v2483_v62  ;;  %v18198_v42 = vcombine.high %v14649_v51, %v14646_v37  ;;  %v18199_v28 = vcombine.low %v14664_v56, %v14657_v29  ;;  %v18201_v30 = vcombine.high %v14664_v56, %v14657_v29 }
 0x20c   : > { %12428 = vmatprep.mubr.msk.f32.mxu1 %vm4340_vm1, %v14430_v55  ;;  %12867 = vmatprep.subr.msk.bf16.mxu0 %vm14229_vm2, %v12865_v39  ;;  %v18203_v51 = vcombine.high %v14448_v25, %v14497_v47  ;;  %v2484_v37 = vcombine.low %v14753_v44, %v14742_v23  ;;  %v2588_v24 = vcombine.low %v14784_v63, %v14768_v58 }
 0x20d   : > { %v14794_v40 = vrot.slane %v18198_v42, %v13749_v35  ;;  %v14800_v3 = vrot.slane %v18199_v28, %v13749_v35  ;;  %v14806_v33 = vrot.slane %v18201_v30, %v13749_v35  ;;  %12873 = vmatprep.subr.msk.bf16.mxu1 %vm14229_vm2, %v12871_v57  ;;  %v12877_v29 = vpack.c.bf16 %v2638_v48, %v2502_v6  ;;  %v14823_v55 = vpop.permute.xlu1 %844  ;;  %v14841_v2 = vpop.permute.xlu0 %724 }
 0x20e   : > { %v14815_v54 = vmul.f32 0.17677669, %v18203_v51  ;;  %v12883_v56 = vpack.c.bf16 %v2639_v45, %v2503_v27  ;;  %v18204_v31 = vcombine.low %v18196_v20, %v14321_v16  ;;  %v18205_v47 = vcombine.high %v18196_v20, %v14321_v16  ;;  %12870 = vmatpush3.bf16.xpose.msk.msra.mxu0 %vm14229_vm2, %v12865_v39  ;;  %12876 = vmatpush3.bf16.xpose.msk.msra.mxu1 %vm14229_vm2, %v12871_v57 }
 0x20f   : > { %18200 = vst [vmem:[#allocation6_spill] sm:$0xff] %v14800_v3  ;;  %18202 = vst [vmem:[#allocation30_spill] sm:$0xff] %v14806_v33  ;;  %v18206_v62 = vcombine.low %v14451_v12, %v14513_v61  ;;  %v1684_v5 = vcombine.low %v14577_v4, %v14621_v32  ;;  %v2452_v20 = vcombine.low %v14779_v26, %v14776_v59  ;;  %12879 = vmatprep.subr.msk.bf16.mxu0 %vm14229_vm2, %v12877_v29  ;;  %v18227_v33 = vld [vmem:[#allocation24_spill] sm:$0xff] }
 0x210   : > { %v14829_v25 = vrot.slane %v18204_v31, %v13727_v10  ;;  %v14835_v13 = vrot.slane %v18205_v47, %v13727_v10  ;;  %v2628_v50 = vrot.slane %v2620_v18, %v13749_v35  ;;  %12885 = vmatprep.subr.msk.bf16.mxu1 %vm14229_vm2, %v12883_v56  ;;  %v18207_v53 = vcombine.high %v14451_v12, %v14513_v61  ;;  %v18210_v12 = vld [vmem:[#allocation20_spill] sm:$0xff] }
 0x211   : > { %v14846_v7 = vmul.f32 0.17677669, %v18206_v62  ;;  %v2492_v61 = vrot.slane %v2484_v37, %v13749_v35  ;;  %v2596_v18 = vrot.slane %v2588_v24, %v13749_v35  ;;  %v14878_v6 = vpop.permute.xlu1 %916  ;;  %v1844_v42 = vcombine.low %v14323_v17, %v14369_v49  ;;  %v14888_v51 = vpop.permute.xlu0 %808 }
 0x212   : > { %v14862_v9 = vmul.f32 0.17677669, %v18207_v53  ;;  %v2621_v28 = vcombine.high %v14771_v46, %v14765_v8  ;;  %v2692_v30 = vcombine.low %v14781_v41, %v14841_v2  ;;  %v1845_v37 = vcombine.high %v14323_v17, %v14369_v49  ;;  %v18208_v17 = vld [vmem:[#allocation10_spill] sm:$0xff] }
 0x213   : > { %v2460_v24 = vrot.slane %v2452_v20, %v13749_v35  ;;  %v2640_v31 = vcombine.low %v2596_v18, %v2628_v50  ;;  %v2641_v47 = vcombine.high %v2596_v18, %v2628_v50  ;;  %v2453_v62 = vcombine.high %v14779_v26, %v14776_v59 }
 0x214   : > { %v2485_v53 = vcombine.high %v14753_v44, %v14742_v23  ;;  %v2676_v8 = vcombine.low %v14723_v14, %v14750_v21  ;;  %v2660_v46 = vcombine.low %v14729_v0, %v14758_v43  ;;  %v2589_v27 = vcombine.high %v14784_v63, %v14768_v58  ;;  %v18209_v23 = vld [vmem:[#allocation9_spill] sm:$0xff]  ;;  %v18212_v63 = vld [vmem:[#allocation2_spill] sm:$0xff] }
 0x215   : > { %v2780_v49 = vcombine.low %v18208_v17, %v14888_v51  ;;  %12422 = vmatmul.mubr.msk.f32.vlgmr.msra.gmra.mrb[26].mxu0 %vm4340_vm1, %v14568_v38  ;;  %v2504_v20 = vcombine.low %v2460_v24, %v2492_v61  ;;  %v2505_v59 = vcombine.high %v2460_v24, %v2492_v61  ;;  %v14907_v26 = vpop.permute.xlu1 %988  ;;  %v2644_v44 = vcombine.low %v18209_v23, %v14696_v11  ;;  %v14919_v58 = vpop.permute.xlu0 %880  ;;  %v18211_v38 = vld [vmem:[#allocation45_spill] sm:$0xff] }
 0x216   : > { %v2635_v50 = vrot.slane %v2621_v28, %v13749_v35  ;;  %v14913_v18 = vrot.slane %v2692_v30, %v13727_v10  ;;  %12429 = vmatmul.mubr.msk.f32.vlgmr.msra.gmra.mrb[14].mxu1 %vm4340_vm1, %v18210_v12  ;;  %12882 = vmatpush3.bf16.xpose.msk.msra.mxu0 %vm14229_vm2, %v12877_v29  ;;  %v18213_v61 = vcombine.low %v18211_v38, %v18212_v63  ;;  %v18215_v28 = vld [vmem:[#allocation25_spill] sm:$0xff] }
 0x217   : > { %v2796_v57 = vcombine.low %v14773_v22, %v14823_v55  ;;  %12435 = vmatprep.mubr.msk.f32.mxu0 %vm4340_vm1, %v18215_v28  ;;  %12888 = vmatpush3.bf16.xpose.msk.msra.mxu1 %vm14229_vm2, %v12883_v56  ;;  %v12889_v12 = vpack.c.bf16 %v2640_v31, %v2504_v20  ;;  %v12895_v30 = vpack.c.bf16 %v2641_v47, %v2505_v59  ;;  %v18221_v59 = vld [vmem:[#allocation28_spill] sm:$0xff] }
 0x218   : > { %v14924_v24 = vmul.f32 0.17677669, %v18213_v61  ;;  %v18216_v29 = vcombine.high %v18211_v38, %v18212_v63  ;;  %v2499_v45 = vrot.slane %v2485_v53, %v13749_v35  ;;  %v14939_v61 = vrot.slane %v2676_v8, %v13727_v10  ;;  %12442 = vmatprep.mubr.msk.f32.mxu1 %vm4340_vm1, %v18218_v19  ;;  %v18222_v38 = vld [vmem:[#allocation16_spill] sm:$0xff] }
 0x219   : > { %v14942_v48 = vrot.slane %v2660_v46, %v13727_v10  ;;  %v2603_v31 = vrot.slane %v2589_v27, %v13749_v35  ;;  %v14950_v47 = vrot.slane %v2780_v49, %v13727_v10  ;;  %12891 = vmatprep.subr.msk.bf16.mxu0 %vm14229_vm2, %v12889_v12  ;;  %12897 = vmatprep.subr.msk.bf16.mxu1 %vm14229_vm2, %v12895_v30  ;;  %v14958_v8 = vpop.permute.xlu1 %766  ;;  %v14960_v19 = vmul.f32 0.17677669, %v1684_v5  ;;  %v953_v20 = vpop.permute.xlu0 %952 }
 0x21a   : > { %18214 = vst [vmem:[#allocation32_spill] sm:$0xff] %v14924_v24  ;;  %v14935_v39 = vmul.f32 0.17677669, %v18216_v29  ;;  %v2828_v53 = vcombine.low %v14878_v6, %v14907_v26  ;;  %18219 = vst [vmem:[#allocation22_spill] sm:$0xff] %v14958_v8  ;;  %v14963_v46 = vrot.slane %v1844_v42, %v13727_v10  ;;  %v14966_v27 = vrot.slane %v2644_v44, %v13727_v10  ;;  %v18230_v24 = vld [vmem:[#allocation14_spill] sm:$0xff] }
 0x21b   : > { %18220 = vst [vmem:[#allocation4_spill] sm:$0xff] %v14960_v19  ;;  %v2740_v49 = vcombine.low %v14939_v61, %v14913_v18  ;;  %v2467_v28 = vrot.slane %v2453_v62, %v13749_v35  ;;  %v14974_v29 = vrot.slane %v2796_v57, %v13727_v10  ;;  %v2812_v5 = vcombine.low %v14919_v58, %v953_v20 }
 0x21c   : > { %18217 = vst [vmem:[#allocation8_spill] sm:$0xff] %v14935_v39  ;;  %v2642_v56 = vcombine.low %v2603_v31, %v2635_v50  ;;  %v14978_v42 = vrot.slane %v1845_v37, %v13727_v10  ;;  %v2708_v44 = vcombine.low %v14966_v27, %v14942_v48  ;;  %v2643_v16 = vcombine.high %v2603_v31, %v2635_v50  ;;  %v18229_v39 = vld [vmem:[#allocation43_spill] sm:$0xff] }
 0x21d   : > { %v2844_v63 = vcombine.low %v14950_v47, %v14974_v29  ;;  %v2836_v62 = vrot.slane %v2828_v53, %v13727_v10  ;;  %v2820_v57 = vrot.slane %v2812_v5, %v13727_v10  ;;  %12436 = vmatmul.mubr.msk.f32.vlgmr.msra.gmra.mrb[28].mxu0 %vm4340_vm1, %v18223_v15  ;;  %v2506_v8 = vcombine.low %v2467_v28, %v2499_v45  ;;  %v14990_v37 = vpop.permute.xlu1 %546  ;;  %v14997_v31 = vpop.permute.xlu0 %802  ;;  %v18226_v15 = vld [vmem:[#allocation26_spill] sm:$0xff] }
 0x21e   : > { %18224 = vst [vmem:[#allocation23_spill] sm:$0xff] %v14990_v37  ;;  %v2748_v3 = vrot.slane %v2740_v49, %v13749_v35  ;;  %12443 = vmatmul.mubr.msk.f32.vlgmr.msra.gmra.mrb[16].mxu1 %vm4340_vm1, %v14815_v54  ;;  %12894 = vmatpush3.bf16.xpose.msk.msra.mxu0 %vm14229_vm2, %v12889_v12  ;;  %v2507_v50 = vcombine.high %v2467_v28, %v2499_v45  ;;  %v18228_v37 = vld [vmem:[#allocation29_spill] sm:$0xff] }
 0x21f   : > { %v18225_v53 = vcombine.low %v14684_v52, %v14717_v60  ;;  %v2876_v19 = vcombine.low %v2820_v57, %v2836_v62  ;;  %12449 = vmatprep.mubr.msk.f32.mxu0 %vm4340_vm1, %v18230_v24  ;;  %v12901_v45 = vpack.c.bf16 %v2642_v56, %v2506_v8  ;;  %v2716_v12 = vrot.slane %v2708_v44, %v13749_v35 }
 0x220   : > { %v2693_v28 = vcombine.high %v14781_v41, %v14841_v2  ;;  %12900 = vmatpush3.bf16.xpose.msk.msra.mxu1 %vm14229_vm2, %v12895_v30  ;;  %v12907_v36 = vpack.c.bf16 %v2643_v16, %v2507_v50  ;;  %v18232_v49 = vcombine.high %v14684_v52, %v14717_v60  ;;  %v2852_v24 = vrot.slane %v2844_v63, %v13749_v35 }
 0x221   : > { %v15002_v5 = vmul.f32 0.17677669, %v18225_v53  ;;  %v18231_v53 = vld [vmem:[#allocation12_spill] sm:$0xff]  ;;  %v2813_v56 = vcombine.high %v14919_v58, %v953_v20  ;;  %v2877_v8 = vcombine.high %v2820_v57, %v2836_v62  ;;  %v2884_v44 = vrot.slane %v2876_v19, %v13749_v35  ;;  %12903 = vmatprep.subr.msk.bf16.mxu0 %vm14229_vm2, %v12901_v45  ;;  %v15029_v41 = vpop.permute.xlu1 %618  ;;  %v15039_v16 = vpop.permute.xlu0 %510 }
 0x222   : > { %12456 = vmatprep.mubr.msk.f32.mxu1 %vm4340_vm1, %v18231_v53  ;;  %v15022_v54 = vmul.f32 0.17677669, %v18232_v49  ;;  %v2741_v2 = vcombine.high %v14939_v61, %v14913_v18  ;;  %v2781_v60 = vcombine.high %v18208_v17, %v14888_v51  ;;  %v2829_v52 = vcombine.high %v14878_v6, %v14907_v26  ;;  %12909 = vmatprep.subr.msk.bf16.mxu1 %vm14229_vm2, %v12907_v36 }
 0x223   : > { %v2772_v58 = vcombine.low %v2716_v12, %v2748_v3  ;;  %v2845_v30 = vcombine.high %v14950_v47, %v14974_v29  ;;  %v2908_v19 = vcombine.low %v2852_v24, %v2884_v44  ;;  %v2773_v20 = vcombine.high %v2716_v12, %v2748_v3 }
 0x224   : > { %v2909_v63 = vcombine.high %v2852_v24, %v2884_v44  ;;  %v2677_v18 = vcombine.high %v14723_v14, %v14750_v21  ;;  %v2661_v51 = vcombine.high %v14729_v0, %v14758_v43  ;;  %v2709_v6 = vcombine.high %v14966_v27, %v14942_v48 }
 0x225   : > { %v2797_v17 = vcombine.high %v14773_v22, %v14823_v55  ;;  %v15052_v26 = vrot.slane %v2813_v56, %v13727_v10  ;;  %v2891_v61 = vrot.slane %v2877_v8, %v13749_v35  ;;  %12450 = vmatmul.mubr.msk.f32.vlgmr.msra.gmra.mrb[30].mxu0 %vm4340_vm1, %v14846_v7  ;;  %v15057_v3 = vpop.permute.xlu1 %690  ;;  %v12913_v14 = vpack.c.bf16 %v2908_v19, %v2772_v58  ;;  %v18233_v55 = vld [vmem:[#allocation11_spill] sm:$0xff]  ;;  %v15069_v48 = vpop.permute.xlu0 %582 }
 0x226   : > { %v12919_v21 = vpack.c.bf16 %v2909_v63, %v2773_v20  ;;  %v2645_v0 = vcombine.high %v18209_v23, %v14696_v11  ;;  %v15062_v43 = vrot.slane %v2693_v28, %v13727_v10  ;;  %v2755_v22 = vrot.slane %v2741_v2, %v13749_v35  ;;  %12906 = vmatpush3.bf16.xpose.msk.msra.mxu0 %vm14229_vm2, %v12901_v45 }
 0x227   : > { %12463 = vmatprep.mubr.msk.f32.mxu0 %vm4340_vm1, %v18233_v55  ;;  %v18234_v7 = vcombine.high %v14577_v4, %v14621_v32  ;;  %v15075_v27 = vrot.slane %v2781_v60, %v13727_v10  ;;  %v2859_v11 = vrot.slane %v2845_v30, %v13749_v35  ;;  %v15079_v23 = vrot.slane %v2829_v52, %v13727_v10  ;;  %v18236_v4 = vld [vmem:[#allocation31_spill] sm:$0xff]  ;;  %v18237_v32 = vld [vmem:[#allocation44_spill] sm:$0xff] }
 0x228   : > { %12457 = vmatmul.mubr.msk.f32.vlgmr.msra.gmra.mrb[18].mxu1 %vm4340_vm1, %v14862_v9  ;;  %12915 = vmatprep.subr.msk.bf16.mxu0 %vm14229_vm2, %v12913_v14  ;;  %v18235_v29 = vcombine.low %v14687_v1, %v14794_v40  ;;  %v1876_v57 = vcombine.low %v18237_v32, %v18236_v4  ;;  %v15093_v50 = vrot.slane %v2677_v18, %v13727_v10  ;;  %v18238_v9 = vld [vmem:[#allocation27_spill] sm:$0xff] }
 0x229   : > { %v4310_v47 = vmul.f32 0.17677669, %v18234_v7  ;;  %v15096_v49 = vrot.slane %v2661_v51, %v13727_v10  ;;  %12912 = vmatpush3.bf16.xpose.msk.msra.mxu1 %vm14229_vm2, %v12907_v36  ;;  %12470 = vmatprep.mubr.msk.f32.mxu1 %vm4340_vm1, %v18238_v9  ;;  %v18239_v45 = vcombine.low %v18222_v38, %v18221_v59  ;;  %v2723_v28 = vrot.slane %v2709_v6, %v13749_v35  ;;  %v15115_v36 = vpop.permute.xlu1 %774  ;;  %v15124_v52 = vpop.permute.xlu0 %654  ;;  %v18241_v7 = vld [vmem:[#allocation32_spill] sm:$0xff] }
 0x22a   : > { %v15088_v62 = vmul.f32 0.17677669, %v18235_v29  ;;  %v15109_v53 = vrot.slane %v2797_v17, %v13727_v10  ;;  %v2892_v24 = vcombine.low %v15052_v26, %v15079_v23  ;;  %12921 = vmatprep.subr.msk.bf16.mxu1 %vm14229_vm2, %v12919_v21  ;;  %v2910_v56 = vcombine.low %v2859_v11, %v2891_v61 }
 0x22b   : > { %v15105_v12 = vmul.f32 0.17677669, %v18239_v45  ;;  %v1893_v8 = vcombine.high %v14829_v25, %v14963_v46  ;;  %v1861_v44 = vcombine.high %v18229_v39, %v18228_v37  ;;  %v1877_v2 = vcombine.high %v18237_v32, %v18236_v4 }
 0x22c   : > { %v2659_v60 = vrot.slane %v2645_v0, %v13727_v10  ;;  %v2756_v58 = vcombine.low %v15093_v50, %v15062_v43  ;;  %v2860_v30 = vcombine.low %v15075_v27, %v15109_v53  ;;  %v2774_v19 = vcombine.low %v2723_v28, %v2755_v22 }
 0x22d   : > { %v2911_v20 = vcombine.high %v2859_v11, %v2891_v61  ;;  %v1908_v63 = vcombine.low %v14835_v13, %v14978_v42  ;;  %v18240_v18 = vcombine.low %v18229_v39, %v18228_v37  ;;  %v1884_v6 = vrot.slane %v1876_v57, %v13727_v10  ;;  %12464 = vmatmul.mubr.msk.f32.vlgmr.msra.gmra.mrb[32].mxu0 %vm4340_vm1, %v18241_v7  ;;  %v15143_v29 = vpop.permute.xlu1 %846  ;;  %v18243_v57 = vld [vmem:[#allocation4_spill] sm:$0xff] }
 0x22e   : > { %v1689_v17 = vcombine.high %v18227_v33, %v18226_v15  ;;  %v2724_v0 = vcombine.low %v2659_v60, %v15096_v49  ;;  %v2900_v55 = vrot.slane %v2892_v24, %v13749_v35  ;;  %v12925_v61 = vpack.c.bf16 %v2910_v56, %v2774_v19  ;;  %12918 = vmatpush3.bf16.xpose.msk.msra.mxu0 %vm14229_vm2, %v12913_v14 }
 0x22f   : > { %v1868_v51 = vrot.slane %v18240_v18, %v13727_v10  ;;  %v2775_v11 = vcombine.high %v2723_v28, %v2755_v22  ;;  %v18242_v39 = vcombine.low %v14829_v25, %v14963_v46  ;;  %v15152_v4 = vrot.slane %v1861_v44, %v13727_v10  ;;  %12477 = vmatprep.mubr.msk.f32.mxu0 %vm4340_vm1, %v18243_v57  ;;  %v15161_v22 = vpop.permute.xlu0 %726  ;;  %v18245_v28 = vld [vmem:[#allocation8_spill] sm:$0xff]  ;;  %v18249_v18 = vld [vmem:[#allocation13_spill] sm:$0xff] }
 0x230   : > { %v15155_v32 = vrot.slane %v1877_v2, %v13727_v10  ;;  %v18244_v9 = vcombine.high %v18222_v38, %v18221_v59  ;;  %v2764_v46 = vrot.slane %v2756_v58, %v13749_v35  ;;  %v2868_v45 = vrot.slane %v2860_v30, %v13749_v35  ;;  %12471 = vmatmul.mubr.msk.f32.vlgmr.msra.gmra.mrb[20].mxu1 %vm4340_vm1, %v18245_v28  ;;  %v18250_v28 = vld [vmem:[#allocation23_spill] sm:$0xff] }
 0x231   : > { %v15149_v37 = vrot.slane %v18242_v39, %v13749_v35  ;;  %12927 = vmatprep.subr.msk.bf16.mxu0 %vm14229_vm2, %v12925_v61  ;;  %v12931_v14 = vpack.c.bf16 %v2911_v20, %v2775_v11  ;;  %v18246_v24 = vcombine.high %v14687_v1, %v14794_v40  ;;  %v15178_v44 = vrot.slane %v1893_v8, %v13749_v35  ;;  %v15196_v8 = vpop.permute.xlu1 %918 }
 0x232   : > { %v4314_v25 = vmul.f32 0.17677669, %v18244_v9  ;;  %v1924_v59 = vcombine.low %v1868_v51, %v1884_v6  ;;  %v1925_v38 = vcombine.high %v1868_v51, %v1884_v6  ;;  %12924 = vmatpush3.bf16.xpose.msk.msra.mxu1 %vm14229_vm2, %v12919_v21  ;;  %12484 = vmatprep.mubr.msk.f32.mxu1 %vm4340_vm1, %v4310_v47  ;;  %v18247_v2 = vcombine.low %v18227_v33, %v18226_v15 }
 0x233   : > { %v15175_v56 = vmul.f32 0.17677669, %v18246_v24  ;;  %v15189_v30 = vrot.slane %v1908_v63, %v13749_v35  ;;  %v2732_v1 = vrot.slane %v2724_v0, %v13749_v35  ;;  %v2757_v40 = vcombine.high %v15093_v50, %v15062_v43  ;;  %12933 = vmatprep.subr.msk.bf16.mxu1 %vm14229_vm2, %v12931_v14  ;;  %v15201_v20 = vpop.permute.xlu0 %810  ;;  %v18248_v63 = vld [vmem:[#allocation3_spill] sm:$0xff]  ;;  %v18251_v24 = vld [vmem:[#allocation17_spill] sm:$0xff] }
 0x234   : > { %v15186_v58 = vmul.f32 0.17677669, %v18247_v2  ;;  %v2912_v21 = vcombine.low %v2868_v45, %v2900_v55  ;;  %v2725_v19 = vcombine.high %v2659_v60, %v15096_v49  ;;  %v2893_v43 = vcombine.high %v15052_v26, %v15079_v23 }
 0x235   : > { %v2964_v50 = vcombine.low %v15124_v52, %v15161_v22  ;;  %v2776_v0 = vcombine.low %v2732_v1, %v2764_v46  ;;  %v2913_v7 = vcombine.high %v2868_v45, %v2900_v55  ;;  %v15212_v11 = vrot.slane %v1924_v59, %v13749_v35  ;;  %12478 = vmatmul.mubr.msk.f32.vlgmr.msra.gmra.mrb[34].mxu0 %vm4340_vm1, %v15002_v5  ;;  %v15226_v9 = vpop.permute.xlu1 %990  ;;  %v18253_v5 = vld [vmem:[#allocation33_spill] sm:$0xff] }
 0x236   : > { %v15215_v49 = vrot.slane %v1925_v38, %v13749_v35  ;;  %v2861_v60 = vcombine.high %v15075_v27, %v15109_v53  ;;  %v2932_v39 = vcombine.low %v15039_v16, %v15069_v48  ;;  %v2771_v57 = vrot.slane %v2757_v40, %v13749_v35  ;;  %v18252_v53 = vld [vmem:[#allocation18_spill] sm:$0xff]  ;;  %12930 = vmatpush3.bf16.xpose.msk.msra.mxu0 %vm14229_vm2, %v12925_v61 }
 0x237   : > { %v2948_v26 = vcombine.low %v15029_v41, %v15057_v3  ;;  %v12937_v23 = vpack.c.bf16 %v2912_v21, %v2776_v0  ;;  %v2777_v55 = vcombine.high %v2732_v1, %v2764_v46  ;;  %v2739_v45 = vrot.slane %v2725_v19, %v13749_v35  ;;  %12491 = vmatprep.mubr.msk.f32.mxu0 %vm4340_vm1, %v15105_v12  ;;  %v15237_v38 = vpop.permute.xlu0 %882  ;;  %v18254_v46 = vld [vmem:[#allocation6_spill] sm:$0xff] }
 0x238   : > { %v2916_v27 = vcombine.low %v18251_v24, %v18250_v28  ;;  %v3052_v59 = vcombine.low %v18252_v53, %v15201_v20  ;;  %v18255_v2 = vcombine.low %v18253_v5, %v18254_v46  ;;  %v2907_v40 = vrot.slane %v2893_v43, %v13749_v35 }
 0x239   : > { %v15246_v21 = vrot.slane %v2964_v50, %v13727_v10  ;;  %12485 = vmatmul.mubr.msk.f32.vlgmr.msra.gmra.mrb[22].mxu1 %vm4340_vm1, %v15022_v54  ;;  %12939 = vmatprep.subr.msk.bf16.mxu0 %vm14229_vm2, %v12937_v23  ;;  %v12943_v61 = vpack.c.bf16 %v2913_v7, %v2777_v55  ;;  %v18256_v12 = vcombine.high %v18253_v5, %v18254_v46  ;;  %v18257_v50 = vld [vmem:[#allocation15_spill] sm:$0xff] }
 0x23a   : > { %v15242_v1 = vmul.f32 0.17677669, %v18255_v2  ;;  %v2875_v0 = vrot.slane %v2861_v60, %v13749_v35  ;;  %v15259_v2 = vrot.slane %v2932_v39, %v13727_v10  ;;  %v3068_v43 = vcombine.low %v15115_v36, %v15143_v29  ;;  %12936 = vmatpush3.bf16.xpose.msk.msra.mxu1 %vm14229_vm2, %v12931_v14  ;;  %12498 = vmatprep.mubr.msk.f32.mxu1 %vm4340_vm1, %v4314_v25  ;;  %v15275_v60 = vpop.permute.xlu1 %838 }
 0x23b   : > { %v15255_v19 = vmul.f32 0.17677669, %v18256_v12  ;;  %v1964_v7 = vcombine.low %v18257_v50, %v14997_v31  ;;  %v15270_v55 = vrot.slane %v2948_v26, %v13727_v10  ;;  %12945 = vmatprep.subr.msk.bf16.mxu1 %vm14229_vm2, %v12943_v61  ;;  %v4318_v14 = vmul.f32 0.17677669, %v1689_v17  ;;  %v955_v12 = vpop.permute.xlu0 %954 }
 0x23c   : > { %v2778_v39 = vcombine.low %v2739_v45, %v2771_v57  ;;  %v15281_v5 = vrot.slane %v2916_v27, %v13727_v10  ;;  %v2949_v46 = vcombine.high %v15029_v41, %v15057_v3  ;;  %v15286_v26 = vrot.slane %v3052_v59, %v13727_v10 }
 0x23d   : > { %v3100_v25 = vcombine.low %v15196_v8, %v15226_v9  ;;  %v3012_v54 = vcombine.low %v15270_v55, %v15246_v21  ;;  %v3084_v33 = vcombine.low %v15237_v38, %v955_v12  ;;  %v2914_v15 = vcombine.low %v2875_v0, %v2907_v40  ;;  %12492 = vmatmul.mubr.msk.f32.vlgmr.msra.gmra.mrb[36].mxu0 %vm4340_vm1, %v15088_v62 }
 0x23e   : > { %v2915_v17 = vcombine.high %v2875_v0, %v2907_v40  ;;  %v2980_v41 = vcombine.low %v15281_v5, %v15259_v2  ;;  %v3076_v3 = vrot.slane %v3068_v43, %v13727_v10  ;;  %v2779_v59 = vcombine.high %v2739_v45, %v2771_v57  ;;  %v15308_v0 = vpop.permute.xlu1 %910  ;;  %12942 = vmatpush3.bf16.xpose.msk.msra.mxu0 %vm14229_vm2, %v12937_v23 }
 0x23f   : > { %v15299_v47 = vrot.slane %v1964_v7, %v13727_v10  ;;  %v2933_v6 = vcombine.high %v15039_v16, %v15069_v48  ;;  %v2965_v51 = vcombine.high %v15124_v52, %v15161_v22  ;;  %v3092_v40 = vrot.slane %v3084_v33, %v13727_v10  ;;  %12505 = vmatprep.mubr.msk.f32.mxu0 %vm4340_vm1, %v15186_v58  ;;  %v15319_v16 = vpop.permute.xlu0 %874 }
 0x240   : > { %v15311_v27 = vrot.slane %v2949_v46, %v13727_v10  ;;  %v3116_v57 = vcombine.low %v15286_v26, %v3076_v3  ;;  %v3108_v45 = vrot.slane %v3100_v25, %v13727_v10  ;;  %v18258_v48 = vcombine.low %v18249_v18, %v18248_v63  ;;  %v18259_v46 = vld [vmem:[#allocation22_spill] sm:$0xff] }
 0x241   : > { %v2981_v52 = vcombine.high %v15281_v5, %v15259_v2  ;;  %v3020_v22 = vrot.slane %v3012_v54, %v13749_v35  ;;  %12499 = vmatmul.mubr.msk.f32.vlgmr.msra.gmra.mrb[24].mxu1 %vm4340_vm1, %v15175_v56  ;;  %v12949_v43 = vpack.c.bf16 %v2914_v15, %v2778_v39  ;;  %v12955_v7 = vpack.c.bf16 %v2915_v17, %v2779_v59 }
 0x242   : > { %v4320_v62 = vmul.f32 0.17677669, %v18258_v48  ;;  %v2988_v23 = vrot.slane %v2980_v41, %v13749_v35  ;;  %v3069_v58 = vcombine.high %v15115_v36, %v15143_v29  ;;  %v1980_v25 = vcombine.low %v18259_v46, %v15275_v60  ;;  %12948 = vmatpush3.bf16.xpose.msk.msra.mxu1 %vm14229_vm2, %v12943_v61  ;;  %12512 = vmatprep.mubr.msk.f32.mxu1 %vm4340_vm1, %v4318_v14  ;;  %v15343_v5 = vpop.permute.xlu1 %982 }
 0x243   : > { %v3148_v33 = vcombine.low %v3092_v40, %v3108_v45  ;;  %v15337_v2 = vrot.slane %v2965_v51, %v13727_v10  ;;  %v3013_v56 = vcombine.high %v15270_v55, %v15246_v21  ;;  %v3085_v54 = vcombine.high %v15237_v38, %v955_v12  ;;  %12951 = vmatprep.subr.msk.bf16.mxu0 %vm14229_vm2, %v12949_v43  ;;  %v15353_v21 = vpop.permute.xlu0 %946 }
 0x244   : > { %v3149_v39 = vcombine.high %v3092_v40, %v3108_v45  ;;  %v3053_v36 = vcombine.high %v18252_v53, %v15201_v20  ;;  %v3124_v29 = vrot.slane %v3116_v57, %v13749_v35  ;;  %v3101_v61 = vcombine.high %v15196_v8, %v15226_v9  ;;  %12957 = vmatprep.subr.msk.bf16.mxu1 %vm14229_vm2, %v12955_v7 }
 0x245   : > { %v3156_v51 = vrot.slane %v3148_v33, %v13749_v35  ;;  %v3117_v38 = vcombine.high %v15286_v26, %v3076_v3  ;;  %v2012_v20 = vcombine.low %v15308_v0, %v15343_v5  ;;  %v1996_v53 = vcombine.low %v15319_v16, %v15353_v21  ;;  %12506 = vmatmul.mubr.msk.f32.vlgmr.msra.gmra.mrb[38].mxu0 %vm4340_vm1, %v15242_v1 }
 0x246   : > { %v3044_v55 = vcombine.low %v2988_v23, %v3020_v22  ;;  %v15363_v8 = vrot.slane %v1980_v25, %v13727_v10  ;;  %v3045_v14 = vcombine.high %v2988_v23, %v3020_v22  ;;  %v15366_v15 = vrot.slane %v3085_v54, %v13727_v10  ;;  %12954 = vmatpush3.bf16.xpose.msk.msra.mxu0 %vm14229_vm2, %v12949_v43  ;;  %v18261_v43 = vld [vmem:[#allocation34_spill] sm:$0xff] }
 0x247   : > { %v3180_v9 = vcombine.low %v3124_v29, %v3156_v51  ;;  %v3181_v12 = vcombine.high %v3124_v29, %v3156_v51  ;;  %v3163_v26 = vrot.slane %v3149_v39, %v13749_v35  ;;  %v15370_v17 = vrot.slane %v2012_v20, %v13727_v10  ;;  %12519 = vmatprep.mubr.msk.f32.mxu0 %vm4340_vm1, %v4320_v62  ;;  %v18262_v25 = vld [vmem:[#allocation30_spill] sm:$0xff] }
 0x248   : > { %v15373_v41 = vrot.slane %v1996_v53, %v13727_v10  ;;  %v15378_v3 = vrot.slane %v3053_v36, %v13727_v10  ;;  %v18260_v59 = vcombine.high %v18249_v18, %v18248_v63  ;;  %v3027_v48 = vrot.slane %v3013_v56, %v13749_v35 }
 0x249   : > { %v12961_v57 = vpack.c.bf16 %v3180_v9, %v3044_v55  ;;  %v12967_v45 = vpack.c.bf16 %v3181_v12, %v3045_v14  ;;  %v3131_v22 = vrot.slane %v3117_v38, %v13749_v35  ;;  %v15389_v1 = vrot.slane %v3101_v61, %v13727_v10  ;;  %12513 = vmatmul.mubr.msk.f32.vlgmr.msra.gmra.mrb[26].mxu1 %vm4340_vm1, %v15255_v19 }
 0x24a   : > { %v4322_v40 = vmul.f32 0.17677669, %v18260_v59  ;;  %v2060_v23 = vcombine.low %v15373_v41, %v15370_v17  ;;  %v15396_v62 = vrot.slane %v2933_v6, %v13727_v10  ;;  %v15399_v63 = vrot.slane %v3069_v58, %v13727_v10  ;;  %12960 = vmatpush3.bf16.xpose.msk.msra.mxu1 %vm14229_vm2, %v12955_v7 }
 0x24b   : > { %v3028_v18 = vcombine.low %v15311_v27, %v15337_v2  ;;  %v18263_v33 = vcombine.low %v18261_v43, %v18262_v25  ;;  %v2995_v19 = vrot.slane %v2981_v52, %v13749_v35  ;;  %v2028_v6 = vcombine.low %v15299_v47, %v15363_v8  ;;  %12963 = vmatprep.subr.msk.bf16.mxu0 %vm14229_vm2, %v12961_v57 }
 0x24c   : > { %12526 = vmatprep.mubr.msk.f32.mxu1 %vm4340_vm1, %v4322_v40  ;;  %v3164_v58 = vcombine.low %v15366_v15, %v15389_v1  ;;  %v3182_v54 = vcombine.low %v3131_v22, %v3163_v26  ;;  %v18264_v7 = vcombine.high %v18251_v24, %v18250_v28  ;;  %v3132_v36 = vcombine.low %v15378_v3, %v15399_v63 }
 0x24d   : > { %v4321_v56 = vmul.f32 0.17677669, %v18263_v33  ;;  %12969 = vmatprep.subr.msk.bf16.mxu1 %vm14229_vm2, %v12967_v45  ;;  %v18265_v52 = vcombine.high %v18261_v43, %v18262_v25  ;;  %v1957_v61 = vcombine.high %v15149_v37, %v15212_v11  ;;  %v18266_v51 = vcombine.low %v15152_v4, %v15155_v32 }
 0x24e   : > { %v15420_v39 = vrot.slane %v18264_v7, %v13727_v10  ;;  %v2068_v24 = vrot.slane %v2060_v23, %v13749_v35  ;;  %v3046_v38 = vcombine.low %v2995_v19, %v3027_v48  ;;  %v3183_v20 = vcombine.high %v3131_v22, %v3163_v26 }
 0x24f   : > { %v4323_v29 = vmul.f32 0.17677669, %v18265_v52  ;;  %v15435_v28 = vrot.slane %v18266_v51, %v13749_v35  ;;  %v3036_v55 = vrot.slane %v3028_v18, %v13749_v35  ;;  %v18267_v9 = vcombine.low %v15149_v37, %v15212_v11  ;;  %12520 = vmatmul.mubr.msk.f32.vlgmr.msra.gmra.mrb[40].mxu0 %vm4340_vm1, %v4321_v56 }
 0x250   : > { %v2996_v53 = vcombine.low %v15420_v39, %v15396_v62  ;;  %v1958_v12 = vcombine.low %v15178_v44, %v15215_v49  ;;  %v2036_v59 = vrot.slane %v2028_v6, %v13749_v35  ;;  %v3172_v40 = vrot.slane %v3164_v58, %v13749_v35  ;;  %12966 = vmatpush3.bf16.xpose.msk.msra.mxu0 %vm14229_vm2, %v12961_v57  ;;  %v18268_v6 = vld [vmem:[#allocation35_spill] sm:$0xff] }
 0x251   : > { %v4324_v14 = vmul.f32 0.17677669, %v18267_v9  ;;  %v12973_v23 = vpack.c.bf16 %v3182_v54, %v3046_v38  ;;  %v3047_v26 = vcombine.high %v2995_v19, %v3027_v48  ;;  %v3140_v22 = vrot.slane %v3132_v36, %v13749_v35  ;;  %12527 = vmatmul.mubr.msk.f32.vlgmr.msra.gmra.mrb[28].mxu1 %vm4340_vm1, %v4323_v29 }
 0x252   : > { %v2013_v18 = vcombine.high %v15308_v0, %v15343_v5  ;;  %v1997_v37 = vcombine.high %v15319_v16, %v15353_v21  ;;  %v4326_v11 = vmul.f32 0.17677669, %v1957_v61  ;;  %v2061_v43 = vcombine.high %v15373_v41, %v15370_v17  ;;  %12972 = vmatpush3.bf16.xpose.msk.msra.mxu1 %vm14229_vm2, %v12967_v45 }
 0x253   : > { %12533 = vmatprep.mubr.msk.f32.mxu0 %vm4340_vm1, %v4324_v14  ;;  %v2092_v25 = vcombine.low %v2036_v59, %v2068_v24  ;;  %12975 = vmatprep.subr.msk.bf16.mxu0 %vm14229_vm2, %v12973_v23  ;;  %v12979_v48 = vpack.c.bf16 %v3183_v20, %v3047_v26  ;;  %v3004_v0 = vrot.slane %v2996_v53, %v13749_v35  ;;  %v4328_v41 = vmul.f32 0.17677669, %v1958_v12 }
 0x254   : > { %v1981_v16 = vcombine.high %v18259_v46, %v15275_v60  ;;  %12540 = vmatprep.mubr.msk.f32.mxu1 %vm4340_vm1, %v4326_v11  ;;  %v1959_v5 = vcombine.high %v15178_v44, %v15215_v49  ;;  %v2029_v21 = vcombine.high %v15299_v47, %v15363_v8  ;;  %v2093_v17 = vcombine.high %v2036_v59, %v2068_v24  ;;  %v15485_v49 = vpop.permute.xlu1 %292 }
 0x255   : > { %12981 = vmatprep.subr.msk.bf16.mxu1 %vm14229_vm2, %v12979_v48  ;;  %v3184_v57 = vcombine.low %v3140_v22, %v3172_v40  ;;  %v1965_v60 = vcombine.high %v18257_v50, %v14997_v31  ;;  %v3165_v46 = vcombine.high %v15366_v15, %v15389_v1  ;;  %v15479_v45 = vrot.slane %v2013_v18, %v13727_v10 }
 0x256   : > { %v3048_v33 = vcombine.low %v3004_v0, %v3036_v55  ;;  %v15482_v44 = vrot.slane %v1997_v37, %v13727_v10  ;;  %v2075_v47 = vrot.slane %v2061_v43, %v13749_v35  ;;  %v4325_v8 = vmul.f32 0.17677669, %v2092_v25 }
 0x257   : > { %v3185_v56 = vcombine.high %v3140_v22, %v3172_v40  ;;  %v3029_v19 = vcombine.high %v15311_v27, %v15337_v2  ;;  %v3133_v31 = vcombine.high %v15378_v3, %v15399_v63  ;;  %v15492_v50 = vrot.slane %v1981_v16, %v13727_v10  ;;  %v18269_v16 = vld [vmem:[#allocation36_spill] sm:$0xff] }
 0x258   : > { %v3049_v15 = vcombine.high %v3004_v0, %v3036_v55  ;;  %v2043_v1 = vrot.slane %v2029_v21, %v13749_v35  ;;  %v15497_v58 = vadd.f32 %v18268_v6, %v15485_v49  ;;  %12534 = vmatmul.mubr.msk.f32.vlgmr.msra.gmra.mrb[42].mxu0 %vm4340_vm1, %v4325_v8  ;;  %v4327_v54 = vmul.f32 0.17677669, %v2093_v17  ;;  %v18272_v8 = vld [vmem:[#allocation38_spill] sm:$0xff]  ;;  %v308_v6 = vpop.permute.xlu0 %307 }
 0x259   : > { %v12985_v7 = vpack.c.bf16 %v3184_v57, %v3048_v33  ;;  %v15501_v36 = vrot.slane %v1965_v60, %v13727_v10  ;;  %v2997_v27 = vcombine.high %v15420_v39, %v15396_v62  ;;  %v3179_v2 = vrot.slane %v3165_v46, %v13749_v35  ;;  %12978 = vmatpush3.bf16.xpose.msk.msra.mxu0 %vm14229_vm2, %v12973_v23  ;;  %v298_v33 = vpop.permute.xlu1 %297 }
 0x25a   : > { %12547 = vmatprep.mubr.msk.f32.mxu0 %vm4340_vm1, %v4328_v41  ;;  %v4330_v3 = vmul.f32 0.17677669, %v1959_v5  ;;  %v2076_v63 = vcombine.low %v15482_v44, %v15479_v45  ;;  %v2094_v52 = vcombine.low %v2043_v1, %v2075_v47  ;;  %12541 = vmatmul.mubr.msk.f32.vlgmr.msra.gmra.mrb[30].mxu1 %vm4340_vm1, %v4327_v54  ;;  %v12991_v29 = vpack.c.bf16 %v3185_v56, %v3049_v15  ;;  %v18276_v15 = vld [vmem:[#allocation40_spill] sm:$0xff]  ;;  %v18278_v54 = vld [vmem:[#allocation41_spill] sm:$0xff] }
 0x25b   : > { %12987 = vmatprep.subr.msk.bf16.mxu0 %vm14229_vm2, %v12985_v7  ;;  %v3043_v62 = vrot.slane %v3029_v19, %v13749_v35  ;;  %12984 = vmatpush3.bf16.xpose.msk.msra.mxu1 %vm14229_vm2, %v12979_v48  ;;  %v1960_v39 = vcombine.low %v15189_v30, %v15435_v28  ;;  %v3147_v61 = vrot.slane %v3133_v31, %v13749_v35  ;;  %v18274_v31 = vld [vmem:[#allocation39_spill] sm:$0xff] }
 0x25c   : > { %12554 = vmatprep.mubr.msk.f32.mxu1 %vm4340_vm1, %v4330_v3  ;;  %v2044_v51 = vcombine.low %v15501_v36, %v15492_v50  ;;  %v2095_v24 = vcombine.high %v2043_v1, %v2075_v47  ;;  %12993 = vmatprep.subr.msk.bf16.mxu1 %vm14229_vm2, %v12991_v29  ;;  %v1941_v38 = vcombine.high %v15152_v4, %v15155_v32  ;;  %v4329_v9 = vmul.f32 0.17677669, %v2094_v52 }
 0x25d   : > { %512 = vrot.lane.b32.xlu1 %v15497_v58, %s13425_s6  ;;  %v3011_v20 = vrot.slane %v2997_v27, %v13749_v35  ;;  %548 = vrot.lane.b32.xlu0 %v15497_v58, %s13424_s5  ;;  %v1961_v53 = vcombine.high %v15189_v30, %v15435_v28  ;;  %v2084_v55 = vrot.slane %v2076_v63, %v13749_v35  ;;  %v4332_v40 = vmul.f32 0.17677669, %v1960_v39  ;;  %v303_v19 = vpop.permute.xlu1 %302 }
 0x25e   : > { %v3186_v14 = vcombine.low %v3147_v61, %v3179_v2  ;;  %v3187_v12 = vcombine.high %v3147_v61, %v3179_v2  ;;  %v1909_v59 = vcombine.high %v14835_v13, %v14978_v42  ;;  %v2052_v23 = vrot.slane %v2044_v51, %v13749_v35 }
 0x25f   : > { %v4331_v4 = vmul.f32 0.17677669, %v2095_v24  ;;  %v3050_v32 = vcombine.low %v3011_v20, %v3043_v62  ;;  %v3051_v26 = vcombine.high %v3011_v20, %v3043_v62  ;;  %v1955_v30 = vrot.slane %v1941_v38, %v13749_v35 }
 0x260   : > { %12548 = vmatmul.mubr.msk.f32.vlgmr.msra.gmra.mrb[44].mxu0 %vm4340_vm1, %v4329_v9  ;;  %v4334_v13 = vmul.f32 0.17677669, %v1961_v53  ;;  %v2096_v42 = vcombine.low %v2052_v23, %v2084_v55  ;;  %v1923_v18 = vrot.slane %v1909_v59, %v13749_v35  ;;  %v2077_v37 = vcombine.high %v15482_v44, %v15479_v45 }
 0x261   : > { %584 = vrot.lane.b32.xlu1 %v15497_v58, %s13427_s10  ;;  %656 = vrot.lane.b32.xlu0 %v15497_v58, %s13429_s14  ;;  %v12997_v28 = vpack.c.bf16 %v3186_v14, %v3050_v32  ;;  %v13003_v22 = vpack.c.bf16 %v3187_v12, %v3051_v26  ;;  %v2097_v11 = vcombine.high %v2052_v23, %v2084_v55 }
 0x262   : > { %12990 = vmatpush3.bf16.xpose.msk.msra.mxu0 %vm14229_vm2, %v12985_v7  ;;  %12555 = vmatmul.mubr.msk.f32.vlgmr.msra.gmra.mrb[32].mxu1 %vm4340_vm1, %v4331_v4  ;;  %v1962_v43 = vcombine.low %v1923_v18, %v1955_v30  ;;  %v2045_v25 = vcombine.high %v15501_v36, %v15492_v50  ;;  %v4333_v48 = vmul.f32 0.17677669, %v2096_v42  ;;  %v1963_v0 = vcombine.high %v1923_v18, %v1955_v30  ;;  %v18280_v36 = vld [vmem:[#allocation42_spill] sm:$0xff] }
 0x263   : > { %12561 = vmatprep.mubr.msk.f32.mxu0 %vm4340_vm1, %v4332_v40  ;;  %12996 = vmatpush3.bf16.xpose.msk.msra.mxu1 %vm14229_vm2, %v12991_v29  ;;  %v15566_v5 = vadd.f32 %v18269_v16, %v15485_v49  ;;  %v2091_v21 = vrot.slane %v2077_v37, %v13749_v35  ;;  %v4335_v17 = vmul.f32 0.17677669, %v2097_v11  ;;  %v15593_v49 = vadd.f32 %v18270_v34, %v298_v33 }
 0x264   : > { %12568 = vmatprep.mubr.msk.f32.mxu1 %vm4340_vm1, %v4334_v13  ;;  %12999 = vmatprep.subr.msk.bf16.mxu0 %vm14229_vm2, %v12997_v28  ;;  %v4336_v41 = vmul.f32 0.17677669, %v1962_v43  ;;  %v2059_v57 = vrot.slane %v2045_v25, %v13749_v35  ;;  %v4338_v60 = vmul.f32 0.17677669, %v1963_v0  ;;  %v15608_v56 = vadd.f32 %v18272_v8, %v298_v33 }
 0x265   : > { %13005 = vmatprep.subr.msk.bf16.mxu1 %vm14229_vm2, %v13003_v22  ;;  %620 = vrot.lane.b32.xlu1 %v15497_v58, %s13426_s9  ;;  %18271 = vst [vmem:[#allocation10_spill] sm:$0xff] %v15593_v49  ;;  %v15623_v50 = vadd.f32 %v18274_v31, %v303_v19  ;;  %v15638_v1 = vadd.f32 %v18276_v15, %v303_v19 }
 0x266   : > { %728 = vrot.lane.b32.xlu0 %v15497_v58, %s13430_s18  ;;  %v2098_v46 = vcombine.low %v2059_v57, %v2091_v21  ;;  %v2099_v45 = vcombine.high %v2059_v57, %v2091_v21  ;;  %18273 = vst [vmem:[#allocation9_spill] sm:$0xff] %v15608_v56  ;;  %v15653_v7 = vadd.f32 %v18278_v54, %v308_v6 }
 0x267   : > { %18275 = vst [vmem:[#allocation20_spill] sm:$0xff] %v15623_v50  ;;  %18277 = vst [vmem:[#allocation45_spill] sm:$0xff] %v15638_v1  ;;  %v15668_v27 = vadd.f32 %v18280_v36, %v308_v6 }
 0x268   : > { %v4337_v44 = vmul.f32 0.17677669, %v2098_v46  ;;  %v4339_v47 = vmul.f32 0.17677669, %v2099_v45  ;;  %18279 = vst [vmem:[#allocation2_spill] sm:$0xff] %v15653_v7 }
 0x269   : > { %12562 = vmatmul.mubr.msk.f32.vlgmr.msra.gmra.mrb[46].mxu0 %vm4340_vm1, %v4333_v48  ;;  %692 = vrot.lane.b32.xlu1 %v15497_v58, %s13428_s13  ;;  %18281 = vst [vmem:[#allocation25_spill] sm:$0xff] %v15668_v27 }
 0x26a   : > { %812 = vrot.lane.b32.xlu0 %v15566_v5, %s13424_s5  ;;  %12569 = vmatmul.mubr.msk.f32.vlgmr.msra.gmra.mrb[34].mxu1 %vm4340_vm1, %v4335_v17 }
 0x26b   : > { %13002 = vmatpush3.bf16.xpose.msk.msra.mxu0 %vm14229_vm2, %v12997_v28  ;;  %12575 = vmatprep.mubr.msk.f32.mxu0 %vm4340_vm1, %v4336_v41 }
 0x26c   : > { %13008 = vmatpush3.bf16.xpose.msk.msra.mxu1 %vm14229_vm2, %v13003_v22  ;;  %12582 = vmatprep.mubr.msk.f32.mxu1 %vm4340_vm1, %v4338_v60 }
 0x26d   : > { %776 = vrot.lane.b32.xlu1 %v15566_v5, %s13425_s6 }
 0x26e   : > { %884 = vrot.lane.b32.xlu0 %v15566_v5, %s13426_s9 }
 0x271   : > { %848 = vrot.lane.b32.xlu1 %v15566_v5, %s13427_s10 }
 0x272   : > { %956 = vrot.lane.b32.xlu0 %v15566_v5, %s13428_s13  ;;  %12576 = vmatmul.mubr.msk.f32.vlgmr.msra.gmra.mrb[48].mxu0 %vm4340_vm1, %v4337_v44 }
 0x273   : > { %12583 = vmatmul.mubr.msk.f32.vlgmr.msra.gmra.mrb[36].mxu1 %vm4340_vm1, %v4339_v47 }
 0x275   : > { %920 = vrot.lane.b32.xlu1 %v15566_v5, %s13429_s14 }
 0x276   : > { %550 = vrot.lane.b32.xlu0 %v15593_v49, %s13424_s5 }
 0x279   : > { %992 = vrot.lane.b32.xlu1 %v15566_v5, %s13430_s18 }
 0x27a   : > { %658 = vrot.lane.b32.xlu0 %v15593_v49, %s13429_s14 }
 0x27d   : > { %514 = vrot.lane.b32.xlu1 %v15593_v49, %s13425_s6 }
 0x27e   : > { %730 = vrot.lane.b32.xlu0 %v15593_v49, %s13430_s18 }
 0x281   : > { %586 = vrot.lane.b32.xlu1 %v15593_v49, %s13427_s10 }
 0x282   : > { %814 = vrot.lane.b32.xlu0 %v15608_v56, %s13424_s5 }
 0x285   : > { %622 = vrot.lane.b32.xlu1 %v15593_v49, %s13426_s9 }
 0x286   : > { %886 = vrot.lane.b32.xlu0 %v15608_v56, %s13426_s9 }
 0x289   : > { %694 = vrot.lane.b32.xlu1 %v15593_v49, %s13428_s13 }
 0x28a   : > { %958 = vrot.lane.b32.xlu0 %v15608_v56, %s13428_s13 }
 0x28d   : > { %778 = vrot.lane.b32.xlu1 %v15608_v56, %s13425_s6 }
 0x28e   : > { %552 = vrot.lane.b32.xlu0 %v15623_v50, %s13424_s5 }
 0x291   : > { %850 = vrot.lane.b32.xlu1 %v15608_v56, %s13427_s10 }
 0x292   : > { %660 = vrot.lane.b32.xlu0 %v15623_v50, %s13429_s14 }
 0x295   : > { %922 = vrot.lane.b32.xlu1 %v15608_v56, %s13429_s14 }
 0x296   : > { %732 = vrot.lane.b32.xlu0 %v15623_v50, %s13430_s18 }
 0x299   : > { %994 = vrot.lane.b32.xlu1 %v15608_v56, %s13430_s18 }
 0x29a   : > { %816 = vrot.lane.b32.xlu0 %v15638_v1, %s13424_s5 }
 0x29d   : > { %516 = vrot.lane.b32.xlu1 %v15623_v50, %s13425_s6 }
 0x29e   : > { %888 = vrot.lane.b32.xlu0 %v15638_v1, %s13426_s9 }
 0x2a1   : > { %588 = vrot.lane.b32.xlu1 %v15623_v50, %s13427_s10 }
 0x2a2   : > { %960 = vrot.lane.b32.xlu0 %v15638_v1, %s13428_s13 }
 0x2a5   : > { %624 = vrot.lane.b32.xlu1 %v15623_v50, %s13426_s9 }
 0x2a6   : > { %554 = vrot.lane.b32.xlu0 %v15653_v7, %s13424_s5 }
 0x2a9   : > { %696 = vrot.lane.b32.xlu1 %v15623_v50, %s13428_s13 }
 0x2aa   : > { %662 = vrot.lane.b32.xlu0 %v15653_v7, %s13429_s14 }
 0x2ac   : > { %v15674_v3 = vpop.f32.mrb[24].mxu0 }
 0x2ad   : > { %780 = vrot.lane.b32.xlu1 %v15638_v1, %s13425_s6  ;;  %v15670_v2 = vpop.f32.mrb[0].mxu1  ;;  %v15680_v52 = vpop.f32.mrb[25].mxu0 }
 0x2ae   : > { %734 = vrot.lane.b32.xlu0 %v15653_v7, %s13430_s18  ;;  %v15678_v63 = vpop.f32.mrb[1].mxu1  ;;  %v7128_v12 = vsel %vm4340_vm1, %v15670_v2, -inf }
 0x2af   : > { %v7125_v23 = vsel %vm4340_vm1, %v15678_v63, -inf }
 0x2b1   : > { %852 = vrot.lane.b32.xlu1 %v15638_v1, %s13427_s10 }
 0x2b2   : > { %818 = vrot.lane.b32.xlu0 %v15668_v27, %s13424_s5 }
 0x2b5   : > { %924 = vrot.lane.b32.xlu1 %v15638_v1, %s13429_s14  ;;  %v15688_v29 = vpop.f32.mrb[2].mxu1 }
 0x2b6   : > { %890 = vrot.lane.b32.xlu0 %v15668_v27, %s13426_s9  ;;  %v15690_v62 = vpop.f32.mrb[3].mxu1  ;;  %v7134_v22 = vsel %vm4340_vm1, %v15688_v29, -inf }
 0x2b9   : > { %996 = vrot.lane.b32.xlu1 %v15638_v1, %s13430_s18 }
 0x2bd   : > { %518 = vrot.lane.b32.xlu1 %v15653_v7, %s13425_s6  ;;  %v15694_v39 = vpop.f32.mrb[4].mxu1 }
 0x2be   : > { %v15698_v61 = vpop.f32.mrb[5].mxu1 }
 0x2c1   : > { %590 = vrot.lane.b32.xlu1 %v15653_v7, %s13427_s10 }
 0x2c5   : > { %626 = vrot.lane.b32.xlu1 %v15653_v7, %s13426_s9  ;;  %v15702_v51 = vpop.f32.mrb[6].mxu1 }
 0x2c6   : > { %v15706_v24 = vpop.f32.mrb[7].mxu1  ;;  %v7146_v0 = vsel %vm4340_vm1, %v15702_v51, -inf }
 0x2c7   : > { %v7143_v45 = vsel %vm4340_vm1, %v15706_v24, -inf }
 0x2c9   : > { %698 = vrot.lane.b32.xlu1 %v15653_v7, %s13428_s13 }
 0x2cd   : > { %782 = vrot.lane.b32.xlu1 %v15668_v27, %s13425_s6 }
 0x2ce   : > { %v15710_v53 = vpop.f32.mrb[8].mxu1 }
 0x2cf   : > { %v513_v38 = vpop.permute.xlu1 %512  ;;  %v549_v20 = vpop.permute.xlu0 %548 }
 0x2d0   : > { %v15714_v55 = vpop.f32.mrb[9].mxu1  ;;  %v3189_v13 = vcombine.high %v15497_v58, %v549_v20  ;;  %v3188_v8 = vcombine.low %v15497_v58, %v549_v20 }
 0x2d1   : > { %854 = vrot.lane.b32.xlu1 %v15668_v27, %s13427_s10 }
 0x2d2   : > { %v15739_v25 = vrot.slane %v3189_v13, %v13727_v10  ;;  %v3196_v20 = vrot.slane %v3188_v8, %v13727_v10 }
 0x2d3   : > { %v585_v9 = vpop.permute.xlu1 %584  ;;  %v657_v14 = vpop.permute.xlu0 %656 }
 0x2d4   : > { %v3205_v4 = vcombine.high %v513_v38, %v585_v9  ;;  %18285 = vst [vmem:[#allocation21_spill] sm:$0xff] %v15739_v25  ;;  %v3204_v44 = vcombine.low %v513_v38, %v585_v9 }
 0x2d5   : > { %7129 = vmax.xlane.f32.xlu0 %v7128_v12 }
 0x2d6   : > { %v15720_v32 = vpop.f32.mrb[10].mxu1  ;;  %v15730_v37 = vrot.slane %v3205_v4, %v13727_v10  ;;  %v3212_v38 = vrot.slane %v3204_v44, %v13727_v10 }
 0x2d7   : > { %v621_v59 = vpop.permute.xlu1 %620  ;;  %v15722_v30 = vpop.f32.mrb[11].mxu1  ;;  %v7158_v54 = vsel %vm4340_vm1, %v15720_v32, -inf }
 0x2d8   : > { %v729_v40 = vpop.permute.xlu0 %728  ;;  %18282 = vst [vmem:[#allocation19_spill] sm:$0xff] %v15730_v37  ;;  %v3268_v21 = vcombine.low %v15739_v25, %v15730_v37 }
 0x2d9   : > { %7126 = vmax.xlane.f32.xlu0 %v7125_v23  ;;  %v3237_v26 = vcombine.high %v657_v14, %v729_v40  ;;  %v3236_v47 = vcombine.low %v657_v14, %v729_v40 }
 0x2da   : > { %v15757_v34 = vrot.slane %v3268_v21, %v13749_v35 }
 0x2db   : > { %v693_v42 = vpop.permute.xlu1 %692  ;;  %v15733_v11 = vrot.slane %v3237_v26, %v13727_v10  ;;  %v3244_v9 = vrot.slane %v3236_v47, %v13727_v10 }
 0x2dc   : > { %v15725_v28 = vpop.permute.xlu0 %812  ;;  %v3221_v18 = vcombine.high %v621_v59, %v693_v42  ;;  %v3220_v60 = vcombine.low %v621_v59, %v693_v42  ;;  %18287 = vst [vmem:[#allocation24_spill] sm:$0xff] %v15757_v34 }
 0x2dd   : > { %7135 = vmax.xlane.f32.xlu0 %v7134_v22  ;;  %18283 = vst [vmem:[#allocation28_spill] sm:$0xff] %v15733_v11  ;;  %v3324_v14 = vcombine.low %v15566_v5, %v15725_v28 }
 0x2de   : > { %v15736_v43 = vrot.slane %v3221_v18, %v13727_v10  ;;  %v15747_v41 = vpop.f32.mrb[12].mxu1  ;;  %v3228_v19 = vrot.slane %v3220_v60, %v13727_v10  ;;  %v3252_v18 = vcombine.low %v3196_v20, %v3212_v38 }
 0x2df   : > { %v777_v48 = vpop.permute.xlu1 %776  ;;  %v15749_v57 = vpop.f32.mrb[13].mxu1 }
 0x2e0   : > { %18284 = vst [vmem:[#allocation16_spill] sm:$0xff] %v15736_v43  ;;  %v3300_v16 = vcombine.low %v15736_v43, %v15733_v11  ;;  %v885_v17 = vpop.permute.xlu0 %884  ;;  %v3284_v12 = vcombine.low %v3228_v19, %v3244_v9  ;;  %v3285_v44 = vcombine.high %v3228_v19, %v3244_v9  ;;  %v7167_v49 = vsel %vm4340_vm1, %v15749_v57, -inf }
 0x2e1   : > { %7147 = vmax.xlane.f32.xlu0 %v7146_v0  ;;  %v3253_v0 = vcombine.high %v3196_v20, %v3212_v38 }
 0x2e2   : > { %v15754_v33 = vrot.slane %v3300_v16, %v13749_v35  ;;  %v3332_v16 = vrot.slane %v3324_v14, %v13727_v10  ;;  %v3299_v20 = vrot.slane %v3285_v44, %v13749_v35 }
 0x2e3   : > { %v849_v46 = vpop.permute.xlu1 %848 }
 0x2e4   : > { %18286 = vst [vmem:[#allocation26_spill] sm:$0xff] %v15754_v33  ;;  %v3340_v31 = vcombine.low %v777_v48, %v849_v46  ;;  %v957_v15 = vpop.permute.xlu0 %956  ;;  %v3341_v23 = vcombine.high %v777_v48, %v849_v46 }
 0x2e5   : > { %7144 = vmax.xlane.f32.xlu0 %v7143_v45  ;;  %v3356_v58 = vcombine.low %v885_v17, %v957_v15  ;;  %v3357_v4 = vcombine.high %v885_v17, %v957_v15  ;;  %v3325_v45 = vcombine.high %v15566_v5, %v15725_v28  ;;  %v3260_v28 = vrot.slane %v3252_v18, %v13749_v35 }
 0x2e6   : > { %v3348_v59 = vrot.slane %v3340_v31, %v13727_v10  ;;  %v3292_v31 = vrot.slane %v3284_v12, %v13749_v35  ;;  %v15789_v15 = vrot.slane %v3341_v23, %v13727_v10 }
 0x2e7   : > { %v921_v6 = vpop.permute.xlu1 %920  ;;  %v3364_v48 = vrot.slane %v3356_v58, %v13727_v10  ;;  %v15796_v38 = vrot.slane %v3325_v45, %v13727_v10 }
 0x2e8   : > { %v15771_v42 = vpop.f32.mrb[26].mxu0  ;;  %v3388_v47 = vcombine.low %v3332_v16, %v3348_v59  ;;  %v3389_v8 = vcombine.high %v3332_v16, %v3348_v59  ;;  %18289 = vst [vmem:[#allocation43_spill] sm:$0xff] %v15789_v15 }
 0x2e9   : > { %7159 = vmax.xlane.f32.xlu0 %v7158_v54  ;;  %v15773_v22 = vpop.f32.mrb[14].mxu1  ;;  %v15776_v21 = vpop.f32.mrb[27].mxu0  ;;  %18291 = vst [vmem:[#allocation12_spill] sm:$0xff] %v15796_v38  ;;  %v3404_v59 = vcombine.low %v15796_v38, %v15789_v15 }
 0x2ea   : > { %v15778_v60 = vpop.f32.mrb[15].mxu1  ;;  %v3396_v58 = vrot.slane %v3388_v47, %v13749_v35  ;;  %v3403_v12 = vrot.slane %v3389_v8, %v13749_v35 }
 0x2eb   : > { %v993_v40 = vpop.permute.xlu1 %992  ;;  %v15822_v1 = vrot.slane %v3404_v59, %v13749_v35 }
 0x2ec   : > { %v3372_v26 = vcombine.low %v921_v6, %v993_v40  ;;  %v3373_v13 = vcombine.high %v921_v6, %v993_v40  ;;  %v15792_v6 = vrot.slane %v3357_v4, %v13727_v10  ;;  %v7164_v4 = vsel %vm4340_vm1, %v15674_v3, -inf }
 0x2ed   : > { %18295 = vst [vmem:[#allocation27_spill] sm:$0xff] %v15822_v1 }
 0x2ee   : > { %v3380_v17 = vrot.slane %v3372_v26, %v13727_v10  ;;  %v15785_v46 = vrot.slane %v3373_v13, %v13727_v10  ;;  %18290 = vst [vmem:[#allocation14_spill] sm:$0xff] %v15792_v6  ;;  %v3316_v26 = vcombine.low %v3260_v28, %v3292_v31  ;;  %v3267_v13 = vrot.slane %v3253_v0, %v13749_v35 }
 0x2ef   : > { %v7161_v0 = vsel %vm4340_vm1, %v15680_v52, -inf  ;;  %v15851_v59 = vpop.permute.xlu1 %514 }
 0x2f0   : > { %18288 = vst [vmem:[#allocation29_spill] sm:$0xff] %v15785_v46  ;;  %v3420_v54 = vcombine.low %v3364_v48, %v3380_v17  ;;  %v3421_v5 = vcombine.high %v3364_v48, %v3380_v17  ;;  %v3436_v19 = vcombine.low %v15792_v6, %v15785_v46  ;;  %v15807_v40 = vpop.f32.mrb[28].mxu0  ;;  %v3317_v48 = vcombine.high %v3260_v28, %v3292_v31 }
 0x2f1   : > { %v15809_v23 = vpop.f32.mrb[16].mxu1  ;;  %v15814_v18 = vpop.f32.mrb[29].mxu0  ;;  %v3318_v36 = vcombine.low %v3267_v13, %v3299_v20  ;;  %v3319_v7 = vcombine.high %v3267_v13, %v3299_v20  ;;  %18303 = vst [vmem:[#allocation17_spill] sm:$0xff] %v15851_v59  ;;  %v7182_v46 = vsel %vm4340_vm1, %v15773_v22, -inf  ;;  %v7179_v59 = vsel %vm4340_vm1, %v15778_v60, -inf }
 0x2f2   : > { %v3428_v9 = vrot.slane %v3420_v54, %v13749_v35  ;;  %v3435_v14 = vrot.slane %v3421_v5, %v13749_v35  ;;  %18292 = vst [vmem:[#allocation11_spill] sm:$0xff] %v15809_v23  ;;  %v15816_v16 = vpop.f32.mrb[17].mxu1  ;;  %v15819_v8 = vrot.slane %v3436_v19, %v13749_v35  ;;  %v15833_v19 = vpop.permute.xlu0 %550  ;;  %v7194_v43 = vsel %vm4340_vm1, %v15809_v23, -inf }
 0x2f3   : > { %18293 = vst [vmem:[#allocation31_spill] sm:$0xff] %v15816_v16  ;;  %18298 = vst [vmem:[#allocation8_spill] sm:$0xff] %v15833_v19 }
 0x2f4   : > { %v3452_v45 = vcombine.low %v3396_v58, %v3428_v9  ;;  %v3453_v17 = vcombine.high %v3396_v58, %v3428_v9  ;;  %v3454_v44 = vcombine.low %v3403_v12, %v3435_v14  ;;  %v3455_v47 = vcombine.high %v3403_v12, %v3435_v14  ;;  %18294 = vst [vmem:[#allocation44_spill] sm:$0xff] %v15819_v8 }
 0x2f5   : > { %7165 = vmax.xlane.f32.xlu1 %v7164_v4  ;;  %v3457_v28 = vcombine.high %v15822_v1, %v15819_v8 }
 0x2f6   : > { %v13009_v54 = vpack.c.bf16 %v3452_v45, %v3316_v26  ;;  %v13013_v5 = vpack.c.bf16 %v3453_v17, %v3317_v48  ;;  %v15826_v4 = vpack.c.bf16 %v3454_v44, %v3318_v36  ;;  %v15828_v31 = vpack.c.bf16 %v3455_v47, %v3319_v7  ;;  %v15855_v13 = vpop.permute.xlu0 %658  ;;  %v15865_v47 = vpop.permute.xlu1 %586 }
 0x2f7   : > { %v7176_v36 = vsel %vm4340_vm1, %v15771_v42, -inf  ;;  %v18300_v7 = vcombine.high %v15757_v34, %v15754_v33  ;;  %v7131_v26 = vsel %vm4340_vm1, %v15690_v62, -inf  ;;  %18304 = vst [vmem:[#allocation18_spill] sm:$0xff] %v15855_v13  ;;  %v7173_v17 = vsel %vm4340_vm1, %v15776_v21, -inf  ;;  %18306 = vst [vmem:[#allocation6_spill] sm:$0xff] %v15865_v47 }
 0x2f8   : > { %13010 = vmatprep.subr.bf16.mxu0 %v13009_v54  ;;  %13014 = vmatprep.subr.bf16.mxu1 %v13013_v5  ;;  %18296 = vst [vmem:[#allocation32_spill] sm:$0xff] %v15826_v4  ;;  %18297 = vst [vmem:[#allocation4_spill] sm:$0xff] %v15828_v31  ;;  %v15836_v9 = vpop.f32.mrb[30].mxu0  ;;  %v7191_v33 = vsel %vm4340_vm1, %v15816_v16, -inf }
 0x2f9   : > { %7162 = vmax.xlane.f32.xlu1 %v7161_v0  ;;  %13012 = vmatpush3.bf16.msra.mxu0 %v13009_v54  ;;  %v15842_v58 = vpop.f32.mrb[31].mxu0  ;;  %v15847_v20 = vpack.c.bf16 %v3457_v28, %v18300_v7  ;;  %v7140_v0 = vsel %vm4340_vm1, %v15694_v39, -inf }
 0x2fa   : > { %13016 = vmatpush3.bf16.msra.mxu1 %v13013_v5  ;;  %13018 = vmatprep.subr.bf16.mxu0 %v15826_v4  ;;  %v15869_v5 = vpop.permute.xlu0 %730  ;;  %v15873_v28 = vpop.permute.xlu1 %622  ;;  %v7197_v35 = vsel %vm4340_vm1, %v15842_v58, -inf }
 0x2fb   : > { %13022 = vmatprep.subr.bf16.mxu1 %v15828_v31  ;;  %v15838_v14 = vpop.f32.mrb[18].mxu1  ;;  %18301 = vst [vmem:[#allocation13_spill] sm:$0xff] %v15847_v20  ;;  %18307 = vst [vmem:[#allocation15_spill] sm:$0xff] %v15869_v5 }
 0x2fc   : > { %18299 = vst [vmem:[#allocation3_spill] sm:$0xff] %v15838_v14  ;;  %v15849_v12 = vpop.f32.mrb[19].mxu1  ;;  %18308 = vst [vmem:[#allocation22_spill] sm:$0xff] %v15873_v28  ;;  %v7155_v28 = vsel %vm4340_vm1, %v15722_v30, -inf }
 0x2fd   : > { %7177 = vmax.xlane.f32.xlu1 %v7176_v36  ;;  %18302 = vst [vmem:[#allocation23_spill] sm:$0xff] %v15849_v12 }
 0x2fe   : > { %v15885_v31 = vpop.permute.xlu0 %814  ;;  %v15891_v56 = vpop.permute.xlu1 %694 }
 0x2ff   : > { %18309 = vst [vmem:[#allocation34_spill] sm:$0xff] %v15885_v31  ;;  %18310 = vst [vmem:[#allocation30_spill] sm:$0xff] %v15891_v56 }
 0x300   : > { %v15857_v45 = vpop.f32.mrb[32].mxu0 }
 0x301   : > { %7132 = vmax.xlane.f32.xlu1 %v7131_v26  ;;  %v15863_v44 = vpop.f32.mrb[33].mxu0  ;;  %v7188_v26 = vsel %vm4340_vm1, %v15807_v40, -inf  ;;  %v7212_v15 = vsel %vm4340_vm1, %v15857_v45, -inf }
 0x302   : > { %v15895_v13 = vpop.permute.xlu0 %886  ;;  %v15909_v56 = vpop.permute.xlu1 %778 }
 0x303   : > { %v15859_v48 = vpop.f32.mrb[20].mxu1  ;;  %18311 = vst [vmem:[#allocation35_spill] sm:$0xff] %v15895_v13  ;;  %18312 = vst [vmem:[#allocation36_spill] sm:$0xff] %v15909_v56 }
 0x304   : > { %18305 = vst [vmem:[#allocation33_spill] sm:$0xff] %v15859_v48  ;;  %v15867_v54 = vpop.f32.mrb[21].mxu1 }
 0x305   : > { %7174 = vmax.xlane.f32.xlu1 %v7173_v17 }
 0x306   : > { %v15913_v13 = vpop.permute.xlu0 %958  ;;  %v15925_v56 = vpop.permute.xlu1 %850 }
 0x307   : > { %18313 = vst [vmem:[#allocation37_spill] sm:$0xff] %v15913_v13  ;;  %18314 = vst [vmem:[#allocation38_spill] sm:$0xff] %v15925_v56 }
 0x308   : > { %v15875_v36 = vpop.f32.mrb[34].mxu0 }
 0x309   : > { %7141 = vmax.xlane.f32.xlu1 %v7140_v0  ;;  %v15881_v20 = vpop.f32.mrb[35].mxu0  ;;  %v7224_v17 = vsel %vm4340_vm1, %v15875_v36, -inf  ;;  %v7137_v0 = vsel %vm4340_vm1, %v15698_v61, -inf }
 0x30a   : > { %7225 = vmax.xlane.f32.xlu0 %v7224_v17  ;;  %v15931_v13 = vpop.permute.xlu0 %552  ;;  %v15937_v38 = vpop.permute.xlu1 %922 }
 0x30b   : > { %18315 = vst [vmem:[#allocation39_spill] sm:$0xff] %v15931_v13  ;;  %18316 = vst [vmem:[#allocation40_spill] sm:$0xff] %v15937_v38 }
 0x30c   : > { %v15877_v7 = vpop.f32.mrb[22].mxu1 }
 0x30d   : > { %7189 = vmax.xlane.f32.xlu1 %v7188_v26  ;;  %v15887_v50 = vpop.f32.mrb[23].mxu1  ;;  %v7185_v26 = vsel %vm4340_vm1, %v15814_v18, -inf }
 0x30e   : > { %7156 = vmax.xlane.f32.xlu0 %v7155_v28  ;;  %v7200_v28 = vsel %vm4340_vm1, %v15836_v9, -inf  ;;  %v15947_v13 = vpop.permute.xlu0 %660  ;;  %v15955_v38 = vpop.permute.xlu1 %994 }
 0x30f   : > { %18320 = vst [vmem:[#allocation47_spill] sm:$0xff] %v15947_v13  ;;  %18322 = vst [vmem:[#allocation49_spill] sm:$0xff] %v15955_v38 }
 0x310   : > { %v15897_v5 = vpop.f32.mrb[36].mxu0 }
 0x311   : > { %7138 = vmax.xlane.f32.xlu1 %v7137_v0  ;;  %v15903_v17 = vpop.f32.mrb[37].mxu0  ;;  %v7170_v0 = vsel %vm4340_vm1, %v15747_v41, -inf }
 0x312   : > { %7171 = vmax.xlane.f32.xlu0 %v7170_v0  ;;  %v15961_v13 = vpop.permute.xlu0 %732  ;;  %v15973_v38 = vpop.permute.xlu1 %516 }
 0x313   : > { %18324 = vst [vmem:[#allocation51_spill] sm:$0xff] %v15961_v13  ;;  %18328 = vst [vmem:[#allocation55_spill] sm:$0xff] %v15973_v38 }
 0x314   : > { %v15899_v10 = vpop.f32.mrb[24].mxu1 }
 0x315   : > { %7186 = vmax.xlane.f32.xlu1 %v7185_v26  ;;  %v15905_v31 = vpop.f32.mrb[25].mxu1 }
 0x316   : > { %7168 = vmax.xlane.f32.xlu0 %v7167_v49  ;;  %v7152_v49 = vsel %vm4340_vm1, %v15710_v53, -inf  ;;  %v15977_v13 = vpop.permute.xlu0 %816  ;;  %v15989_v38 = vpop.permute.xlu1 %588 }
 0x317   : > { %18329 = vst [vmem:[#allocation56_spill] sm:$0xff] %v15977_v13  ;;  %18332 = vst [vmem:[#allocation59_spill] sm:$0xff] %v15989_v38 }
 0x318   : > { %v15917_v19 = vpop.f32.mrb[38].mxu0 }
 0x319   : > { %7201 = vmax.xlane.f32.xlu1 %v7200_v28  ;;  %v15923_v0 = vpop.f32.mrb[39].mxu0  ;;  %v7233_v28 = vsel %vm4340_vm1, %v15903_v17, -inf }
 0x31a   : > { %7234 = vmax.xlane.f32.xlu0 %v7233_v28  ;;  %v15995_v13 = vpop.permute.xlu0 %888  ;;  %v16003_v38 = vpop.permute.xlu1 %624 }
 0x31b   : > { %18333 = vst [vmem:[#allocation60_spill] sm:$0xff] %v15995_v13  ;;  %18334 = vst [vmem:[#allocation61_spill] sm:$0xff] %v16003_v38  ;;  %v7206_v38 = vsel %vm4340_vm1, %v15838_v14, -inf  ;;  %v7218_v14 = vsel %vm4340_vm1, %v15859_v48, -inf }
 0x31c   : > { %v15919_v26 = vpop.f32.mrb[26].mxu1 }
 0x31d   : > { %7198 = vmax.xlane.f32.xlu1 %v7197_v35  ;;  %v15927_v6 = vpop.f32.mrb[27].mxu1 }
 0x31e   : > { %7183 = vmax.xlane.f32.xlu0 %v7182_v46  ;;  %v7149_v46 = vsel %vm4340_vm1, %v15714_v55, -inf  ;;  %v16011_v13 = vpop.permute.xlu0 %960 }
 0x31f   : > { %18335 = vst [vmem:[#allocation62_spill] sm:$0xff] %v16011_v13 }
 0x321   : > { %7153 = vmax.xlane.f32.xlu1 %v7152_v49  ;;  %v7248_v49 = vsel %vm4340_vm1, %v15917_v19, -inf }
 0x322   : > { %v15939_v56 = vpop.f32.mrb[40].mxu0  ;;  %7249 = vmax.xlane.f32.xlu0 %v7248_v49  ;;  %v7209_v49 = vsel %vm4340_vm1, %v15863_v44, -inf  ;;  %v16021_v16 = vpop.permute.xlu0 %554 }
 0x323   : > { %18317 = vst [vmem:[#allocation41_spill] sm:$0xff] %v15939_v56  ;;  %v15945_v28 = vpop.f32.mrb[41].mxu0  ;;  %18337 = vst [vmem:[#allocation64_spill] sm:$0xff] %v16021_v16 }
 0x324   : > { %v15941_v35 = vpop.f32.mrb[28].mxu1  ;;  %18319 = vst [vmem:[#allocation46_spill] sm:$0xff] %v15945_v28 }
 0x325   : > { %18318 = vst [vmem:[#allocation42_spill] sm:$0xff] %v15941_v35  ;;  %7213 = vmax.xlane.f32.xlu1 %v7212_v15  ;;  %v15949_v27 = vpop.f32.mrb[29].mxu1 }
 0x326   : > { %18321 = vst [vmem:[#allocation48_spill] sm:$0xff] %v15949_v27  ;;  %7180 = vmax.xlane.f32.xlu0 %v7179_v59  ;;  %v7221_v59 = vsel %vm4340_vm1, %v15881_v20, -inf }
 0x329   : > { %7150 = vmax.xlane.f32.xlu1 %v7149_v46  ;;  %v7245_v46 = vsel %vm4340_vm1, %v15923_v0, -inf }
 0x32a   : > { %7246 = vmax.xlane.f32.xlu0 %v7245_v46  ;;  %v7236_v46 = vsel %vm4340_vm1, %v15897_v5, -inf }
 0x32b   : > { %v15959_v47 = vpop.f32.mrb[42].mxu0 }
 0x32c   : > { %18323 = vst [vmem:[#allocation50_spill] sm:$0xff] %v15959_v47  ;;  %v15963_v15 = vpop.f32.mrb[43].mxu0 }
 0x32d   : > { %18325 = vst [vmem:[#allocation52_spill] sm:$0xff] %v15963_v15  ;;  %v15965_v25 = vpop.f32.mrb[30].mxu1  ;;  %7210 = vmax.xlane.f32.xlu1 %v7209_v49 }
 0x32e   : > { %18326 = vst [vmem:[#allocation53_spill] sm:$0xff] %v15965_v25  ;;  %v15969_v37 = vpop.f32.mrb[31].mxu1  ;;  %7195 = vmax.xlane.f32.xlu0 %v7194_v43  ;;  %v7269_v43 = vsel %vm4340_vm1, %v15963_v15, -inf }
 0x32f   : > { %18327 = vst [vmem:[#allocation54_spill] sm:$0xff] %v15969_v37 }
 0x331   : > { %7222 = vmax.xlane.f32.xlu1 %v7221_v59  ;;  %v7260_v59 = vsel %vm4340_vm1, %v15939_v56, -inf }
 0x332   : > { %7261 = vmax.xlane.f32.xlu0 %v7260_v59 }
 0x333   : > { %v15981_v11 = vpop.f32.mrb[44].mxu0 }
 0x334   : > { %18330 = vst [vmem:[#allocation57_spill] sm:$0xff] %v15981_v11  ;;  %v15983_v49 = vpop.f32.mrb[45].mxu0  ;;  %v7284_v59 = vsel %vm4340_vm1, %v15981_v11, -inf }
 0x335   : > { %v15985_v4 = vpop.f32.mrb[32].mxu1  ;;  %7237 = vmax.xlane.f32.xlu1 %v7236_v46 }
 0x336   : > { %18331 = vst [vmem:[#allocation58_spill] sm:$0xff] %v15985_v4  ;;  %v15991_v34 = vpop.f32.mrb[33].mxu1  ;;  %7192 = vmax.xlane.f32.xlu0 %v7191_v33  ;;  %v16017_v33 = vpop.permute.xlu1 %696 }
 0x337   : > { %18336 = vst [vmem:[#allocation63_spill] sm:$0xff] %v16017_v33  ;;  %v7203_v33 = vsel %vm4340_vm1, %v15849_v12, -inf }
 0x339   : > { %7270 = vmax.xlane.f32.xlu1 %v7269_v43  ;;  %v7257_v43 = vsel %vm4340_vm1, %v15945_v28, -inf  ;;  %v7272_v28 = vsel %vm4340_vm1, %v15959_v47, -inf  ;;  %v7215_v47 = vsel %vm4340_vm1, %v15867_v54, -inf }
 0x33a   : > { %7258 = vmax.xlane.f32.xlu0 %v7257_v43  ;;  %v16033_v43 = vpop.permute.xlu1 %780 }
 0x33b   : > { %18340 = vst [vmem:[#allocation67_spill] sm:$0xff] %v16033_v43  ;;  %v7281_v43 = vsel %vm4340_vm1, %v15983_v49, -inf }
 0x33c   : > { %v16001_v1 = vpop.f32.mrb[46].mxu0 }
 0x33d   : > { %v16005_v46 = vpop.f32.mrb[47].mxu0  ;;  %v16007_v8 = vpop.f32.mrb[34].mxu1  ;;  %7285 = vmax.xlane.f32.xlu1 %v7284_v59 }
 0x33e   : > { %v16013_v15 = vpop.f32.mrb[35].mxu1  ;;  %7207 = vmax.xlane.f32.xlu0 %v7206_v38  ;;  %v16037_v38 = vpop.permute.xlu0 %662 }
 0x33f   : > { %18341 = vst [vmem:[#allocation68_spill] sm:$0xff] %v16037_v38  ;;  %v16039_v16 = vpop.permute.xlu1 %852  ;;  %v7230_v38 = vsel %vm4340_vm1, %v15877_v7, -inf }
 0x340   : > { %18342 = vst [vmem:[#allocation69_spill] sm:$0xff] %v16039_v16 }
 0x342   : > { %7273 = vmax.xlane.f32.xlu0 %v7272_v28  ;;  %v16043_v23 = vpop.permute.xlu0 %734 }
 0x343   : > { %18343 = vst [vmem:[#allocation70_spill] sm:$0xff] %v16043_v23  ;;  %v16047_v28 = vpop.permute.xlu1 %924  ;;  %v7296_v23 = vsel %vm4340_vm1, %v16001_v1, -inf }
 0x344   : > { %18344 = vst [vmem:[#allocation71_spill] sm:$0xff] %v16047_v28 }
 0x345   : > { %v16023_v56 = vpop.f32.mrb[48].mxu0 }
 0x346   : > { %18338 = vst [vmem:[#allocation65_spill] sm:$0xff] %v16023_v56  ;;  %v16025_v11 = vpop.f32.mrb[36].mxu1  ;;  %v16027_v13 = vpop.f32.mrb[49].mxu0  ;;  %7204 = vmax.xlane.f32.xlu0 %v7203_v33 }
 0x347   : > { %18339 = vst [vmem:[#allocation66_spill] sm:$0xff] %v16027_v13  ;;  %v16029_v59 = vpop.f32.mrb[37].mxu1  ;;  %v16051_v12 = vpop.permute.xlu0 %818 }
 0x348   : > { %18345 = vst [vmem:[#allocation72_spill] sm:$0xff] %v16051_v12  ;;  %v16053_v33 = vpop.permute.xlu1 %996 }
 0x349   : > { %18346 = vst [vmem:[#allocation73_spill] sm:$0xff] %v16053_v33 }
 0x34a   : > { %7219 = vmax.xlane.f32.xlu0 %v7218_v14 }
 0x34b   : > { %v16057_v14 = vpop.permute.xlu0 %890 }
 0x34c   : > { %18347 = vst [vmem:[#allocation74_spill] sm:$0xff] %v16057_v14  ;;  %v7293_v14 = vsel %vm4340_vm1, %v16005_v46, -inf }
 0x34e   : > { %7216 = vmax.xlane.f32.xlu0 %v7215_v47  ;;  %v16061_v47 = vpop.permute.xlu1 %518 }
 0x34f   : > { %18348 = vst [vmem:[#allocation75_spill] sm:$0xff] %v16061_v47 }
 0x352   : > { %7282 = vmax.xlane.f32.xlu0 %v7281_v43  ;;  %v7227_v43 = vsel %vm4340_vm1, %v15887_v50, -inf  ;;  %v16066_v48 = vpop.permute.xlu1 %590 }
 0x353   : > { %18349 = vst [vmem:[#allocation76_spill] sm:$0xff] %v16066_v48 }
 0x356   : > { %7231 = vmax.xlane.f32.xlu0 %v7230_v38 }
 0x35a   : > { %7297 = vmax.xlane.f32.xlu0 %v7296_v23 }
 0x35e   : > { %7228 = vmax.xlane.f32.xlu0 %v7227_v43 }
 0x362   : > { %v7130_v16 = vpop.xlane.xlu0 %7129  ;;  %7294 = vmax.xlane.f32.xlu0 %v7293_v14 }
 0x363   : > { %v7318_v28 = vsub.f32 %v15670_v2, %v7130_v16  ;;  %v7242_v2 = vsel %vm4340_vm1, %v15899_v10, -inf  ;;  %v16073_v16 = vpop.permute.xlu1 %626 }
 0x364   : > { %18350 = vst [vmem:[#allocation77_spill] sm:$0xff] %v16073_v16 }
 0x365   : > { %v7383_v12 = vmul.f32 1.442695, %v7318_v28  ;;  %v7308_v28 = vsel %vm4340_vm1, %v16023_v56, -inf  ;;  %v7275_v56 = vsel %vm4340_vm1, %v15969_v37, -inf }
 0x366   : > { %v7127_v33 = vpop.xlane.xlu0 %7126  ;;  %7243 = vmax.xlane.f32.xlu0 %v7242_v2 }
 0x367   : > { %13158 = vpow2.f32 %v7383_v12  ;;  %v7317_v38 = vsub.f32 %v15678_v63, %v7127_v33  ;;  %v16081_v12 = vpop.permute.xlu1 %698  ;;  %v7239_v33 = vsel %vm4340_vm1, %v15905_v31, -inf }
 0x368   : > { %18351 = vst [vmem:[#allocation78_spill] sm:$0xff] %v16081_v12 }
 0x369   : > { %v7381_v23 = vmul.f32 1.442695, %v7317_v38 }
 0x36a   : > { %7309 = vmax.xlane.f32.xlu0 %v7308_v28  ;;  %v7254_v28 = vsel %vm4340_vm1, %v15919_v26, -inf  ;;  %v7136_v12 = vpop.xlane.xlu0 %7135 }
 0x36b   : > { %13160 = vpow2.f32 %v7381_v23  ;;  %v7305_v23 = vsel %vm4340_vm1, %v16027_v13, -inf  ;;  %v16091_v2 = vpop.permute.xlu1 %782 }
 0x36c   : > { %18352 = vst [vmem:[#allocation79_spill] sm:$0xff] %v16091_v2 }
 0x36e   : > { %7240 = vmax.xlane.f32.xlu0 %v7239_v33  ;;  %v7251_v33 = vsel %vm4340_vm1, %v15927_v6, -inf }
 0x371   : > { %v16077_v43 = vpop.eup %13158 }
 0x372   : > { %v7512_v63 = vsel %vm4340_vm1, %v16077_v43, 0.0  ;;  %7306 = vmax.xlane.f32.xlu0 %v7305_v23  ;;  %v7263_v23 = vsel %vm4340_vm1, %v15949_v27, -inf }
 0x373   : > { %7513 = vadd.xlane.f32.xlu1 %v7512_v63  ;;  %v16095_v63 = vpop.permute.xlu1 %854 }
 0x374   : > { %18353 = vst [vmem:[#allocation80_spill] sm:$0xff] %v16095_v63  ;;  %v16105_v63 = vpop.xlane.xlu0 %7147 }
 0x375   : > { %v16085_v14 = vpop.eup %13160 }
 0x376   : > { %v7509_v38 = vsel %vm4340_vm1, %v16085_v14, 0.0  ;;  %7255 = vmax.xlane.f32.xlu0 %v7254_v28  ;;  %v7278_v28 = vsel %vm4340_vm1, %v15965_v25, -inf }
 0x377   : > { %7510 = vadd.xlane.f32.xlu1 %v7509_v38  ;;  %v7266_v38 = vsel %vm4340_vm1, %v15941_v35, -inf }
 0x378   : > { %v16110_v13 = vpop.xlane.xlu0 %7144 }
 0x37a   : > { %7252 = vmax.xlane.f32.xlu0 %v7251_v33 }
 0x37e   : > { %7267 = vmax.xlane.f32.xlu0 %v7266_v38 }
 0x382   : > { %v7166_v16 = vpop.xlane.xlu1 %7165  ;;  %7264 = vmax.xlane.f32.xlu0 %v7263_v23  ;;  %v7290_v23 = vsel %vm4340_vm1, %v15985_v4, -inf }
 0x383   : > { %v7330_v25 = vsub.f32 %v15674_v3, %v7166_v16 }
 0x386   : > { %v7163_v2 = vpop.xlane.xlu1 %7162  ;;  %7279 = vmax.xlane.f32.xlu0 %v7278_v28 }
 0x387   : > { %v7329_v4 = vsub.f32 %v15680_v52, %v7163_v2  ;;  %v7299_v2 = vsel %vm4340_vm1, %v16013_v15, -inf }
 0x389   : > { %v7405_v52 = vmul.f32 1.442695, %v7329_v4  ;;  %v7314_v4 = vsel %vm4340_vm1, %v16025_v11, -inf }
 0x38a   : > { %v7178_v47 = vpop.xlane.xlu1 %7177  ;;  %7276 = vmax.xlane.f32.xlu0 %v7275_v56 }
 0x38b   : > { %v7334_v33 = vsub.f32 %v15771_v42, %v7178_v47  ;;  %v7287_v42 = vsel %vm4340_vm1, %v15991_v34, -inf }
 0x38d   : > { %v7415_v48 = vmul.f32 1.442695, %v7334_v33  ;;  %v16118_v33 = vpop.xlane.xlu0 %7159 }
 0x38e   : > { %v7133_v38 = vpop.xlane.xlu1 %7132  ;;  %7291 = vmax.xlane.f32.xlu0 %v7290_v23 }
 0x38f   : > { %13162 = vpow2.f32 %v7415_v48  ;;  %v7407_v48 = vmul.f32 1.442695, %v7330_v25 }
 0x392   : > { %v7175_v27 = vpop.xlane.xlu1 %7174  ;;  %7288 = vmax.xlane.f32.xlu0 %v7287_v42 }
 0x393   : > { %v7333_v28 = vsub.f32 %v15776_v21, %v7175_v27  ;;  %v7302_v27 = vsel %vm4340_vm1, %v16007_v8, -inf }
 0x395   : > { %v7413_v35 = vmul.f32 1.442695, %v7333_v28 }
 0x396   : > { %v7142_v47 = vpop.xlane.xlu1 %7141  ;;  %7303 = vmax.xlane.f32.xlu0 %v7302_v27 }
 0x397   : > { %13164 = vpow2.f32 %v7413_v35  ;;  %v7322_v56 = vsub.f32 %v15694_v39, %v7142_v47  ;;  %v16129_v35 = vpop.xlane.xlu0 %7225  ;;  %v7320_v39 = vsub.f32 %v15688_v29, %v7136_v12 }
 0x399   : > { %v16122_v37 = vpop.eup %13162  ;;  %v7391_v23 = vmul.f32 1.442695, %v7322_v56  ;;  %v7387_v56 = vmul.f32 1.442695, %v7320_v39 }
 0x39a   : > { %18354 = vst [vmem:[#allocation81_spill] sm:$0xff] %v16122_v37  ;;  %v7190_v3 = vpop.xlane.xlu1 %7189  ;;  %v7560_v21 = vsel %vm4340_vm1, %v16122_v37, 0.0  ;;  %7300 = vmax.xlane.f32.xlu0 %v7299_v2 }
 0x39b   : > { %13166 = vpow2.f32 %v7391_v23  ;;  %v7338_v16 = vsub.f32 %v15807_v40, %v7190_v3  ;;  %7561 = vadd.xlane.f32.xlu1 %v7560_v21  ;;  %v16135_v47 = vpop.xlane.xlu0 %7156  ;;  %v7319_v40 = vsub.f32 %v15690_v62, %v7133_v38  ;;  %v7324_v62 = vsub.f32 %v15702_v51, %v16105_v63 }
 0x39c   : > { %13168 = vpow2.f32 %v7407_v48  ;;  %v7323_v63 = vsub.f32 %v15706_v24, %v16110_v13 }
 0x39d   : > { %v7423_v25 = vmul.f32 1.442695, %v7338_v16  ;;  %v7385_v38 = vmul.f32 1.442695, %v7319_v40  ;;  %v7311_v16 = vsel %vm4340_vm1, %v16029_v59, -inf }
 0x39e   : > { %v7139_v28 = vpop.xlane.xlu1 %7138  ;;  %7315 = vmax.xlane.f32.xlu0 %v7314_v4  ;;  %v7395_v51 = vmul.f32 1.442695, %v7324_v62  ;;  %v7393_v24 = vmul.f32 1.442695, %v7323_v63 }
 0x39f   : > { %13170 = vpow2.f32 %v7423_v25  ;;  %v7321_v42 = vsub.f32 %v15698_v61, %v7139_v28  ;;  %v16145_v27 = vpop.xlane.xlu0 %7171 }
 0x3a0   : > { %13172 = vpow2.f32 %v7405_v52 }
 0x3a1   : > { %v16138_v23 = vpop.eup %13164  ;;  %v7389_v29 = vmul.f32 1.442695, %v7321_v42 }
 0x3a2   : > { %18355 = vst [vmem:[#allocation82_spill] sm:$0xff] %v16138_v23  ;;  %v7187_v12 = vpop.xlane.xlu1 %7186  ;;  %v7557_v48 = vsel %vm4340_vm1, %v16138_v23, 0.0  ;;  %7312 = vmax.xlane.f32.xlu0 %v7311_v16 }
 0x3a3   : > { %13174 = vpow2.f32 %v7389_v29  ;;  %v7337_v61 = vsub.f32 %v15814_v18, %v7187_v12  ;;  %7558 = vadd.xlane.f32.xlu1 %v7557_v48  ;;  %v16158_v2 = vpop.xlane.xlu0 %7168 }
 0x3a4   : > { %13176 = vpow2.f32 %v7387_v56 }
 0x3a5   : > { %v16149_v3 = vpop.eup %13166  ;;  %v7421_v21 = vmul.f32 1.442695, %v7337_v61 }
 0x3a6   : > { %v16153_v39 = vpop.eup %13168  ;;  %v7202_v52 = vpop.xlane.xlu1 %7201  ;;  %v7524_v18 = vsel %vm4340_vm1, %v16149_v3, 0.0 }
 0x3a7   : > { %18356 = vst [vmem:[#allocation83_spill] sm:$0xff] %v16153_v39  ;;  %13178 = vpow2.f32 %v7421_v21  ;;  %v7342_v25 = vsub.f32 %v15836_v9, %v7202_v52  ;;  %7525 = vadd.xlane.f32.xlu1 %v7524_v18  ;;  %v7548_v56 = vsel %vm4340_vm1, %v16153_v39, 0.0  ;;  %v16171_v12 = vpop.xlane.xlu0 %7234 }
 0x3a8   : > { %13180 = vpow2.f32 %v7385_v38  ;;  %7549 = vadd.xlane.f32.xlu0 %v7548_v56 }
 0x3a9   : > { %v16162_v28 = vpop.eup %13170  ;;  %v7431_v42 = vmul.f32 1.442695, %v7342_v25 }
 0x3aa   : > { %18357 = vst [vmem:[#allocation84_spill] sm:$0xff] %v16162_v28  ;;  %v16166_v40 = vpop.eup %13172  ;;  %v7199_v29 = vpop.xlane.xlu1 %7198  ;;  %v7572_v9 = vsel %vm4340_vm1, %v16162_v28, 0.0  ;;  %v18436_v28 = vld [vmem:[#allocation37_spill] sm:$0xff] }
 0x3ab   : > { %18358 = vst [vmem:[#allocation85_spill] sm:$0xff] %v16166_v40  ;;  %13182 = vpow2.f32 %v7431_v42  ;;  %v7341_v4 = vsub.f32 %v15842_v58, %v7199_v29  ;;  %7573 = vadd.xlane.f32.xlu1 %v7572_v9  ;;  %v7545_v61 = vsel %vm4340_vm1, %v16166_v40, 0.0  ;;  %v16182_v16 = vpop.xlane.xlu0 %7183  ;;  %v7350_v9 = vsub.f32 %v15875_v36, %v16129_v35 }
 0x3ac   : > { %13184 = vpow2.f32 %v7395_v51  ;;  %7546 = vadd.xlane.f32.xlu0 %v7545_v61  ;;  %v7328_v36 = vsub.f32 %v15720_v32, %v16118_v33 }
 0x3ad   : > { %v16173_v13 = vpop.eup %13174  ;;  %v7429_v48 = vmul.f32 1.442695, %v7341_v4 }
 0x3ae   : > { %v16177_v62 = vpop.eup %13176  ;;  %v7154_v38 = vpop.xlane.xlu1 %7153  ;;  %v7521_v21 = vsel %vm4340_vm1, %v16173_v13, 0.0  ;;  %v7403_v32 = vmul.f32 1.442695, %v7328_v36 }
 0x3af   : > { %13186 = vpow2.f32 %v7429_v48  ;;  %v7326_v58 = vsub.f32 %v15710_v53, %v7154_v38  ;;  %7522 = vadd.xlane.f32.xlu1 %v7521_v21  ;;  %v7518_v25 = vsel %vm4340_vm1, %v16177_v62, 0.0  ;;  %v16193_v56 = vpop.xlane.xlu0 %7249 }
 0x3b0   : > { %13188 = vpow2.f32 %v7393_v24  ;;  %7519 = vadd.xlane.f32.xlu0 %v7518_v25 }
 0x3b1   : > { %v16184_v52 = vpop.eup %13178  ;;  %v7399_v18 = vmul.f32 1.442695, %v7326_v58  ;;  %v7447_v58 = vmul.f32 1.442695, %v7350_v9  ;;  %v7327_v9 = vsub.f32 %v15722_v30, %v16135_v47  ;;  %v7331_v47 = vsub.f32 %v15749_v57, %v16158_v2 }
 0x3b2   : > { %18359 = vst [vmem:[#allocation86_spill] sm:$0xff] %v16184_v52  ;;  %v16188_v51 = vpop.eup %13180  ;;  %v7214_v63 = vpop.xlane.xlu1 %7213  ;;  %v7569_v42 = vsel %vm4340_vm1, %v16184_v52, 0.0  ;;  %v7336_v57 = vsub.f32 %v15773_v22, %v16182_v16 }
 0x3b3   : > { %13190 = vpow2.f32 %v7399_v18  ;;  %v7346_v53 = vsub.f32 %v15857_v45, %v7214_v63  ;;  %7570 = vadd.xlane.f32.xlu1 %v7569_v42  ;;  %v7515_v24 = vsel %vm4340_vm1, %v16188_v51, 0.0  ;;  %v16206_v21 = vpop.xlane.xlu0 %7180  ;;  %v7401_v30 = vmul.f32 1.442695, %v7327_v9 }
 0x3b4   : > { %7516 = vadd.xlane.f32.xlu0 %v7515_v24  ;;  %v7335_v22 = vsub.f32 %v15778_v60, %v16206_v21  ;;  %v18367_v21 = vld [vmem:[#allocation11_spill] sm:$0xff] }
 0x3b5   : > { %v16195_v29 = vpop.eup %13182  ;;  %v7439_v4 = vmul.f32 1.442695, %v7346_v53 }
 0x3b6   : > { %18360 = vst [vmem:[#allocation87_spill] sm:$0xff] %v16195_v29  ;;  %v16201_v48 = vpop.eup %13184  ;;  %v7151_v61 = vpop.xlane.xlu1 %7150  ;;  %v7584_v38 = vsel %vm4340_vm1, %v16195_v29, 0.0  ;;  %v7417_v60 = vmul.f32 1.442695, %v7335_v22 }
 0x3b7   : > { %13192 = vpow2.f32 %v7439_v4  ;;  %v7325_v45 = vsub.f32 %v15714_v55, %v7151_v61  ;;  %7585 = vadd.xlane.f32.xlu1 %v7584_v38  ;;  %v7530_v25 = vsel %vm4340_vm1, %v16201_v48, 0.0  ;;  %v16219_v4 = vpop.xlane.xlu0 %7246 }
 0x3b8   : > { %7531 = vadd.xlane.f32.xlu0 %v7530_v25 }
 0x3b9   : > { %v16210_v35 = vpop.eup %13186  ;;  %v7397_v18 = vmul.f32 1.442695, %v7325_v45 }
 0x3ba   : > { %18361 = vst [vmem:[#allocation88_spill] sm:$0xff] %v16210_v35  ;;  %v16214_v63 = vpop.eup %13188  ;;  %v7211_v42 = vpop.xlane.xlu1 %7210  ;;  %v7581_v53 = vsel %vm4340_vm1, %v16210_v35, 0.0 }
 0x3bb   : > { %13194 = vpow2.f32 %v7397_v18  ;;  %v7345_v55 = vsub.f32 %v15863_v44, %v7211_v42  ;;  %7582 = vadd.xlane.f32.xlu1 %v7581_v53  ;;  %v7527_v61 = vsel %vm4340_vm1, %v16214_v63, 0.0  ;;  %v7196_v36 = vpop.xlane.xlu0 %7195 }
 0x3bc   : > { %13196 = vpow2.f32 %v7447_v58  ;;  %7528 = vadd.xlane.f32.xlu0 %v7527_v61  ;;  %v7332_v58 = vsub.f32 %v15747_v41, %v16145_v27  ;;  %v7353_v41 = vsub.f32 %v15903_v17, %v16171_v12  ;;  %v7358_v17 = vsub.f32 %v15917_v19, %v16193_v56 }
 0x3bd   : > { %v16221_v33 = vpop.eup %13190  ;;  %v7437_v24 = vmul.f32 1.442695, %v7345_v55  ;;  %v7357_v56 = vsub.f32 %v15923_v0, %v16219_v4  ;;  %v18369_v4 = vld [vmem:[#allocation41_spill] sm:$0xff] }
 0x3be   : > { %v7223_v38 = vpop.xlane.xlu1 %7222  ;;  %v7536_v45 = vsel %vm4340_vm1, %v16221_v33, 0.0  ;;  %v7463_v19 = vmul.f32 1.442695, %v7358_v17 }
 0x3bf   : > { %13198 = vpow2.f32 %v7437_v24  ;;  %v7349_v44 = vsub.f32 %v15881_v20, %v7223_v38  ;;  %7537 = vadd.xlane.f32.xlu1 %v7536_v45  ;;  %v7262_v55 = vpop.xlane.xlu0 %7261  ;;  %v7411_v24 = vmul.f32 1.442695, %v7332_v58  ;;  %v7453_v38 = vmul.f32 1.442695, %v7353_v41 }
 0x3c0   : > { %13200 = vpow2.f32 %v7403_v32  ;;  %v7409_v32 = vmul.f32 1.442695, %v7331_v47  ;;  %v7419_v45 = vmul.f32 1.442695, %v7336_v57  ;;  %v7461_v0 = vmul.f32 1.442695, %v7357_v56 }
 0x3c1   : > { %v16232_v18 = vpop.eup %13192  ;;  %v7445_v25 = vmul.f32 1.442695, %v7349_v44  ;;  %v18375_v56 = vld [vmem:[#allocation31_spill] sm:$0xff] }
 0x3c2   : > { %18362 = vst [vmem:[#allocation89_spill] sm:$0xff] %v16232_v18  ;;  %v7238_v42 = vpop.xlane.xlu1 %7237  ;;  %v7596_v53 = vsel %vm4340_vm1, %v16232_v18, 0.0  ;;  %v18430_v18 = vld [vmem:[#allocation15_spill] sm:$0xff] }
 0x3c3   : > { %13202 = vpow2.f32 %v7445_v25  ;;  %v7354_v20 = vsub.f32 %v15897_v5, %v7238_v42  ;;  %7597 = vadd.xlane.f32.xlu0 %v7596_v53  ;;  %v7193_v5 = vpop.xlane.xlu0 %7192  ;;  %v7340_v25 = vsub.f32 %v18367_v21, %v7196_v36 }
 0x3c4   : > { %13204 = vpow2.f32 %v7401_v30 }
 0x3c5   : > { %v16241_v27 = vpop.eup %13194  ;;  %v7455_v2 = vmul.f32 1.442695, %v7354_v20  ;;  %v7427_v36 = vmul.f32 1.442695, %v7340_v25 }
 0x3c6   : > { %v7533_v9 = vsel %vm4340_vm1, %v16241_v27, 0.0  ;;  %v16247_v61 = vpop.eup %13196 }
 0x3c7   : > { %18363 = vst [vmem:[#allocation90_spill] sm:$0xff] %v16247_v61  ;;  %13206 = vpow2.f32 %v7455_v2  ;;  %7534 = vadd.xlane.f32.xlu1 %v7533_v9  ;;  %v7608_v44 = vsel %vm4340_vm1, %v16247_v61, 0.0  ;;  %v7259_v30 = vpop.xlane.xlu0 %7258 }
 0x3c8   : > { %13208 = vpow2.f32 %v7411_v24  ;;  %v7271_v24 = vpop.xlane.xlu1 %7270 }
 0x3c9   : > { %v16251_v12 = vpop.eup %13198  ;;  %13210 = vpow2.f32 %v7409_v32  ;;  %v7362_v32 = vsub.f32 %v18369_v4, %v7262_v55  ;;  %v18373_v55 = vld [vmem:[#allocation52_spill] sm:$0xff] }
 0x3ca   : > { %18364 = vst [vmem:[#allocation91_spill] sm:$0xff] %v16251_v12  ;;  %v7593_v16 = vsel %vm4340_vm1, %v16251_v12, 0.0  ;;  %v16259_v58 = vpop.eup %13200  ;;  %13212 = vpow2.f32 %v7453_v38 }
 0x3cb   : > { %18365 = vst [vmem:[#allocation92_spill] sm:$0xff] %v16259_v58  ;;  %7594 = vadd.xlane.f32.xlu0 %v7593_v16  ;;  %7609 = vadd.xlane.f32.xlu1 %v7608_v44  ;;  %13214 = vpow2.f32 %v7419_v45  ;;  %v7542_v42 = vsel %vm4340_vm1, %v16259_v58, 0.0  ;;  %v7208_v41 = vpop.xlane.xlu0 %7207  ;;  %v7471_v22 = vmul.f32 1.442695, %v7362_v32  ;;  %v7365_v16 = vsub.f32 %v18373_v55, %v7271_v24  ;;  %v18374_v44 = vld [vmem:[#allocation50_spill] sm:$0xff]  ;;  %v18378_v32 = vld [vmem:[#allocation57_spill] sm:$0xff] }
 0x3cc   : > { %13216 = vpow2.f32 %v7463_v19  ;;  %v7286_v21 = vpop.xlane.xlu1 %7285 }
 0x3cd   : > { %v16263_v47 = vpop.eup %13202  ;;  %13218 = vpow2.f32 %v7417_v60  ;;  %v7339_v60 = vsub.f32 %v18375_v56, %v7193_v5 }
 0x3ce   : > { %18366 = vst [vmem:[#allocation93_spill] sm:$0xff] %v16263_v47  ;;  %v7605_v53 = vsel %vm4340_vm1, %v16263_v47, 0.0  ;;  %v16270_v20 = vpop.eup %13204  ;;  %13220 = vpow2.f32 %v7461_v0  ;;  %v7477_v0 = vmul.f32 1.442695, %v7365_v16 }
 0x3cf   : > { %18368 = vst [vmem:[#allocation11_spill] sm:$0xff] %v16270_v20  ;;  %7543 = vadd.xlane.f32.xlu0 %v7542_v42  ;;  %7606 = vadd.xlane.f32.xlu1 %v7605_v53  ;;  %v7539_v38 = vsel %vm4340_vm1, %v16270_v20, 0.0  ;;  %v7274_v45 = vpop.xlane.xlu0 %7273  ;;  %13222 = vpow2.f32 %v7427_v36  ;;  %v7370_v36 = vsub.f32 %v18378_v32, %v7286_v21  ;;  %v7425_v5 = vmul.f32 1.442695, %v7339_v60  ;;  %v18382_v21 = vld [vmem:[#allocation3_spill] sm:$0xff] }
 0x3d0   : > { %v7366_v19 = vsub.f32 %v18374_v44, %v7274_v45  ;;  %13224 = vpow2.f32 %v7471_v22  ;;  %v7344_v60 = vsub.f32 %v18382_v21, %v7208_v41  ;;  %v18437_v20 = vld [vmem:[#allocation35_spill] sm:$0xff] }
 0x3d1   : > { %v16273_v57 = vpop.eup %13206  ;;  %v7487_v16 = vmul.f32 1.442695, %v7370_v36  ;;  %v18385_v36 = vld [vmem:[#allocation23_spill] sm:$0xff]  ;;  %v3628_v52 = vcombine.low %v18437_v20, %v18436_v28 }
 0x3d2   : > { %18370 = vst [vmem:[#allocation41_spill] sm:$0xff] %v16273_v57  ;;  %v16275_v2 = vpop.eup %13208  ;;  %v7620_v9 = vsel %vm4340_vm1, %v16273_v57, 0.0  ;;  %v7479_v42 = vmul.f32 1.442695, %v7366_v19 }
 0x3d3   : > { %18371 = vst [vmem:[#allocation94_spill] sm:$0xff] %v16275_v2  ;;  %v16281_v17 = vpop.eup %13210  ;;  %7621 = vadd.xlane.f32.xlu1 %v7620_v9  ;;  %7540 = vadd.xlane.f32.xlu0 %v7539_v38  ;;  %v7554_v53 = vsel %vm4340_vm1, %v16275_v2, 0.0  ;;  %v7205_v24 = vpop.xlane.xlu0 %7204  ;;  %v18379_v38 = vld [vmem:[#allocation46_spill] sm:$0xff] }
 0x3d4   : > { %18372 = vst [vmem:[#allocation95_spill] sm:$0xff] %v16281_v17  ;;  %v16286_v25 = vpop.eup %13212  ;;  %v7551_v4 = vsel %vm4340_vm1, %v16281_v17, 0.0  ;;  %v7361_v45 = vsub.f32 %v18379_v38, %v7259_v30  ;;  %13226 = vpow2.f32 %v7479_v42  ;;  %v18434_v2 = vld [vmem:[#allocation34_spill] sm:$0xff] }
 0x3d5   : > { %18376 = vst [vmem:[#allocation52_spill] sm:$0xff] %v16286_v25  ;;  %v16292_v9 = vpop.eup %13214  ;;  %v7617_v44 = vsel %vm4340_vm1, %v16286_v25, 0.0  ;;  %13228 = vpow2.f32 %v7477_v0  ;;  %v7435_v0 = vmul.f32 1.442695, %v7344_v60 }
 0x3d6   : > { %18377 = vst [vmem:[#allocation50_spill] sm:$0xff] %v16292_v9  ;;  %v16296_v55 = vpop.eup %13216  ;;  %v7566_v19 = vsel %vm4340_vm1, %v16292_v9, 0.0  ;;  %13230 = vpow2.f32 %v7425_v5  ;;  %v7469_v30 = vmul.f32 1.442695, %v7361_v45 }
 0x3d7   : > { %7555 = vadd.xlane.f32.xlu0 %v7554_v53  ;;  %7552 = vadd.xlane.f32.xlu1 %v7551_v4  ;;  %18380 = vst [vmem:[#allocation31_spill] sm:$0xff] %v16296_v55  ;;  %v16302_v56 = vpop.eup %13218  ;;  %v7220_v22 = vpop.xlane.xlu0 %7219  ;;  %v7632_v53 = vsel %vm4340_vm1, %v16296_v55, 0.0  ;;  %13232 = vpow2.f32 %v7487_v16 }
 0x3d8   : > { %18381 = vst [vmem:[#allocation57_spill] sm:$0xff] %v16302_v56  ;;  %v16305_v42 = vpop.eup %13220  ;;  %v7563_v4 = vsel %vm4340_vm1, %v16302_v56, 0.0  ;;  %13234 = vpow2.f32 %v7469_v30 }
 0x3d9   : > { %18383 = vst [vmem:[#allocation46_spill] sm:$0xff] %v16305_v42  ;;  %v16311_v32 = vpop.eup %13222  ;;  %13236 = vpow2.f32 %v7435_v0 }
 0x3da   : > { %18384 = vst [vmem:[#allocation3_spill] sm:$0xff] %v16311_v32  ;;  %v16315_v5 = vpop.eup %13224  ;;  %v7578_v21 = vsel %vm4340_vm1, %v16311_v32, 0.0  ;;  %v18425_v32 = vld [vmem:[#allocation14_spill] sm:$0xff] }
 0x3db   : > { %7618 = vadd.xlane.f32.xlu1 %v7617_v44  ;;  %7567 = vadd.xlane.f32.xlu0 %v7566_v19  ;;  %v7217_v38 = vpop.xlane.xlu0 %7216  ;;  %v7343_v44 = vsub.f32 %v18385_v36, %v7205_v24  ;;  %18386 = vst [vmem:[#allocation23_spill] sm:$0xff] %v16315_v5  ;;  %v7629_v19 = vsel %vm4340_vm1, %v16305_v42, 0.0  ;;  %v18427_v42 = vld [vmem:[#allocation8_spill] sm:$0xff] }
 0x3dc   : > { %v7347_v41 = vsub.f32 %v15867_v54, %v7217_v38  ;;  %v18388_v54 = vld [vmem:[#allocation33_spill] sm:$0xff]  ;;  %v7644_v38 = vsel %vm4340_vm1, %v16315_v5, 0.0 }
 0x3dd   : > { %v7433_v60 = vmul.f32 1.442695, %v7343_v44  ;;  %v7348_v30 = vsub.f32 %v18388_v54, %v7220_v22 }
 0x3de   : > { %v7441_v45 = vmul.f32 1.442695, %v7347_v41  ;;  %v16321_v55 = vpop.eup %13226 }
 0x3df   : > { %7633 = vadd.xlane.f32.xlu1 %v7632_v53  ;;  %7564 = vadd.xlane.f32.xlu0 %v7563_v4  ;;  %18387 = vst [vmem:[#allocation96_spill] sm:$0xff] %v16321_v55  ;;  %v7283_v16 = vpop.xlane.xlu0 %7282  ;;  %v16325_v53 = vpop.eup %13228  ;;  %v7656_v36 = vsel %vm4340_vm1, %v16321_v55, 0.0  ;;  %v7443_v44 = vmul.f32 1.442695, %v7348_v30  ;;  %v18403_v55 = vld [vmem:[#allocation44_spill] sm:$0xff] }
 0x3e0   : > { %v7369_v24 = vsub.f32 %v15983_v49, %v7283_v16  ;;  %13238 = vpow2.f32 %v7441_v45  ;;  %18389 = vst [vmem:[#allocation33_spill] sm:$0xff] %v16325_v53  ;;  %v16331_v41 = vpop.eup %13230 }
 0x3e1   : > { %18390 = vst [vmem:[#allocation97_spill] sm:$0xff] %v16331_v41  ;;  %13240 = vpow2.f32 %v7433_v60  ;;  %v16334_v22 = vpop.eup %13232  ;;  %v7575_v45 = vsel %vm4340_vm1, %v16331_v41, 0.0 }
 0x3e2   : > { %v7485_v4 = vmul.f32 1.442695, %v7369_v24  ;;  %18391 = vst [vmem:[#allocation98_spill] sm:$0xff] %v16334_v22 }
 0x3e3   : > { %7630 = vadd.xlane.f32.xlu1 %v7629_v19  ;;  %7579 = vadd.xlane.f32.xlu0 %v7578_v21  ;;  %v7232_v0 = vpop.xlane.xlu0 %7231  ;;  %v7653_v19 = vsel %vm4340_vm1, %v16325_v53, 0.0  ;;  %v16340_v21 = vpop.eup %13234  ;;  %v18423_v53 = vld [vmem:[#allocation12_spill] sm:$0xff] }
 0x3e4   : > { %13242 = vpow2.f32 %v7485_v4  ;;  %v7352_v49 = vsub.f32 %v15877_v7, %v7232_v0  ;;  %18392 = vst [vmem:[#allocation99_spill] sm:$0xff] %v16340_v21  ;;  %v16343_v54 = vpop.eup %13236  ;;  %v7641_v30 = vsel %vm4340_vm1, %v16340_v21, 0.0  ;;  %v7668_v4 = vsel %vm4340_vm1, %v16334_v22, 0.0  ;;  %v18424_v21 = vld [vmem:[#allocation29_spill] sm:$0xff] }
 0x3e5   : > { %13244 = vpow2.f32 %v7443_v44  ;;  %18393 = vst [vmem:[#allocation100_spill] sm:$0xff] %v16343_v54  ;;  %v3437_v41 = vcombine.high %v18425_v32, %v18424_v21 }
 0x3e6   : > { %v7451_v60 = vmul.f32 1.442695, %v7352_v49  ;;  %v7590_v49 = vsel %vm4340_vm1, %v16343_v54, 0.0  ;;  %v18421_v54 = vld [vmem:[#allocation25_spill] sm:$0xff] }
 0x3e7   : > { %7645 = vadd.xlane.f32.xlu0 %v7644_v38  ;;  %7657 = vadd.xlane.f32.xlu1 %v7656_v36  ;;  %v7298_v16 = vpop.xlane.xlu0 %7297 }
 0x3e8   : > { %v7374_v24 = vsub.f32 %v16001_v1, %v7298_v16 }
 0x3ea   : > { %v7495_v7 = vmul.f32 1.442695, %v7374_v24  ;;  %v16349_v38 = vpop.eup %13238 }
 0x3eb   : > { %7576 = vadd.xlane.f32.xlu0 %v7575_v45  ;;  %7654 = vadd.xlane.f32.xlu1 %v7653_v19  ;;  %18394 = vst [vmem:[#allocation101_spill] sm:$0xff] %v16349_v38  ;;  %v7229_v36 = vpop.xlane.xlu0 %7228  ;;  %v16352_v1 = vpop.eup %13240  ;;  %v7599_v45 = vsel %vm4340_vm1, %v16349_v38, 0.0 }
 0x3ec   : > { %13246 = vpow2.f32 %v7495_v7  ;;  %v7351_v0 = vsub.f32 %v15887_v50, %v7229_v36  ;;  %18395 = vst [vmem:[#allocation102_spill] sm:$0xff] %v16352_v1  ;;  %v7587_v50 = vsel %vm4340_vm1, %v16352_v1, 0.0  ;;  %v18422_v1 = vld [vmem:[#allocation43_spill] sm:$0xff] }
 0x3ed   : > { %13248 = vpow2.f32 %v7451_v60  ;;  %v3405_v5 = vcombine.high %v18423_v53, %v18422_v1  ;;  %v18429_v1 = vld [vmem:[#allocation5_spill] sm:$0xff] }
 0x3ee   : > { %v7449_v44 = vmul.f32 1.442695, %v7351_v0  ;;  %v16358_v19 = vpop.eup %13242 }
 0x3ef   : > { %7642 = vadd.xlane.f32.xlu0 %v7641_v30  ;;  %7669 = vadd.xlane.f32.xlu1 %v7668_v4  ;;  %18396 = vst [vmem:[#allocation103_spill] sm:$0xff] %v16358_v19  ;;  %v7295_v16 = vpop.xlane.xlu0 %7294  ;;  %v7665_v60 = vsel %vm4340_vm1, %v16358_v19, 0.0  ;;  %v16365_v30 = vpop.eup %13244 }
 0x3f0   : > { %v7373_v24 = vsub.f32 %v16005_v46, %v7295_v16  ;;  %13250 = vpow2.f32 %v7449_v44  ;;  %18397 = vst [vmem:[#allocation104_spill] sm:$0xff] %v16365_v30  ;;  %v7602_v46 = vsel %vm4340_vm1, %v16365_v30, 0.0 }
 0x3f2   : > { %v7493_v7 = vmul.f32 1.442695, %v7373_v24 }
 0x3f3   : > { %7591 = vadd.xlane.f32.xlu0 %v7590_v49  ;;  %7600 = vadd.xlane.f32.xlu1 %v7599_v45  ;;  %v7244_v4 = vpop.xlane.xlu0 %7243 }
 0x3f4   : > { %13252 = vpow2.f32 %v7493_v7  ;;  %v7356_v36 = vsub.f32 %v15899_v10, %v7244_v4 }
 0x3f6   : > { %v16368_v0 = vpop.eup %13246  ;;  %v7459_v49 = vmul.f32 1.442695, %v7356_v36 }
 0x3f7   : > { %7588 = vadd.xlane.f32.xlu0 %v7587_v50  ;;  %7666 = vadd.xlane.f32.xlu1 %v7665_v60  ;;  %18398 = vst [vmem:[#allocation105_spill] sm:$0xff] %v16368_v0  ;;  %v16372_v44 = vpop.eup %13248  ;;  %v16374_v45 = vpop.xlane.xlu0 %7309  ;;  %v7680_v16 = vsel %vm4340_vm1, %v16368_v0, 0.0 }
 0x3f8   : > { %18399 = vst [vmem:[#allocation106_spill] sm:$0xff] %v16372_v44  ;;  %13254 = vpow2.f32 %v7459_v49  ;;  %v7614_v10 = vsel %vm4340_vm1, %v16372_v44, 0.0 }
 0x3fa   : > { %v16380_v7 = vpop.eup %13250 }
 0x3fb   : > { %7603 = vadd.xlane.f32.xlu0 %v7602_v46  ;;  %7681 = vadd.xlane.f32.xlu1 %v7680_v16  ;;  %18400 = vst [vmem:[#allocation107_spill] sm:$0xff] %v16380_v7  ;;  %v7241_v50 = vpop.xlane.xlu0 %7240  ;;  %v7611_v0 = vsel %vm4340_vm1, %v16380_v7, 0.0 }
 0x3fc   : > { %v7355_v60 = vsub.f32 %v15905_v31, %v7241_v50 }
 0x3fe   : > { %v16383_v4 = vpop.eup %13252  ;;  %v7457_v36 = vmul.f32 1.442695, %v7355_v60 }
 0x3ff   : > { %7615 = vadd.xlane.f32.xlu0 %v7614_v10  ;;  %18401 = vst [vmem:[#allocation108_spill] sm:$0xff] %v16383_v4  ;;  %v16387_v49 = vpop.xlane.xlu0 %7306  ;;  %v7677_v16 = vsel %vm4340_vm1, %v16383_v4, 0.0  ;;  %v18404_v4 = vld [vmem:[#allocation27_spill] sm:$0xff] }
 0x400   : > { %v7514_v24 = vpop.xlane.xlu1 %7513  ;;  %7678 = vadd.xlane.f32.xlu1 %v7677_v16 }
 0x401   : > { %13256 = vrcp.f32 %v7514_v24 }
 0x402   : > { %v16391_v10 = vpop.eup %13254 }
 0x403   : > { %7612 = vadd.xlane.f32.xlu0 %v7611_v0  ;;  %18402 = vst [vmem:[#allocation109_spill] sm:$0xff] %v16391_v10  ;;  %v7256_v31 = vpop.xlane.xlu0 %7255  ;;  %v7626_v24 = vsel %vm4340_vm1, %v16391_v10, 0.0 }
 0x404   : > { %v7511_v46 = vpop.xlane.xlu1 %7510  ;;  %v7360_v50 = vsub.f32 %v15919_v26, %v7256_v31 }
 0x405   : > { %13258 = vrcp.f32 %v7511_v46 }
 0x406   : > { %13260 = vpow2.f32 %v7457_v36  ;;  %v7467_v60 = vmul.f32 1.442695, %v7360_v50  ;;  %v3456_v36 = vcombine.low %v18404_v4, %v18403_v55  ;;  %v18407_v50 = vld [vmem:[#allocation24_spill] sm:$0xff] }
 0x407   : > { %7627 = vadd.xlane.f32.xlu0 %v7626_v24  ;;  %v7253_v22 = vpop.xlane.xlu0 %7252  ;;  %v18406_v24 = vld [vmem:[#allocation26_spill] sm:$0xff] }
 0x408   : > { %13262 = vpow2.f32 %v7467_v60  ;;  %v7359_v0 = vsub.f32 %v15927_v6, %v7253_v22  ;;  %v3320_v60 = vcombine.low %v18407_v50, %v18406_v24  ;;  %v18408_v6 = vld [vmem:[#allocation42_spill] sm:$0xff] }
 0x40a   : > { %v7465_v44 = vmul.f32 1.442695, %v7359_v0  ;;  %v16410_v55 = vpack.c.bf16 %v3456_v36, %v3320_v60 }
 0x40b   : > { %v13257_v46 = vpop.eup %13256  ;;  %v7268_v30 = vpop.xlane.xlu0 %7267 }
 0x40c   : > { %v7766_v31 = vmul.f32 %v13257_v46, %v16077_v43  ;;  %13264 = vpow2.f32 %v7465_v44  ;;  %v7364_v22 = vsub.f32 %v18408_v6, %v7268_v30  ;;  %v18410_v43 = vld [vmem:[#allocation48_spill] sm:$0xff] }
 0x40f   : > { %v13259_v19 = vpop.eup %13258  ;;  %v7265_v4 = vpop.xlane.xlu0 %7264 }
 0x410   : > { %v16399_v16 = vpop.eup %13260  ;;  %v7765_v7 = vmul.f32 %v13259_v19, %v16085_v14  ;;  %v7475_v14 = vmul.f32 1.442695, %v7364_v22  ;;  %v18409_v19 = vld [vmem:[#allocation32_spill] sm:$0xff]  ;;  %v7363_v46 = vsub.f32 %v18410_v43, %v7265_v4 }
 0x411   : > { %18405 = vst [vmem:[#allocation44_spill] sm:$0xff] %v16399_v16  ;;  %v7623_v26 = vsel %vm4340_vm1, %v16399_v16, 0.0  ;;  %v18420_v16 = vld [vmem:[#allocation17_spill] sm:$0xff] }
 0x412   : > { %12589 = vmatprep.mubr.msk.f32.mxu0 %vm4340_vm1, %v7765_v7  ;;  %7624 = vadd.xlane.f32.xlu0 %v7623_v26  ;;  %13266 = vpow2.f32 %v7475_v14  ;;  %v16415_v0 = vpop.eup %13262  ;;  %v7473_v44 = vmul.f32 1.442695, %v7363_v46 }
 0x413   : > { %12590 = vmatmul.mubr.msk.f32.vlgmr.msra.gmra.mrb[50].mxu0 %vm4340_vm1, %v7766_v31  ;;  %18411 = vst [vmem:[#allocation27_spill] sm:$0xff] %v16415_v0  ;;  %v16417_v30 = vpop.xlane.xlu0 %7279  ;;  %v7638_v7 = vsel %vm4340_vm1, %v16415_v0, 0.0  ;;  %v18417_v0 = vld [vmem:[#allocation19_spill] sm:$0xff] }
 0x414   : > { %13020 = vmatpush3.bf16.msra.mxu0 %v18409_v19  ;;  %13268 = vpow2.f32 %v7473_v44 }
 0x415   : > { %13026 = vmatprep.subr.bf16.mxu0 %v16410_v55 }
 0x416   : > { %7639 = vadd.xlane.f32.xlu0 %v7638_v7  ;;  %v16421_v36 = vpop.eup %13264  ;;  %v18415_v7 = vld [vmem:[#allocation28_spill] sm:$0xff] }
 0x417   : > { %18412 = vst [vmem:[#allocation26_spill] sm:$0xff] %v16421_v36  ;;  %v16423_v26 = vpop.xlane.xlu0 %7276  ;;  %v7635_v31 = vsel %vm4340_vm1, %v16421_v36, 0.0  ;;  %v18418_v36 = vld [vmem:[#allocation21_spill] sm:$0xff] }
 0x418   : > { %v3269_v10 = vcombine.high %v18418_v36, %v18417_v0  ;;  %v18428_v0 = vld [vmem:[#allocation10_spill] sm:$0xff] }
 0x419   : > { %v3460_v36 = vcombine.low %v18428_v0, %v18427_v42  ;;  %v3461_v32 = vcombine.high %v18428_v0, %v18427_v42  ;;  %v18435_v42 = vld [vmem:[#allocation9_spill] sm:$0xff] }
 0x41a   : > { %7636 = vadd.xlane.f32.xlu0 %v7635_v31  ;;  %v18416_v31 = vld [vmem:[#allocation16_spill] sm:$0xff]  ;;  %v3596_v0 = vcombine.low %v18435_v42, %v18434_v2 }
 0x41b   : > { %v16429_v50 = vpop.xlane.xlu0 %7291  ;;  %v3468_v47 = vrot.slane %v3460_v36, %v18429_v1 }
 0x41c   : > { %v16427_v24 = vpop.eup %13266 }
 0x41d   : > { %18413 = vst [vmem:[#allocation24_spill] sm:$0xff] %v16427_v24  ;;  %v7650_v60 = vsel %vm4340_vm1, %v16427_v24, 0.0 }
 0x41e   : > { %7651 = vadd.xlane.f32.xlu0 %v7650_v60  ;;  %v16433_v6 = vpop.eup %13268  ;;  %v3301_v60 = vcombine.high %v18416_v31, %v18415_v7  ;;  %v18426_v7 = vld [vmem:[#allocation7_spill] sm:$0xff] }
 0x41f   : > { %18414 = vst [vmem:[#allocation42_spill] sm:$0xff] %v16433_v6  ;;  %v16435_v22 = vpop.xlane.xlu0 %7288  ;;  %v7647_v14 = vsel %vm4340_vm1, %v16433_v6, 0.0  ;;  %v3283_v9 = vrot.slane %v3269_v10, %v18426_v7  ;;  %v3451_v56 = vrot.slane %v3437_v41, %v18426_v7  ;;  %v18431_v10 = vld [vmem:[#allocation18_spill] sm:$0xff] }
 0x420   : > { %7648 = vadd.xlane.f32.xlu1 %v7647_v14  ;;  %v18419_v14 = vld [vmem:[#allocation6_spill] sm:$0xff]  ;;  %v3315_v31 = vrot.slane %v3301_v60, %v18426_v7  ;;  %v3419_v60 = vrot.slane %v3405_v5, %v18426_v7  ;;  %v3508_v12 = vcombine.low %v18431_v10, %v18430_v18  ;;  %v3597_v5 = vcombine.high %v18435_v42, %v18434_v2 }
 0x421   : > { %v3476_v38 = vcombine.low %v18420_v16, %v18419_v14  ;;  %v3477_v53 = vcombine.high %v18420_v16, %v18419_v14  ;;  %v3509_v16 = vcombine.high %v18431_v10, %v18430_v18  ;;  %v18433_v14 = vld [vmem:[#allocation22_spill] sm:$0xff]  ;;  %v3475_v10 = vrot.slane %v3461_v32, %v18429_v1 }
 0x422   : > { %v3322_v21 = vcombine.low %v3283_v9, %v3315_v31  ;;  %v3323_v18 = vcombine.high %v3283_v9, %v3315_v31  ;;  %v3458_v37 = vcombine.low %v3419_v60, %v3451_v56  ;;  %v3516_v23 = vrot.slane %v3508_v12, %v18429_v1 }
 0x423   : > { %v16439_v19 = vpop.xlane.xlu0 %7303  ;;  %v3484_v61 = vrot.slane %v3476_v38, %v18429_v1  ;;  %v18432_v38 = vld [vmem:[#allocation30_spill] sm:$0xff]  ;;  %v3491_v17 = vrot.slane %v3477_v53, %v18429_v1  ;;  %v3523_v9 = vrot.slane %v3509_v16, %v18429_v1  ;;  %v16509_v31 = vrot.slane %v3596_v0, %v18429_v1 }
 0x424   : > { %v3492_v29 = vcombine.low %v18433_v14, %v18432_v38  ;;  %v3493_v41 = vcombine.high %v18433_v14, %v18432_v38  ;;  %v18438_v38 = vld [vmem:[#allocation53_spill] sm:$0xff]  ;;  %v3459_v42 = vcombine.high %v3419_v60, %v3451_v56  ;;  %v16525_v0 = vpack.c.bf16 %v3458_v37, %v3322_v21  ;;  %v18443_v21 = vld [vmem:[#allocation38_spill] sm:$0xff] }
 0x425   : > { %v3524_v35 = vcombine.low %v3468_v47, %v3484_v61  ;;  %v3525_v58 = vcombine.high %v3468_v47, %v3484_v61  ;;  %v7368_v53 = vsub.f32 %v18438_v38, %v16417_v30  ;;  %v16512_v61 = vrot.slane %v3597_v5, %v18429_v1  ;;  %v18439_v30 = vld [vmem:[#allocation54_spill] sm:$0xff]  ;;  %v18441_v38 = vld [vmem:[#allocation39_spill] sm:$0xff] }
 0x426   : > { %v3500_v2 = vrot.slane %v3492_v29, %v18429_v1  ;;  %v3507_v47 = vrot.slane %v3493_v41, %v18429_v1  ;;  %v3540_v29 = vcombine.low %v3475_v10, %v3491_v17  ;;  %v3541_v32 = vcombine.high %v3475_v10, %v3491_v17 }
 0x427   : > { %v16441_v4 = vpop.xlane.xlu0 %7300  ;;  %v7367_v16 = vsub.f32 %v18439_v30, %v16423_v26  ;;  %v16528_v5 = vrot.slane %v3525_v58, %v18426_v7  ;;  %v7483_v17 = vmul.f32 1.442695, %v7368_v53  ;;  %v18442_v26 = vld [vmem:[#allocation20_spill] sm:$0xff] }
 0x428   : > { %v16443_v43 = vpop.xlane.xlu1 %7561  ;;  %v3556_v41 = vcombine.low %v3500_v2, %v3516_v23  ;;  %v3572_v60 = vcombine.low %v3507_v47, %v3523_v9  ;;  %v3573_v10 = vcombine.high %v3507_v47, %v3523_v9  ;;  %v3732_v37 = vcombine.low %v18442_v26, %v18441_v38  ;;  %v18444_v30 = vld [vmem:[#allocation36_spill] sm:$0xff] }
 0x429   : > { %v3612_v58 = vcombine.low %v18444_v30, %v18443_v21  ;;  %v3613_v39 = vcombine.high %v18444_v30, %v18443_v21  ;;  %v16548_v47 = vrot.slane %v3540_v29, %v18426_v7 }
 0x42a   : > { %v16566_v29 = vrot.slane %v3573_v10, %v18426_v7 }
 0x42b   : > { %v16445_v46 = vpop.xlane.xlu0 %7315 }
 0x42f   : > { %v16451_v24 = vpop.xlane.xlu0 %7312 }
 0x430   : > { %v16447_v44 = vpop.xlane.xlu1 %7558 }
 0x431   : > { %926 = vrot.lane.b32.xlu1 %v18421_v54, %s13429_s14 }
 0x434   : > { %v7526_v6 = vpop.xlane.xlu1 %7525  ;;  %962 = vrot.lane.b32.xlu0 %v18421_v54, %s13428_s13 }
 0x435   : > { %v16468_v57 = vpop.xlane.xlu0 %7549  ;;  %998 = vrot.lane.b32.xlu1 %v18421_v54, %s13430_s18  ;;  %13270 = vrcp.f32 %v7526_v6  ;;  %v3629_v6 = vcombine.high %v18437_v20, %v18436_v28  ;;  %v16518_v28 = vrot.slane %v3524_v35, %v18426_v7  ;;  %v16521_v20 = vrot.slane %v3628_v52, %v18429_v1 }
 0x436   : > { %v3557_v35 = vcombine.high %v3500_v2, %v3516_v23  ;;  %v3733_v23 = vcombine.high %v18442_v26, %v18441_v38  ;;  %v7481_v2 = vmul.f32 1.442695, %v7367_v16 }
 0x438   : > { %v16470_v25 = vpop.xlane.xlu1 %7573  ;;  %v16560_v38 = vrot.slane %v3557_v35, %v18426_v7  ;;  %v16582_v10 = vrot.slane %v3733_v23, %v18429_v1 }
 0x439   : > { %v16489_v54 = vpop.xlane.xlu0 %7546 }
 0x43c   : > { %v7523_v36 = vpop.xlane.xlu1 %7522 }
 0x43d   : > { %13272 = vrcp.f32 %v7523_v36  ;;  %v7520_v14 = vpop.xlane.xlu0 %7519  ;;  %v16531_v36 = vrot.slane %v3629_v6, %v18429_v1  ;;  %v16541_v6 = vpack.c.bf16 %v3459_v42, %v3323_v18  ;;  %v16553_v18 = vrot.slane %v3556_v41, %v18426_v7 }
 0x43e   : > { %13274 = vrcp.f32 %v7520_v14  ;;  %v18445_v14 = vld [vmem:[#allocation58_spill] sm:$0xff]  ;;  %v16556_v42 = vrot.slane %v3541_v32, %v18426_v7  ;;  %v3627_v41 = vrot.slane %v3613_v39, %v18429_v1 }
 0x43f   : > { %v13271_v53 = vpop.eup %13270  ;;  %v7372_v9 = vsub.f32 %v18445_v14, %v16429_v50  ;;  %v16563_v50 = vrot.slane %v3572_v60, %v18426_v7  ;;  %v7371_v60 = vsub.f32 %v15991_v34, %v16435_v22  ;;  %v3588_v39 = vcombine.low %v16518_v28, %v16553_v18  ;;  %v18467_v22 = vld [vmem:[#allocation85_spill] sm:$0xff] }
 0x440   : > { %v16515_v12 = vpop.xlane.xlu1 %7570  ;;  %v7770_v32 = vmul.f32 %v13271_v53, %v16149_v3  ;;  %v3590_v34 = vcombine.low %v16528_v5, %v16560_v38 }
 0x441   : > { %v7517_v56 = vpop.xlane.xlu0 %7516  ;;  %v7491_v35 = vmul.f32 1.442695, %v7372_v9  ;;  %v7489_v9 = vmul.f32 1.442695, %v7371_v60 }
 0x442   : > { %13276 = vrcp.f32 %v7517_v56 }
 0x443   : > { %13278 = vpow2.f32 %v7483_v17  ;;  %v18446_v17 = vld [vmem:[#allocation49_spill] sm:$0xff] }
 0x444   : > { %v16533_v52 = vpop.xlane.xlu1 %7585  ;;  %13280 = vpow2.f32 %v7481_v2  ;;  %v3676_v2 = vcombine.low %v16512_v61, %v3627_v41 }
 0x445   : > { %18440 = vst [vmem:[#allocation32_spill] sm:$0xff] %v16533_v52  ;;  %v7379_v52 = vsub.f32 %v16029_v59, %v16451_v24  ;;  %v7532_v40 = vpop.xlane.xlu0 %7531  ;;  %v16569_v59 = vrot.slane %v3732_v37, %v18429_v1  ;;  %v3620_v24 = vrot.slane %v3612_v58, %v18429_v1 }
 0x446   : > { %13282 = vrcp.f32 %v7532_v40 }
 0x447   : > { %v13273_v56 = vpop.eup %13272  ;;  %v7505_v37 = vmul.f32 1.442695, %v7379_v52  ;;  %v3660_v40 = vcombine.low %v16509_v31, %v3620_v24  ;;  %v3661_v58 = vcombine.high %v16509_v31, %v3620_v24  ;;  %v7376_v31 = vsub.f32 %v16007_v8, %v16439_v19  ;;  %v18448_v24 = vld [vmem:[#allocation51_spill] sm:$0xff] }
 0x448   : > { %v7769_v16 = vmul.f32 %v13273_v56, %v16173_v13  ;;  %v18447_v13 = vld [vmem:[#allocation40_spill] sm:$0xff]  ;;  %v16578_v21 = vpop.xlane.xlu1 %7582  ;;  %v13275_v52 = vpop.eup %13274  ;;  %v3677_v56 = vcombine.high %v16512_v61, %v3627_v41  ;;  %v18455_v19 = vld [vmem:[#allocation55_spill] sm:$0xff] }
 0x449   : > { %v3644_v26 = vcombine.low %v18447_v13, %v18446_v17  ;;  %v7529_v3 = vpop.xlane.xlu0 %7528  ;;  %v3645_v53 = vcombine.high %v18447_v13, %v18446_v17  ;;  %v16623_v8 = vrot.slane %v3660_v40, %v18426_v7  ;;  %v18450_v41 = vld [vmem:[#allocation56_spill] sm:$0xff]  ;;  %v7499_v40 = vmul.f32 1.442695, %v7376_v31 }
 0x44a   : > { %12603 = vmatprep.mubr.msk.f32.mxu0 %vm4340_vm1, %v7769_v16  ;;  %13284 = vrcp.f32 %v7529_v3 }
 0x44b   : > { %12604 = vmatmul.mubr.msk.f32.vlgmr.msra.gmra.mrb[52].mxu0 %vm4340_vm1, %v7770_v32  ;;  %v16603_v14 = vrot.slane %v3644_v26, %v18429_v1  ;;  %13286 = vpow2.f32 %v7491_v35  ;;  %v18449_v32 = vld [vmem:[#allocation47_spill] sm:$0xff]  ;;  %v7768_v26 = vmul.f32 %v13275_v52, %v16177_v62  ;;  %v16619_v61 = vrot.slane %v3645_v53, %v18429_v1 }
 0x44c   : > { %13028 = vmatpush3.bf16.msra.mxu0 %v16410_v55  ;;  %v13277_v23 = vpop.eup %13276  ;;  %13288 = vpow2.f32 %v7505_v37  ;;  %v3780_v17 = vcombine.low %v18449_v32, %v18448_v24  ;;  %v3781_v13 = vcombine.high %v18449_v32, %v18448_v24  ;;  %v7538_v3 = vpop.xlane.xlu1 %7537  ;;  %v18451_v37 = vld [vmem:[#allocation45_spill] sm:$0xff]  ;;  %v16636_v53 = vrot.slane %v3676_v2, %v18426_v7  ;;  %v18456_v55 = vld [vmem:[#allocation66_spill] sm:$0xff] }
 0x44d   : > { %13034 = vmatprep.subr.bf16.mxu0 %v16525_v0  ;;  %v7767_v16 = vmul.f32 %v13277_v23, %v16188_v51  ;;  %v16616_v60 = vpop.eup %13278  ;;  %v16626_v51 = vrot.slane %v3661_v58, %v18426_v7  ;;  %v3692_v62 = vcombine.low %v16521_v20, %v16603_v14  ;;  %v3868_v52 = vcombine.low %v18451_v37, %v18450_v41  ;;  %v18452_v23 = vld [vmem:[#allocation4_spill] sm:$0xff] }
 0x44e   : > { %13290 = vpow2.f32 %v7489_v9  ;;  %v7375_v58 = vsub.f32 %v16013_v15, %v16441_v4  ;;  %v16645_v24 = vpop.eup %13280  ;;  %v16648_v9 = vrot.slane %v3780_v17, %v18429_v1  ;;  %v16651_v32 = vrot.slane %v3781_v13, %v18429_v1  ;;  %v18453_v15 = vld [vmem:[#allocation13_spill] sm:$0xff] }
 0x44f   : > { %12596 = vmatprep.mubr.msk.f32.mxu1 %vm4340_vm1, %v7767_v16  ;;  %13292 = vrcp.f32 %v16489_v54  ;;  %v16643_v16 = vrot.slane %v3677_v56, %v18426_v7  ;;  %v7662_v54 = vsel %vm4340_vm1, %v16616_v60, 0.0  ;;  %v3693_v56 = vcombine.high %v16521_v20, %v16603_v14 }
 0x450   : > { %12597 = vmatmul.mubr.msk.f32.vlgmr.msra.gmra.mrb[38].mxu1 %vm4340_vm1, %v7768_v26  ;;  %13294 = vrcp.f32 %v7538_v3  ;;  %v16653_v2 = vpop.xlane.xlu0 %7597  ;;  %v13283_v4 = vpop.eup %13282  ;;  %v3708_v17 = vcombine.low %v16531_v36, %v16619_v61  ;;  %v3869_v13 = vcombine.high %v18451_v37, %v18450_v41  ;;  %v16665_v26 = vrot.slane %v3868_v52, %v18429_v1 }
 0x451   : > { %13024 = vmatpush3.bf16.msra.mxu1 %v18452_v23  ;;  %v18454_v23 = vld [vmem:[#allocation59_spill] sm:$0xff]  ;;  %v7377_v30 = vsub.f32 %v18456_v55, %v16387_v49  ;;  %v16672_v20 = vrot.slane %v3692_v62, %v18426_v7  ;;  %v7497_v41 = vmul.f32 1.442695, %v7375_v58  ;;  %v3709_v52 = vcombine.high %v16531_v36, %v16619_v61 }
 0x452   : > { %13030 = vmatprep.subr.bf16.mxu1 %v18453_v15  ;;  %v3748_v35 = vcombine.low %v18455_v19, %v18454_v23  ;;  %v3749_v14 = vcombine.high %v18455_v19, %v18454_v23  ;;  %v7659_v55 = vsel %vm4340_vm1, %v16645_v24, 0.0  ;;  %v7772_v19 = vmul.f32 %v13283_v4, %v16201_v48 }
 0x453   : > { %7663 = vadd.xlane.f32.xlu0 %v7662_v54  ;;  %v16699_v36 = vrot.slane %v3708_v17, %v18426_v7  ;;  %v7501_v4 = vmul.f32 1.442695, %v7377_v30  ;;  %v18461_v17 = vld [vmem:[#allocation65_spill] sm:$0xff] }
 0x454   : > { %v7535_v31 = vpop.xlane.xlu1 %7534  ;;  %v13285_v3 = vpop.eup %13284  ;;  %v16702_v61 = vrot.slane %v3748_v35, %v18429_v1  ;;  %v7378_v23 = vsub.f32 %v18461_v17, %v16374_v45  ;;  %v16729_v45 = vrot.slane %v3709_v52, %v18426_v7  ;;  %v18464_v17 = vld [vmem:[#allocation71_spill] sm:$0xff] }
 0x455   : > { %13296 = vrcp.f32 %v7535_v31  ;;  %v7771_v37 = vmul.f32 %v13285_v3, %v16214_v63  ;;  %v16677_v31 = vpop.eup %13286  ;;  %v18460_v63 = vld [vmem:[#allocation60_spill] sm:$0xff]  ;;  %v16710_v3 = vrot.slane %v3869_v13, %v18429_v1 }
 0x456   : > { %13298 = vpow2.f32 %v7499_v40  ;;  %18457 = vst [vmem:[#allocation48_spill] sm:$0xff] %v16677_v31  ;;  %v16689_v62 = vpop.eup %13288  ;;  %v18459_v40 = vld [vmem:[#allocation62_spill] sm:$0xff]  ;;  %v7674_v13 = vsel %vm4340_vm1, %v16677_v31, 0.0  ;;  %v18468_v31 = vcombine.low %v16548_v47, %v16563_v50 }
 0x457   : > { %13300 = vrcp.f32 %v16468_v57  ;;  %18458 = vst [vmem:[#allocation28_spill] sm:$0xff] %v16689_v62  ;;  %v3900_v58 = vcombine.low %v18460_v63, %v18459_v40  ;;  %7660 = vadd.xlane.f32.xlu0 %v7659_v55  ;;  %12610 = vmatprep.mubr.msk.f32.mxu1 %vm4340_vm1, %v7771_v37  ;;  %v16696_v57 = vrot.slane %v3693_v56, %v18426_v7 }
 0x458   : > { %v16682_v54 = vpop.xlane.xlu1 %7609  ;;  %v16684_v49 = vpop.xlane.xlu0 %7594  ;;  %13302 = vrcp.f32 %v16447_v44  ;;  %v3901_v48 = vcombine.high %v18460_v63, %v18459_v40  ;;  %12611 = vmatmul.mubr.msk.f32.vlgmr.msra.gmra.mrb[40].mxu1 %vm4340_vm1, %v7772_v19  ;;  %v3724_v44 = vcombine.low %v16623_v8, %v16672_v20  ;;  %v16713_v56 = vrot.slane %v3749_v14, %v18429_v1 }
 0x459   : > { %13304 = vpow2.f32 %v7497_v41  ;;  %13032 = vmatpush3.bf16.msra.mxu1 %v18453_v15  ;;  %v16718_v35 = vpop.eup %13290  ;;  %v7695_v14 = vsel %vm4340_vm1, %v16689_v62, 0.0  ;;  %v16732_v15 = vrot.slane %v3900_v58, %v18429_v1  ;;  %v3728_v55 = vcombine.low %v16636_v53, %v16699_v36 }
 0x45a   : > { %18462 = vst [vmem:[#allocation16_spill] sm:$0xff] %v16718_v35  ;;  %13306 = vrcp.f32 %v16443_v43  ;;  %13038 = vmatprep.subr.bf16.mxu1 %v16541_v6  ;;  %v13293_v41 = vpop.eup %13292  ;;  %7696 = vadd.xlane.f32.xlu1 %v7695_v14  ;;  %v3726_v43 = vcombine.low %v16626_v51, %v16696_v57  ;;  %v3796_v40 = vcombine.low %v16569_v59, %v16702_v61 }
 0x45b   : > { %13308 = vrcp.f32 %v16515_v12  ;;  %7675 = vadd.xlane.f32.xlu0 %v7674_v13  ;;  %v13295_v19 = vpop.eup %13294  ;;  %v16742_v52 = vrot.slane %v3901_v48, %v18429_v1  ;;  %v13041_v12 = vpack.c.bf16 %v3724_v44, %v3588_v39  ;;  %v3797_v58 = vcombine.high %v16569_v59, %v16702_v61  ;;  %v18463_v61 = vld [vmem:[#allocation73_spill] sm:$0xff] }
 0x45c   : > { %v16721_v30 = vpop.xlane.xlu1 %7606  ;;  %v7544_v37 = vpop.xlane.xlu0 %7543  ;;  %13310 = vpow2.f32 %v7501_v4  ;;  %v7503_v13 = vmul.f32 1.442695, %v7378_v23  ;;  %v7380_v14 = vsub.f32 %v16025_v11, %v16445_v46  ;;  %v7671_v44 = vsel %vm4340_vm1, %v16718_v35, 0.0 }
 0x45d   : > { %13312 = vrcp.f32 %v16470_v25  ;;  %v3916_v23 = vcombine.low %v18464_v17, %v18463_v61  ;;  %v7774_v25 = vmul.f32 %v13295_v19, %v16221_v33  ;;  %v16768_v11 = vpack.c.bf16 %v3726_v43, %v3590_v34  ;;  %v18469_v19 = vld [vmem:[#allocation69_spill] sm:$0xff] }
 0x45e   : > { %13314 = vrcp.f32 %v16578_v21  ;;  %v18465_v21 = vld [vmem:[#allocation63_spill] sm:$0xff]  ;;  %v7777_v62 = vmul.f32 %v13293_v41, %v18467_v22  ;;  %v16777_v33 = vpack.c.bf16 %v3728_v55, %v18468_v31  ;;  %v3725_v34 = vcombine.high %v16623_v8, %v16672_v20  ;;  %v18471_v22 = vld [vmem:[#allocation32_spill] sm:$0xff] }
 0x45f   : > { %v13297_v63 = vpop.eup %13296  ;;  %13316 = vrcp.f32 %v7544_v37  ;;  %7672 = vadd.xlane.f32.xlu0 %v7671_v44  ;;  %v18470_v44 = vld [vmem:[#allocation67_spill] sm:$0xff]  ;;  %v3730_v43 = vcombine.low %v16643_v16, %v16729_v45  ;;  %v16796_v8 = vrot.slane %v3916_v23, %v18429_v1 }
 0x460   : > { %v16755_v48 = vpop.xlane.xlu1 %7621  ;;  %v7541_v4 = vpop.xlane.xlu0 %7540  ;;  %v7773_v39 = vmul.f32 %v13297_v63, %v16241_v27  ;;  %v18466_v27 = vld [vmem:[#allocation61_spill] sm:$0xff]  ;;  %v3884_v35 = vcombine.low %v18470_v44, %v18469_v19  ;;  %v18472_v20 = vld [vmem:[#allocation83_spill] sm:$0xff] }
 0x461   : > { %v16760_v59 = vpop.eup %13298  ;;  %v3764_v63 = vcombine.low %v18466_v27, %v18465_v21  ;;  %13318 = vrcp.f32 %v7541_v4  ;;  %v7507_v4 = vmul.f32 1.442695, %v7380_v14  ;;  %v16800_v14 = vrot.slane %v3796_v40, %v18426_v7 }
 0x462   : > { %v13301_v46 = vpop.eup %13300  ;;  %12617 = vmatprep.mubr.msk.f32.mxu0 %vm4340_vm1, %v7773_v39  ;;  %13320 = vpow2.f32 %v7503_v13  ;;  %v7686_v55 = vsel %vm4340_vm1, %v16760_v59, 0.0  ;;  %v3727_v13 = vcombine.high %v16626_v51, %v16696_v57  ;;  %v16807_v57 = vrot.slane %v3797_v58, %v18426_v7 }
 0x463   : > { %v13303_v37 = vpop.eup %13302  ;;  %12618 = vmatmul.mubr.msk.f32.vlgmr.msra.gmra.mrb[54].mxu0 %vm4340_vm1, %v7774_v25  ;;  %13322 = vrcp.f32 %v18471_v22  ;;  %7687 = vadd.xlane.f32.xlu0 %v7686_v55  ;;  %v16803_v25 = vrot.slane %v3764_v63, %v18429_v1  ;;  %v18473_v22 = vld [vmem:[#allocation82_spill] sm:$0xff]  ;;  %v16812_v55 = vrot.slane %v3884_v35, %v18429_v1  ;;  %v3729_v40 = vcombine.high %v16636_v53, %v16699_v36  ;;  %v18495_v36 = vld [vmem:[#allocation41_spill] sm:$0xff] }
 0x464   : > { %13036 = vmatpush3.bf16.msra.mxu0 %v16525_v0  ;;  %v7553_v31 = vpop.xlane.xlu1 %7552  ;;  %12631 = vmatprep.mubr.msk.f32.mxu0 %vm4340_vm1, %v7777_v62  ;;  %v7556_v41 = vpop.xlane.xlu0 %7555  ;;  %v7778_v0 = vmul.f32 %v13301_v46, %v18472_v20  ;;  %v7781_v51 = vmul.f32 %v13303_v37, %v18473_v22  ;;  %v3917_v58 = vcombine.high %v18464_v17, %v18463_v61 }
 0x465   : > { %v16793_v39 = vpop.eup %13304  ;;  %13042 = vmatprep.subr.bf16.mxu0 %v13041_v12  ;;  %13324 = vrcp.f32 %v7553_v31  ;;  %v3765_v31 = vcombine.high %v18466_v27, %v18465_v21  ;;  %v18476_v61 = vcombine.low %v16556_v42, %v16566_v29 }
 0x466   : > { %v13307_v62 = vpop.eup %13306  ;;  %13326 = vrcp.f32 %v7556_v41  ;;  %v7683_v35 = vsel %vm4340_vm1, %v16793_v39, 0.0  ;;  %v3964_v41 = vcombine.low %v16732_v15, %v16796_v8 }
 0x467   : > { %v13309_v23 = vpop.eup %13308  ;;  %13328 = vrcp.f32 %v16684_v49  ;;  %12632 = vmatmul.mubr.msk.f32.vlgmr.msra.gmra.mrb[56].mxu0 %vm4340_vm1, %v7778_v0  ;;  %v18474_v49 = vcombine.high %v16518_v28, %v16553_v18  ;;  %7684 = vadd.xlane.f32.xlu0 %v7683_v35  ;;  %v3828_v28 = vcombine.low %v16803_v25, %v16648_v9  ;;  %v18477_v18 = vld [vmem:[#allocation86_spill] sm:$0xff]  ;;  %v18481_v35 = vld [vmem:[#allocation92_spill] sm:$0xff] }
 0x468   : > { %v16818_v46 = vpop.eup %13310  ;;  %13330 = vpow2.f32 %v7507_v4  ;;  %13044 = vmatpush3.bf16.msra.mxu0 %v13041_v12  ;;  %v7619_v63 = vpop.xlane.xlu1 %7618  ;;  %12645 = vmatprep.mubr.msk.f32.mxu0 %vm4340_vm1, %v7781_v51  ;;  %v18475_v12 = vld [vmem:[#allocation81_spill] sm:$0xff]  ;;  %v16838_v4 = vpack.c.bf16 %v3730_v43, %v18476_v61  ;;  %v3829_v43 = vcombine.high %v16803_v25, %v16648_v9  ;;  %v3885_v51 = vcombine.high %v18470_v44, %v18469_v19  ;;  %v18479_v25 = vld [vmem:[#allocation11_spill] sm:$0xff] }
 0x469   : > { %v7568_v21 = vpop.xlane.xlu0 %7567  ;;  %v16828_v27 = vpack.c.bf16 %v3725_v34, %v18474_v49  ;;  %v13313_v37 = vpop.eup %13312  ;;  %13332 = vrcp.f32 %v16653_v2  ;;  %13050 = vmatprep.subr.bf16.mxu0 %v16768_v11  ;;  %v7782_v17 = vmul.f32 %v13307_v62, %v18475_v12  ;;  %v7785_v34 = vmul.f32 %v13309_v23, %v18477_v18  ;;  %v18483_v18 = vld [vmem:[#allocation95_spill] sm:$0xff] }
 0x46a   : > { %v13315_v20 = vpop.eup %13314  ;;  %13334 = vrcp.f32 %v16721_v30  ;;  %v18478_v2 = vcombine.high %v16528_v5, %v16560_v38  ;;  %v16850_v62 = vrot.slane %v3765_v31, %v18429_v1  ;;  %v3932_v30 = vcombine.low %v16665_v26, %v16812_v55 }
 0x46b   : > { %v13317_v22 = vpop.eup %13316  ;;  %12646 = vmatmul.mubr.msk.f32.vlgmr.msra.gmra.mrb[58].mxu0 %vm4340_vm1, %v7782_v17  ;;  %v16860_v5 = vrot.slane %v3917_v58, %v18429_v1  ;;  %v3965_v38 = vcombine.high %v16732_v15, %v16796_v8  ;;  %13336 = vrcp.f32 %v16682_v54  ;;  %v7689_v44 = vsel %vm4340_vm1, %v16818_v46, 0.0  ;;  %v18480_v15 = vld [vmem:[#allocation84_spill] sm:$0xff] }
 0x46c   : > { %v16847_v0 = vpack.c.bf16 %v3727_v13, %v18478_v2  ;;  %v13319_v23 = vpop.eup %13318  ;;  %13052 = vmatpush3.bf16.msra.mxu0 %v16768_v11  ;;  %v7634_v9 = vpop.xlane.xlu1 %7633  ;;  %12659 = vmatprep.mubr.msk.f32.mxu0 %vm4340_vm1, %v7785_v34  ;;  %13338 = vrcp.f32 %v7568_v21  ;;  %v7786_v8 = vmul.f32 %v13313_v37, %v18480_v15  ;;  %v16875_v54 = vrot.slane %v3964_v41, %v18426_v7  ;;  %v18482_v37 = vld [vmem:[#allocation88_spill] sm:$0xff] }
 0x46d   : > { %v7565_v19 = vpop.xlane.xlu0 %7564  ;;  %v16869_v13 = vpop.eup %13320  ;;  %13058 = vmatprep.subr.bf16.mxu0 %v16777_v33  ;;  %7690 = vadd.xlane.f32.xlu0 %v7689_v44  ;;  %v7775_v31 = vmul.f32 %v13319_v23, %v18479_v25  ;;  %v3933_v58 = vcombine.high %v16665_v26, %v16812_v55  ;;  %v7776_v49 = vmul.f32 %v13317_v22, %v18481_v35 }
 0x46e   : > { %v13323_v11 = vpop.eup %13322  ;;  %13340 = vrcp.f32 %v7565_v19  ;;  %v16881_v12 = vrot.slane %v3828_v28, %v18426_v7  ;;  %v16884_v17 = vrot.slane %v3885_v51, %v18429_v1  ;;  %v7789_v41 = vmul.f32 %v13315_v20, %v18482_v37 }
 0x46f   : > { %v13325_v21 = vpop.eup %13324  ;;  %13342 = vrcp.f32 %v7619_v63  ;;  %12624 = vmatprep.mubr.msk.f32.mxu1 %vm4340_vm1, %v7775_v31  ;;  %12660 = vmatmul.mubr.msk.f32.vlgmr.msra.gmra.mrb[60].mxu0 %vm4340_vm1, %v7786_v8  ;;  %v16890_v61 = vrot.slane %v3932_v30, %v18426_v7  ;;  %v16896_v63 = vrot.slane %v3829_v43, %v18426_v7  ;;  %v16899_v2 = vrot.slane %v3965_v38, %v18426_v7 }
 0x470   : > { %v13327_v26 = vpop.eup %13326  ;;  %12625 = vmatmul.mubr.msk.f32.vlgmr.msra.gmra.mrb[42].mxu1 %vm4340_vm1, %v7776_v49  ;;  %13060 = vmatpush3.bf16.msra.mxu0 %v16777_v33  ;;  %v7631_v55 = vpop.xlane.xlu1 %7630  ;;  %v7779_v34 = vmul.f32 %v13325_v21, %v18483_v18  ;;  %v3980_v20 = vcombine.low %v16742_v52, %v16860_v5  ;;  %13344 = vrcp.f32 %v16755_v48  ;;  %v18484_v33 = vld [vmem:[#allocation94_spill] sm:$0xff]  ;;  %v7692_v23 = vsel %vm4340_vm1, %v16869_v13, 0.0  ;;  %v18485_v48 = vld [vmem:[#allocation87_spill] sm:$0xff] }
 0x471   : > { %v7580_v28 = vpop.xlane.xlu0 %7579  ;;  %v13329_v22 = vpop.eup %13328  ;;  %13040 = vmatpush3.bf16.msra.mxu1 %v16541_v6  ;;  %12673 = vmatprep.mubr.msk.f32.mxu0 %vm4340_vm1, %v7789_v41  ;;  %v7780_v51 = vmul.f32 %v13327_v26, %v18484_v33  ;;  %v3996_v30 = vcombine.low %v16890_v61, %v16875_v54  ;;  %13346 = vrcp.f32 %v7631_v55  ;;  %v7790_v38 = vmul.f32 %v13323_v11, %v18485_v48  ;;  %v18488_v55 = vld [vmem:[#allocation93_spill] sm:$0xff] }
 0x472   : > { %v16909_v43 = vpop.eup %13330  ;;  %13046 = vmatprep.subr.bf16.mxu1 %v16828_v27  ;;  %13066 = vmatprep.subr.bf16.mxu0 %v16838_v4  ;;  %v16917_v6 = vrot.slane %v3933_v58, %v18426_v7  ;;  %v3844_v44 = vcombine.low %v16850_v62, %v16651_v32  ;;  %v3948_v25 = vcombine.low %v16710_v3, %v16884_v17  ;;  %v18486_v58 = vld [vmem:[#allocation91_spill] sm:$0xff]  ;;  %13348 = vrcp.f32 %v7634_v9 }
 0x473   : > { %v13333_v19 = vpop.eup %13332  ;;  %7693 = vadd.xlane.f32.xlu0 %v7692_v23  ;;  %12638 = vmatprep.mubr.msk.f32.mxu1 %vm4340_vm1, %v7779_v34  ;;  %v3860_v31 = vcombine.low %v16800_v14, %v16881_v12  ;;  %v3981_v8 = vcombine.high %v16742_v52, %v16860_v5  ;;  %v7793_v35 = vmul.f32 %v13329_v22, %v18486_v58  ;;  %13350 = vrcp.f32 %v7580_v28 }
 0x474   : > { %v13335_v15 = vpop.eup %13334  ;;  %12639 = vmatmul.mubr.msk.f32.vlgmr.msra.gmra.mrb[44].mxu1 %vm4340_vm1, %v7780_v51  ;;  %12674 = vmatmul.mubr.msk.f32.vlgmr.msra.gmra.mrb[62].mxu0 %vm4340_vm1, %v7790_v38  ;;  %v16930_v11 = vpop.xlane.xlu1 %7657  ;;  %v3998_v21 = vcombine.low %v16917_v6, %v16899_v2  ;;  %v3845_v37 = vcombine.high %v16850_v62, %v16651_v32  ;;  %v16940_v5 = vrot.slane %v3980_v20, %v18426_v7  ;;  %v7698_v32 = vsel %vm4340_vm1, %v16909_v43, 0.0  ;;  %v18487_v62 = vld [vmem:[#allocation89_spill] sm:$0xff] }
 0x475   : > { %v7646_v49 = vpop.xlane.xlu0 %7645  ;;  %13048 = vmatpush3.bf16.msra.mxu1 %v16828_v27  ;;  %13068 = vmatpush3.bf16.msra.mxu0 %v16838_v4  ;;  %v13073_v52 = vpack.c.bf16 %v3996_v30, %v3860_v31  ;;  %v13337_v41 = vpop.eup %13336  ;;  %v3949_v26 = vcombine.high %v16710_v3, %v16884_v17  ;;  %v7794_v9 = vmul.f32 %v13333_v19, %v18487_v62  ;;  %v18490_v19 = vld [vmem:[#allocation57_spill] sm:$0xff] }
 0x476   : > { %13054 = vmatprep.subr.bf16.mxu1 %v16847_v0  ;;  %12687 = vmatprep.mubr.msk.f32.mxu0 %vm4340_vm1, %v7793_v35  ;;  %v3862_v27 = vcombine.low %v16807_v57, %v16896_v63  ;;  %v13339_v4 = vpop.eup %13338  ;;  %v7797_v18 = vmul.f32 %v13335_v15, %v18488_v55  ;;  %v16953_v34 = vrot.slane %v3844_v44, %v18426_v7  ;;  %v18491_v15 = vld [vmem:[#allocation90_spill] sm:$0xff] }
 0x477   : > { %13074 = vmatprep.subr.bf16.mxu0 %v13073_v52  ;;  %7699 = vadd.xlane.f32.xlu0 %v7698_v32  ;;  %v16956_v3 = vrot.slane %v3948_v25, %v18426_v7  ;;  %v3813_v22 = vcombine.high %v16582_v10, %v16713_v56  ;;  %v18489_v30 = vcombine.low %v16582_v10, %v16713_v56  ;;  %v18492_v56 = vld [vmem:[#allocation50_spill] sm:$0xff] }
 0x478   : > { %v13341_v17 = vpop.eup %13340  ;;  %12688 = vmatmul.mubr.msk.f32.vlgmr.msra.gmra.mrb[64].mxu0 %vm4340_vm1, %v7794_v9  ;;  %v7655_v20 = vpop.xlane.xlu1 %7654  ;;  %v13081_v33 = vpack.c.bf16 %v3998_v21, %v3862_v27  ;;  %v16968_v48 = vrot.slane %v3981_v8, %v18426_v7  ;;  %v16975_v31 = vrot.slane %v3845_v37, %v18426_v7  ;;  %v7798_v10 = vmul.f32 %v13337_v41, %v18491_v15  ;;  %v18496_v27 = vld [vmem:[#allocation46_spill] sm:$0xff] }
 0x479   : > { %v7577_v51 = vpop.xlane.xlu0 %7576  ;;  %v16965_v23 = vrot.slane %v18489_v30, %v18426_v7  ;;  %v13343_v38 = vpop.eup %13342  ;;  %13076 = vmatpush3.bf16.msra.mxu0 %v13073_v52  ;;  %12701 = vmatprep.mubr.msk.f32.mxu0 %vm4340_vm1, %v7797_v18  ;;  %v7783_v44 = vmul.f32 %v13341_v17, %v18490_v19  ;;  %v4000_v25 = vcombine.low %v16956_v3, %v16940_v5  ;;  %v18497_v17 = vld [vmem:[#allocation31_spill] sm:$0xff] }
 0x47a   : > { %13082 = vmatprep.subr.bf16.mxu0 %v13081_v33  ;;  %13352 = vrcp.f32 %v7577_v51  ;;  %v7784_v8 = vmul.f32 %v13339_v4, %v18492_v56  ;;  %v16980_v58 = vrot.slane %v3949_v26, %v18426_v7  ;;  %v13345_v28 = vpop.eup %13344  ;;  %v18493_v35 = vcombine.high %v16548_v47, %v16563_v50  ;;  %v18494_v26 = vld [vmem:[#allocation52_spill] sm:$0xff] }
 0x47b   : > { %12652 = vmatprep.mubr.msk.f32.mxu1 %vm4340_vm1, %v7783_v44  ;;  %v3864_v37 = vcombine.low %v16965_v23, %v16953_v34  ;;  %v13347_v52 = vpop.eup %13346  ;;  %13354 = vrcp.f32 %v7646_v49  ;;  %v7801_v32 = vmul.f32 %v13343_v38, %v18494_v26  ;;  %v16997_v47 = vrot.slane %v3813_v22, %v18426_v7  ;;  %v18498_v38 = vld [vmem:[#allocation97_spill] sm:$0xff] }
 0x47c   : > { %v13061_v21 = vpack.c.bf16 %v3729_v40, %v18493_v35  ;;  %12653 = vmatmul.mubr.msk.f32.vlgmr.msra.gmra.mrb[46].mxu1 %vm4340_vm1, %v7784_v8  ;;  %12702 = vmatmul.mubr.msk.f32.vlgmr.msra.gmra.mrb[66].mxu0 %vm4340_vm1, %v7798_v10  ;;  %v16993_v41 = vpop.xlane.xlu1 %7669  ;;  %v4002_v50 = vcombine.low %v16980_v58, %v16968_v48  ;;  %13356 = vrcp.f32 %v7655_v20  ;;  %v7802_v40 = vmul.f32 %v13345_v28, %v18495_v36  ;;  %v13349_v9 = vpop.eup %13348  ;;  %v18502_v26 = vld [vmem:[#allocation33_spill] sm:$0xff]  ;;  %v18503_v36 = vld [vmem:[#allocation102_spill] sm:$0xff] }
 0x47d   : > { %v7643_v62 = vpop.xlane.xlu0 %7642  ;;  %13056 = vmatpush3.bf16.msra.mxu1 %v16847_v0  ;;  %13084 = vmatpush3.bf16.msra.mxu0 %v13081_v33  ;;  %v13089_v53 = vpack.c.bf16 %v4000_v25, %v3864_v37  ;;  %v3866_v49 = vcombine.low %v16997_v47, %v16975_v31  ;;  %v7805_v4 = vmul.f32 %v13347_v52, %v18496_v27  ;;  %v13351_v20 = vpop.eup %13350  ;;  %v18499_v25 = vld [vmem:[#allocation3_spill] sm:$0xff] }
 0x47e   : > { %13062 = vmatprep.subr.bf16.mxu1 %v13061_v21  ;;  %12715 = vmatprep.mubr.msk.f32.mxu0 %vm4340_vm1, %v7801_v32  ;;  %13358 = vrcp.f32 %v7643_v62  ;;  %v7806_v22 = vmul.f32 %v13349_v9, %v18497_v17  ;;  %v3731_v30 = vcombine.high %v16643_v16, %v16729_v45  ;;  %v7788_v15 = vmul.f32 %v13351_v20, %v18499_v25  ;;  %v18500_v16 = vld [vmem:[#allocation99_spill] sm:$0xff] }
 0x47f   : > { %13090 = vmatprep.subr.bf16.mxu0 %v13089_v53  ;;  %v13097_v55 = vpack.c.bf16 %v4002_v50, %v3866_v49  ;;  %v3595_v10 = vcombine.high %v16556_v42, %v16566_v29  ;;  %v18501_v37 = vld [vmem:[#allocation23_spill] sm:$0xff]  ;;  %v18504_v49 = vld [vmem:[#allocation100_spill] sm:$0xff]  ;;  %v3861_v27 = vcombine.high %v16800_v14, %v16881_v12  ;;  %v3863_v14 = vcombine.high %v16807_v57, %v16896_v63 }
 0x480   : > { %12716 = vmatmul.mubr.msk.f32.vlgmr.msra.gmra.mrb[68].mxu0 %vm4340_vm1, %v7802_v40  ;;  %v7601_v0 = vpop.xlane.xlu1 %7600  ;;  %v3865_v57 = vcombine.high %v16965_v23, %v16953_v34  ;;  %v18509_v23 = vld [vmem:[#allocation44_spill] sm:$0xff] }
 0x481   : > { %v7592_v18 = vpop.xlane.xlu0 %7591  ;;  %13092 = vmatpush3.bf16.msra.mxu0 %v13089_v53  ;;  %12729 = vmatprep.mubr.msk.f32.mxu0 %vm4340_vm1, %v7805_v4  ;;  %13360 = vrcp.f32 %v7601_v0  ;;  %v13069_v28 = vpack.c.bf16 %v3731_v30, %v3595_v10  ;;  %v3997_v53 = vcombine.high %v16890_v61, %v16875_v54  ;;  %v18506_v0 = vld [vmem:[#allocation104_spill] sm:$0xff]  ;;  %v3999_v54 = vcombine.high %v16917_v6, %v16899_v2  ;;  %v18507_v30 = vld [vmem:[#allocation107_spill] sm:$0xff]  ;;  %v18508_v6 = vld [vmem:[#allocation106_spill] sm:$0xff] }
 0x482   : > { %13098 = vmatprep.subr.bf16.mxu0 %v13097_v55  ;;  %13362 = vrcp.f32 %v7592_v18 }
 0x483   : > { %v13085_v12 = vpack.c.bf16 %v3999_v54, %v3863_v14 }
 0x484   : > { %v13353_v33 = vpop.eup %13352  ;;  %12730 = vmatmul.mubr.msk.f32.vlgmr.msra.gmra.mrb[70].mxu0 %vm4340_vm1, %v7806_v22  ;;  %v13077_v22 = vpack.c.bf16 %v3997_v53, %v3861_v27 }
 0x485   : > { %v7589_v51 = vpop.xlane.xlu0 %7588  ;;  %13100 = vmatpush3.bf16.msra.mxu0 %v13097_v55  ;;  %v7787_v19 = vmul.f32 %v13353_v33, %v18498_v38  ;;  %v13355_v44 = vpop.eup %13354  ;;  %v18505_v55 = vld [vmem:[#allocation101_spill] sm:$0xff] }
 0x486   : > { %13364 = vrcp.f32 %v7589_v51  ;;  %v13357_v56 = vpop.eup %13356  ;;  %v7810_v52 = vmul.f32 %v13355_v44, %v18501_v37  ;;  %v4001_v51 = vcombine.high %v16956_v3, %v16940_v5  ;;  %v17049_v44 = vpop.xlane.xlu1 %7666 }
 0x487   : > { %12666 = vmatprep.mubr.msk.f32.mxu1 %vm4340_vm1, %v7787_v19  ;;  %v7813_v32 = vmul.f32 %v13357_v56, %v18502_v26  ;;  %v18514_v26 = vld [vmem:[#allocation2_spill] sm:$0xff] }
 0x488   : > { %v13359_v8 = vpop.eup %13358  ;;  %12667 = vmatmul.mubr.msk.f32.vlgmr.msra.gmra.mrb[48].mxu1 %vm4340_vm1, %v7788_v15  ;;  %v13093_v63 = vpack.c.bf16 %v4001_v51, %v3865_v57  ;;  %v4003_v15 = vcombine.high %v16980_v58, %v16968_v48 }
 0x489   : > { %v7604_v35 = vpop.xlane.xlu0 %7603  ;;  %13064 = vmatpush3.bf16.msra.mxu1 %v13061_v21  ;;  %v7809_v45 = vmul.f32 %v13359_v8, %v18500_v16  ;;  %v18510_v8 = vld [vmem:[#allocation109_spill] sm:$0xff]  ;;  %v18511_v16 = vld [vmem:[#allocation76_spill] sm:$0xff] }
 0x48a   : > { %13366 = vrcp.f32 %v7604_v35  ;;  %13070 = vmatprep.subr.bf16.mxu1 %v13069_v28  ;;  %v17053_v10 = vpop.xlane.xlu1 %7681  ;;  %v3867_v35 = vcombine.high %v16997_v47, %v16975_v31  ;;  %v18515_v47 = vld [vmem:[#allocation78_spill] sm:$0xff] }
 0x48b   : > { %12743 = vmatprep.mubr.msk.f32.mxu0 %vm4340_vm1, %v7809_v45  ;;  %v13361_v29 = vpop.eup %13360  ;;  %v18512_v45 = vld [vmem:[#allocation75_spill] sm:$0xff] }
 0x48c   : > { %12744 = vmatmul.mubr.msk.f32.vlgmr.msra.gmra.mrb[72].mxu0 %vm4340_vm1, %v7810_v52  ;;  %v13363_v62 = vpop.eup %13362  ;;  %v7795_v18 = vmul.f32 %v13361_v29, %v18505_v55  ;;  %v4020_v37 = vcombine.low %v18512_v45, %v18511_v16  ;;  %v13101_v48 = vpack.c.bf16 %v4003_v15, %v3867_v35  ;;  %v18513_v52 = vld [vmem:[#allocation64_spill] sm:$0xff]  ;;  %v4021_v29 = vcombine.high %v18512_v45, %v18511_v16 }
 0x48d   : > { %v7616_v42 = vpop.xlane.xlu0 %7615  ;;  %12757 = vmatprep.mubr.msk.f32.mxu0 %vm4340_vm1, %v7813_v32  ;;  %v7792_v9 = vmul.f32 %v13363_v62, %v18504_v49  ;;  %v4004_v32 = vcombine.low %v18514_v26, %v18513_v52  ;;  %v18516_v62 = vld [vmem:[#allocation77_spill] sm:$0xff]  ;;  %v4005_v53 = vcombine.high %v18514_v26, %v18513_v52  ;;  %v18518_v49 = vld [vmem:[#allocation68_spill] sm:$0xff] }
 0x48e   : > { %13368 = vrcp.f32 %v7616_v42  ;;  %v17063_v58 = vpop.xlane.xlu1 %7678  ;;  %v4028_v31 = vrot.slane %v4020_v37, %v18429_v1  ;;  %v18519_v55 = vld [vmem:[#allocation72_spill] sm:$0xff]  ;;  %v4037_v51 = vcombine.high %v18516_v62, %v18515_v47 }
 0x48f   : > { %v17093_v57 = vrot.slane %v4005_v53, %v18429_v1 }
 0x490   : > { %v13365_v50 = vpop.eup %13364  ;;  %v17114_v45 = vrot.slane %v4037_v51, %v18429_v1 }
 0x491   : > { %v7613_v21 = vpop.xlane.xlu0 %7612  ;;  %v7791_v40 = vmul.f32 %v13365_v50, %v18503_v36  ;;  %v4036_v50 = vcombine.low %v18516_v62, %v18515_v47  ;;  %v4012_v36 = vrot.slane %v4004_v32, %v18429_v1 }
 0x492   : > { %13370 = vrcp.f32 %v7613_v21 }
 0x493   : > { %12680 = vmatprep.mubr.msk.f32.mxu1 %vm4340_vm1, %v7791_v40  ;;  %v18517_v40 = vld [vmem:[#allocation70_spill] sm:$0xff] }
 0x494   : > { %v13367_v4 = vpop.eup %13366  ;;  %12681 = vmatmul.mubr.msk.f32.vlgmr.msra.gmra.mrb[50].mxu1 %vm4340_vm1, %v7792_v9  ;;  %v4052_v9 = vcombine.low %v18518_v49, %v18517_v40 }
 0x495   : > { %v7796_v17 = vmul.f32 %v13367_v4, %v18506_v0  ;;  %13072 = vmatpush3.bf16.msra.mxu1 %v13069_v28  ;;  %12694 = vmatprep.mubr.msk.f32.mxu1 %vm4340_vm1, %v7795_v18  ;;  %v7628_v61 = vpop.xlane.xlu0 %7627  ;;  %v4053_v4 = vcombine.high %v18518_v49, %v18517_v40  ;;  %v18520_v18 = vld [vmem:[#allocation25_spill] sm:$0xff] }
 0x496   : > { %13078 = vmatprep.subr.bf16.mxu1 %v13077_v22  ;;  %13372 = vrcp.f32 %v7628_v61  ;;  %v4140_v0 = vcombine.low %v18520_v18, %v18519_v55  ;;  %v17086_v61 = vrot.slane %v4021_v29, %v18429_v1 }
 0x498   : > { %12695 = vmatmul.mubr.msk.f32.vlgmr.msra.gmra.mrb[52].mxu1 %vm4340_vm1, %v7796_v17  ;;  %v13369_v20 = vpop.eup %13368  ;;  %v18521_v17 = vld [vmem:[#allocation80_spill] sm:$0xff]  ;;  %v4148_v15 = vrot.slane %v4140_v0, %v18429_v1 }
 0x499   : > { %13080 = vmatpush3.bf16.msra.mxu1 %v13077_v22  ;;  %v7800_v38 = vmul.f32 %v13369_v20, %v18508_v6  ;;  %v18522_v22 = vld [vmem:[#allocation79_spill] sm:$0xff]  ;;  %v4068_v20 = vcombine.low %v4012_v36, %v4028_v31 }
 0x49a   : > { %13086 = vmatprep.subr.bf16.mxu1 %v13085_v12  ;;  %v4156_v54 = vcombine.low %v18522_v22, %v18521_v17 }
 0x49b   : > { %v4076_v26 = vrot.slane %v4068_v20, %v18426_v7 }
 0x49c   : > { %v13371_v33 = vpop.eup %13370 }
 0x49d   : > { %v7799_v2 = vmul.f32 %v13371_v33, %v18507_v30  ;;  %v4069_v33 = vcombine.high %v4012_v36, %v4028_v31  ;;  %v4044_v30 = vrot.slane %v4036_v50, %v18429_v1 }
 0x49f   : > { %v7625_v19 = vpop.xlane.xlu0 %7624  ;;  %12708 = vmatprep.mubr.msk.f32.mxu1 %vm4340_vm1, %v7799_v2  ;;  %v4083_v32 = vrot.slane %v4069_v33, %v18426_v7 }
 0x4a0   : > { %13374 = vrcp.f32 %v7625_v19  ;;  %12709 = vmatmul.mubr.msk.f32.vlgmr.msra.gmra.mrb[54].mxu1 %vm4340_vm1, %v7800_v38  ;;  %v13373_v3 = vpop.eup %13372  ;;  %v18523_v38 = vld [vmem:[#allocation26_spill] sm:$0xff] }
 0x4a1   : > { %13088 = vmatpush3.bf16.msra.mxu1 %v13085_v12  ;;  %v7804_v28 = vmul.f32 %v13373_v3, %v18510_v8  ;;  %v4141_v12 = vcombine.high %v18520_v18, %v18519_v55  ;;  %v4084_v8 = vcombine.low %v17093_v57, %v17086_v61 }
 0x4a2   : > { %13094 = vmatprep.subr.bf16.mxu1 %v13093_v63 }
 0x4a3   : > { %v7640_v5 = vpop.xlane.xlu0 %7639 }
 0x4a4   : > { %13376 = vrcp.f32 %v7640_v5  ;;  %v18524_v5 = vld [vmem:[#allocation27_spill] sm:$0xff] }
 0x4a7   : > { %v7637_v34 = vpop.xlane.xlu0 %7636 }
 0x4a8   : > { %13378 = vrcp.f32 %v7637_v34  ;;  %v4157_v34 = vcombine.high %v18522_v22, %v18521_v17 }
 0x4aa   : > { %v13375_v25 = vpop.eup %13374  ;;  %v4171_v62 = vrot.slane %v4157_v34, %v18429_v1 }
 0x4ab   : > { %v7803_v56 = vmul.f32 %v13375_v25, %v18509_v23  ;;  %v7652_v42 = vpop.xlane.xlu0 %7651  ;;  %v17098_v25 = vrot.slane %v4053_v4, %v18429_v1  ;;  %v4164_v23 = vrot.slane %v4156_v54, %v18429_v1 }
 0x4ac   : > { %13380 = vrcp.f32 %v7652_v42 }
 0x4ad   : > { %12722 = vmatprep.mubr.msk.f32.mxu1 %vm4340_vm1, %v7803_v56  ;;  %v7649_v21 = vpop.xlane.xlu1 %7648  ;;  %v17106_v56 = vrot.slane %v4141_v12, %v18429_v1  ;;  %v4204_v50 = vcombine.low %v4148_v15, %v4164_v23 }
 0x4ae   : > { %12723 = vmatmul.mubr.msk.f32.vlgmr.msra.gmra.mrb[56].mxu1 %vm4340_vm1, %v7804_v28  ;;  %13382 = vrcp.f32 %v7649_v21  ;;  %v13377_v27 = vpop.eup %13376  ;;  %v18525_v28 = vld [vmem:[#allocation74_spill] sm:$0xff]  ;;  %v4205_v21 = vcombine.high %v4148_v15, %v4164_v23 }
 0x4af   : > { %13096 = vmatpush3.bf16.msra.mxu1 %v13093_v63  ;;  %v963_v2 = vpop.permute.xlu0 %962  ;;  %v4060_v63 = vrot.slane %v4052_v9, %v18429_v1  ;;  %v7808_v3 = vmul.f32 %v13377_v27, %v18524_v5  ;;  %13384 = vrcp.f32 %v16930_v11  ;;  %v4116_v11 = vcombine.low %v17114_v45, %v17098_v25  ;;  %v18526_v27 = vld [vmem:[#allocation42_spill] sm:$0xff] }
 0x4b0   : > { %13102 = vmatprep.subr.bf16.mxu1 %v13101_v48  ;;  %v4172_v35 = vcombine.low %v18525_v28, %v963_v2  ;;  %v4173_v16 = vcombine.high %v18525_v28, %v963_v2  ;;  %13386 = vrcp.f32 %v17049_v44  ;;  %v4117_v9 = vcombine.high %v17114_v45, %v17098_v25  ;;  %v18527_v44 = vld [vmem:[#allocation24_spill] sm:$0xff] }
 0x4b1   : > { %v927_v6 = vpop.permute.xlu1 %926  ;;  %v4100_v37 = vcombine.low %v4044_v30, %v4060_v63  ;;  %v4101_v42 = vcombine.high %v4044_v30, %v4060_v63  ;;  %v4220_v54 = vcombine.low %v17106_v56, %v4171_v62  ;;  %13388 = vrcp.f32 %v16993_v41 }
 0x4b2   : > { %v13379_v14 = vpop.eup %13378  ;;  %v4187_v36 = vrot.slane %v4173_v16, %v18429_v1  ;;  %13390 = vrcp.f32 %v17063_v58  ;;  %v4219_v51 = vrot.slane %v4205_v21, %v18426_v7  ;;  %v17147_v25 = vrot.slane %v4116_v11, %v18426_v7  ;;  %v18531_v11 = vld [vmem:[#allocation108_spill] sm:$0xff] }
 0x4b3   : > { %v7807_v19 = vmul.f32 %v13379_v14, %v18523_v38  ;;  %v4108_v55 = vrot.slane %v4100_v37, %v18426_v7  ;;  %v4212_v14 = vrot.slane %v4204_v50, %v18426_v7  ;;  %v4115_v12 = vrot.slane %v4101_v42, %v18426_v7  ;;  %v18528_v42 = vld [vmem:[#allocation96_spill] sm:$0xff] }
 0x4b4   : > { %13392 = vrcp.f32 %v17053_v10  ;;  %v4221_v34 = vcombine.high %v17106_v56, %v4171_v62  ;;  %v4085_v45 = vcombine.high %v17093_v57, %v17086_v61  ;;  %v4092_v10 = vrot.slane %v4084_v8, %v18426_v7 }
 0x4b5   : > { %12736 = vmatprep.mubr.msk.f32.mxu1 %vm4340_vm1, %v7807_v19  ;;  %v999_v52 = vpop.permute.xlu1 %998  ;;  %v4132_v41 = vcombine.low %v4076_v26, %v4108_v55  ;;  %v4134_v58 = vcombine.low %v4083_v32, %v4115_v12  ;;  %v17159_v56 = vrot.slane %v4117_v9, %v18426_v7 }
 0x4b6   : > { %12737 = vmatmul.mubr.msk.f32.vlgmr.msra.gmra.mrb[58].mxu1 %vm4340_vm1, %v7808_v3  ;;  %v4188_v29 = vcombine.low %v927_v6, %v999_v52  ;;  %v4189_v31 = vcombine.high %v927_v6, %v999_v52  ;;  %v13381_v47 = vpop.eup %13380  ;;  %v4133_v6 = vcombine.high %v4076_v26, %v4108_v55  ;;  %v4135_v3 = vcombine.high %v4083_v32, %v4115_v12 }
 0x4b7   : > { %13104 = vmatpush3.bf16.msra.mxu1 %v13101_v48  ;;  %v4180_v48 = vrot.slane %v4172_v35, %v18429_v1  ;;  %v7812_v18 = vmul.f32 %v13381_v47, %v18527_v44  ;;  %v4228_v35 = vrot.slane %v4220_v54, %v18426_v7  ;;  %v4136_v61 = vcombine.low %v4092_v10, %v17147_v25 }
 0x4b8   : > { %v13383_v53 = vpop.eup %13382  ;;  %v4196_v40 = vrot.slane %v4188_v29, %v18429_v1  ;;  %v4203_v49 = vrot.slane %v4189_v31, %v18429_v1  ;;  %v4235_v57 = vrot.slane %v4221_v34, %v18426_v7  ;;  %v18529_v31 = vld [vmem:[#allocation103_spill] sm:$0xff]  ;;  %v4099_v21 = vrot.slane %v4085_v45, %v18426_v7 }
 0x4b9   : > { %v7811_v4 = vmul.f32 %v13383_v53, %v18526_v27  ;;  %v13385_v15 = vpop.eup %13384 }
 0x4ba   : > { %v4236_v0 = vcombine.low %v4180_v48, %v4196_v40  ;;  %v4237_v17 = vcombine.high %v4180_v48, %v4196_v40  ;;  %v4252_v22 = vcombine.low %v4187_v36, %v4203_v49  ;;  %v4253_v30 = vcombine.high %v4187_v36, %v4203_v49  ;;  %v13387_v16 = vpop.eup %13386  ;;  %v18530_v48 = vld [vmem:[#allocation98_spill] sm:$0xff] }
 0x4bb   : > { %12750 = vmatprep.mubr.msk.f32.mxu1 %vm4340_vm1, %v7811_v4  ;;  %v7814_v29 = vmul.f32 %v13385_v15, %v18528_v42  ;;  %v13389_v8 = vpop.eup %13388  ;;  %v7817_v47 = vmul.f32 %v13387_v16, %v18529_v31  ;;  %v4138_v40 = vcombine.low %v4099_v21, %v17159_v56  ;;  %v18532_v4 = vld [vmem:[#allocation105_spill] sm:$0xff]  ;;  %v4139_v15 = vcombine.high %v4099_v21, %v17159_v56 }
 0x4bc   : > { %v4244_v20 = vrot.slane %v4236_v0, %v18426_v7  ;;  %v4251_v33 = vrot.slane %v4237_v17, %v18426_v7  ;;  %12751 = vmatmul.mubr.msk.f32.vlgmr.msra.gmra.mrb[60].mxu1 %vm4340_vm1, %v7812_v18  ;;  %v17143_v2 = vrot.slane %v4252_v22, %v18426_v7  ;;  %v17154_v37 = vrot.slane %v4253_v30, %v18426_v7  ;;  %v13391_v62 = vpop.eup %13390 }
 0x4bd   : > { %v7818_v36 = vmul.f32 %v13389_v8, %v18530_v48  ;;  %v7821_v9 = vmul.f32 %v13391_v62, %v18531_v11 }
 0x4be   : > { %v4268_v38 = vcombine.low %v4212_v14, %v4244_v20  ;;  %v4269_v19 = vcombine.high %v4212_v14, %v4244_v20  ;;  %v4270_v63 = vcombine.low %v4219_v51, %v4251_v33  ;;  %v4271_v5 = vcombine.high %v4219_v51, %v4251_v33  ;;  %v13393_v49 = vpop.eup %13392 }
 0x4bf   : > { %v4272_v32 = vcombine.low %v4228_v35, %v17143_v2  ;;  %v4274_v53 = vcombine.low %v4235_v57, %v17154_v37  ;;  %v7822_v55 = vmul.f32 %v13393_v49, %v18532_v4  ;;  %v4273_v20 = vcombine.high %v4228_v35, %v17143_v2 }
 0x4c0   : > { %v13105_v23 = vpack.c.bf16 %v4268_v38, %v4132_v41  ;;  %v13109_v28 = vpack.c.bf16 %v4269_v19, %v4133_v6  ;;  %v13113_v52 = vpack.c.bf16 %v4270_v63, %v4134_v58  ;;  %v13117_v26 = vpack.c.bf16 %v4271_v5, %v4135_v3  ;;  %v18533_v58 = vld [vmem:[#allocation16_spill] sm:$0xff] }
 0x4c1   : > { %v13121_v50 = vpack.c.bf16 %v4272_v32, %v4136_v61  ;;  %v13129_v27 = vpack.c.bf16 %v4274_v53, %v4138_v40  ;;  %v4137_v6 = vcombine.high %v4092_v10, %v17147_v25  ;;  %v4275_v5 = vcombine.high %v4235_v57, %v17154_v37  ;;  %v18534_v3 = vld [vmem:[#allocation48_spill] sm:$0xff] }
 0x4c2   : > { %13106 = vmatprep.subr.bf16.mxu0 %v13105_v23  ;;  %13110 = vmatprep.subr.bf16.mxu1 %v13109_v28 }
 0x4c3   : > { %13108 = vmatpush3.bf16.msra.mxu0 %v13105_v23  ;;  %13112 = vmatpush3.bf16.msra.mxu1 %v13109_v28  ;;  %v13125_v38 = vpack.c.bf16 %v4273_v20, %v4137_v6  ;;  %v13133_v34 = vpack.c.bf16 %v4275_v5, %v4139_v15 }
 0x4c4   : > { %13114 = vmatprep.subr.bf16.mxu0 %v13113_v52  ;;  %13118 = vmatprep.subr.bf16.mxu1 %v13117_v26 }
 0x4c6   : > { %12758 = vmatmul.mubr.msk.f32.vlgmr.msra.gmra.mrb[74].mxu0 %vm4340_vm1, %v7814_v29 }
 0x4c7   : > { %13116 = vmatpush3.bf16.msra.mxu0 %v13113_v52  ;;  %12771 = vmatprep.mubr.msk.f32.mxu0 %vm4340_vm1, %v7817_v47  ;;  %v18535_v52 = vld [vmem:[#allocation28_spill] sm:$0xff] }
 0x4c8   : > { %13122 = vmatprep.subr.bf16.mxu0 %v13121_v50 }
 0x4ca   : > { %12772 = vmatmul.mubr.msk.f32.vlgmr.msra.gmra.mrb[76].mxu0 %vm4340_vm1, %v7818_v36 }
 0x4cb   : > { %13124 = vmatpush3.bf16.msra.mxu0 %v13121_v50  ;;  %12785 = vmatprep.mubr.msk.f32.mxu0 %vm4340_vm1, %v7821_v9 }
 0x4cc   : > { %13130 = vmatprep.subr.bf16.mxu0 %v13129_v27 }
 0x4ce   : > { %12786 = vmatmul.mubr.msk.f32.vlgmr.msra.gmra.mrb[78].mxu0 %vm4340_vm1, %v7822_v55 }
 0x4cf   : > { %13132 = vmatpush3.bf16.msra.mxu0 %v13129_v27 }
 0x4e0   : > { %v7664_v44 = vpop.xlane.xlu0 %7663 }
 0x4e1   : > { %13394 = vrcp.f32 %v7664_v44 }
 0x4e4   : > { %v7661_v17 = vpop.xlane.xlu0 %7660 }
 0x4e5   : > { %13396 = vrcp.f32 %v7661_v17 }
 0x4e6   : > { %v17176_v18 = vpop.f32.mrb[50].mxu0 }
 0x4e7   : > { %v17178_v0 = vpop.f32.mrb[51].mxu0  ;;  %v7697_v33 = vpop.xlane.xlu1 %7696 }
 0x4e8   : > { %v7676_v22 = vpop.xlane.xlu0 %7675 }
 0x4e9   : > { %13398 = vrcp.f32 %v7676_v22 }
 0x4eb   : > { %v13395_v14 = vpop.eup %13394 }
 0x4ec   : > { %v7673_v54 = vpop.xlane.xlu0 %7672  ;;  %v7816_v41 = vmul.f32 %v13395_v14, %v16616_v60 }
 0x4ed   : > { %13400 = vrcp.f32 %v7673_v54 }
 0x4ee   : > { %13402 = vrcp.f32 %v7697_v33 }
 0x4ef   : > { %v13397_v12 = vpop.eup %13396 }
 0x4f0   : > { %v7688_v51 = vpop.xlane.xlu0 %7687  ;;  %v7815_v30 = vmul.f32 %v13397_v12, %v16645_v24 }
 0x4f1   : > { %13404 = vrcp.f32 %v7688_v51 }
 0x4f2   : > { %12764 = vmatprep.mubr.msk.f32.mxu1 %vm4340_vm1, %v7815_v30 }
 0x4f3   : > { %12765 = vmatmul.mubr.msk.f32.vlgmr.msra.gmra.mrb[62].mxu1 %vm4340_vm1, %v7816_v41  ;;  %v13399_v2 = vpop.eup %13398 }
 0x4f4   : > { %13120 = vmatpush3.bf16.msra.mxu1 %v13117_v26  ;;  %v7685_v19 = vpop.xlane.xlu0 %7684  ;;  %v7820_v25 = vmul.f32 %v13399_v2, %v18534_v3 }
 0x4f5   : > { %13126 = vmatprep.subr.bf16.mxu1 %v13125_v38  ;;  %13406 = vrcp.f32 %v7685_v19 }
 0x4f7   : > { %v13401_v63 = vpop.eup %13400 }
 0x4f8   : > { %v7819_v60 = vmul.f32 %v13401_v63, %v18533_v58  ;;  %v13403_v23 = vpop.eup %13402 }
 0x4f9   : > { %v7827_v26 = vmul.f32 %v13403_v23, %v18535_v52 }
 0x4fa   : > { %v7691_v24 = vpop.xlane.xlu0 %7690  ;;  %12778 = vmatprep.mubr.msk.f32.mxu1 %vm4340_vm1, %v7819_v60 }
 0x4fb   : > { %13408 = vrcp.f32 %v7691_v24  ;;  %12779 = vmatmul.mubr.msk.f32.vlgmr.msra.gmra.mrb[64].mxu1 %vm4340_vm1, %v7820_v25  ;;  %v13405_v28 = vpop.eup %13404 }
 0x4fc   : > { %13128 = vmatpush3.bf16.msra.mxu1 %v13125_v38  ;;  %v7824_v37 = vmul.f32 %v13405_v28, %v16760_v59 }
 0x4fd   : > { %13134 = vmatprep.subr.bf16.mxu1 %v13133_v34 }
 0x4ff   : > { %v13407_v16 = vpop.eup %13406 }
 0x500   : > { %v7694_v35 = vpop.xlane.xlu0 %7693  ;;  %v7823_v45 = vmul.f32 %v13407_v16, %v16793_v39 }
 0x501   : > { %13410 = vrcp.f32 %v7694_v35 }
 0x502   : > { %12792 = vmatprep.mubr.msk.f32.mxu1 %vm4340_vm1, %v7823_v45 }
 0x503   : > { %12793 = vmatmul.mubr.msk.f32.vlgmr.msra.gmra.mrb[66].mxu1 %vm4340_vm1, %v7824_v37 }
 0x504   : > { %v7700_v10 = vpop.xlane.xlu0 %7699  ;;  %13136 = vmatpush3.bf16.msra.mxu1 %v13133_v34  ;;  %12806 = vmatprep.mubr.msk.f32.mxu1 %vm4340_vm1, %v7827_v26 }
 0x505   : > { %v13409_v32 = vpop.eup %13408  ;;  %13412 = vrcp.f32 %v7700_v10 }
 0x506   : > { %v7825_v56 = vmul.f32 %v13409_v32, %v16818_v46 }
 0x508   : > { %12799 = vmatprep.mubr.msk.f32.mxu0 %vm4340_vm1, %v7825_v56 }
 0x50b   : > { %v13411_v42 = vpop.eup %13410 }
 0x50c   : > { %v7826_v39 = vmul.f32 %v13411_v42, %v16869_v13 }
 0x50e   : > { %12800 = vmatmul.mubr.msk.f32.vlgmr.msra.gmra.mrb[80].mxu0 %vm4340_vm1, %v7826_v39 }
 0x50f   : > { %v13413_v59 = vpop.eup %13412 }
 0x510   : > { %v7828_v29 = vmul.f32 %v13413_v59, %v16909_v43 }
 0x512   : > { %12807 = vmatmul.mubr.msk.f32.vlgmr.msra.gmra.mrb[68].mxu1 %vm4340_vm1, %v7828_v29 }
 0x51e   : > { %v12605_v61 = vpop.f32.mrb[52].mxu0 }
 0x51f   : > { %v10973_v57 = vcombine.low %v17176_v18, %v12605_v61  ;;  %v10974_v8 = vcombine.high %v17176_v18, %v12605_v61  ;;  %v8063_v31 = vpop.f32.mrb[53].mxu0 }
 0x520   : > { %v10429_v46 = vcombine.low %v17178_v0, %v8063_v31  ;;  %v10430_v47 = vcombine.high %v17178_v0, %v8063_v31 }
 0x521   : > { %v10981_v40 = vrot.slane %v10973_v57, %v18429_v1  ;;  %v10988_v49 = vrot.slane %v10974_v8, %v18429_v1 }
 0x522   : > { %v17213_v27 = vrot.slane %v10429_v46, %v18429_v1  ;;  %v17216_v4 = vrot.slane %v10430_v47, %v18429_v1 }
 0x523   : > { %v12598_v62 = vpop.f32.mrb[38].mxu1 }
 0x524   : > { %v7982_v50 = vpop.f32.mrb[39].mxu1 }
 0x52b   : > { %v12612_v13 = vpop.f32.mrb[40].mxu1 }
 0x52c   : > { %v10989_v21 = vcombine.low %v12598_v62, %v12612_v13  ;;  %v10990_v53 = vcombine.high %v12598_v62, %v12612_v13  ;;  %v8144_v48 = vpop.f32.mrb[41].mxu1 }
 0x52d   : > { %v10445_v36 = vcombine.low %v7982_v50, %v8144_v48  ;;  %v10446_v43 = vcombine.high %v7982_v50, %v8144_v48 }
 0x52e   : > { %v10997_v11 = vrot.slane %v10989_v21, %v18429_v1  ;;  %v11004_v9 = vrot.slane %v10990_v53, %v18429_v1 }
 0x52f   : > { %v17219_v55 = vrot.slane %v10445_v36, %v18429_v1  ;;  %v17222_v44 = vrot.slane %v10446_v43, %v18429_v1 }
 0x530   : > { %v11037_v18 = vcombine.low %v10981_v40, %v10997_v11  ;;  %v11038_v0 = vcombine.high %v10981_v40, %v10997_v11  ;;  %v11053_v17 = vcombine.low %v10988_v49, %v11004_v9  ;;  %v11054_v22 = vcombine.high %v10988_v49, %v11004_v9 }
 0x531   : > { %v10493_v54 = vcombine.low %v17213_v27, %v17219_v55  ;;  %v10494_v14 = vcombine.high %v17213_v27, %v17219_v55  ;;  %v10509_v12 = vcombine.low %v17216_v4, %v17222_v44  ;;  %v10510_v20 = vcombine.high %v17216_v4, %v17222_v44 }
 0x532   : > { %v17251_v16 = vrot.slane %v11037_v18, %v18426_v7  ;;  %v17254_v45 = vrot.slane %v11038_v0, %v18426_v7  ;;  %v17259_v32 = vrot.slane %v11053_v17, %v18426_v7  ;;  %v17262_v56 = vrot.slane %v11054_v22, %v18426_v7 }
 0x533   : > { %v17277_v11 = vrot.slane %v10493_v54, %v18426_v7 }
 0x536   : > { %v12619_v33 = vpop.f32.mrb[54].mxu0 }
 0x537   : > { %v8225_v51 = vpop.f32.mrb[55].mxu0 }
 0x53a   : > { %v12633_v30 = vpop.f32.mrb[56].mxu0 }
 0x53b   : > { %v11005_v41 = vcombine.low %v12619_v33, %v12633_v30  ;;  %v11006_v6 = vcombine.high %v12619_v33, %v12633_v30  ;;  %v8387_v38 = vpop.f32.mrb[57].mxu0 }
 0x53c   : > { %v10461_v19 = vcombine.low %v8225_v51, %v8387_v38  ;;  %v10462_v2 = vcombine.high %v8225_v51, %v8387_v38 }
 0x53d   : > { %v11013_v59 = vrot.slane %v11005_v41, %v18429_v1  ;;  %v11020_v29 = vrot.slane %v11006_v6, %v18429_v1 }
 0x53e   : > { %v17232_v63 = vpop.f32.mrb[58].mxu0  ;;  %v10469_v8 = vrot.slane %v10461_v19, %v18429_v1  ;;  %v10476_v31 = vrot.slane %v10462_v2, %v18429_v1 }
 0x53f   : > { %v17234_v5 = vpop.f32.mrb[59].mxu0 }
 0x542   : > { %v17236_v24 = vpop.f32.mrb[60].mxu0 }
 0x543   : > { %v12626_v58 = vpop.f32.mrb[42].mxu1  ;;  %v11109_v60 = vcombine.low %v17232_v63, %v17236_v24  ;;  %v11110_v3 = vcombine.high %v17232_v63, %v17236_v24  ;;  %v17242_v25 = vpop.f32.mrb[61].mxu0 }
 0x544   : > { %v8306_v15 = vpop.f32.mrb[43].mxu1  ;;  %v10565_v34 = vcombine.low %v17234_v5, %v17242_v25  ;;  %v10566_v23 = vcombine.high %v17234_v5, %v17242_v25 }
 0x547   : > { %v12640_v28 = vpop.f32.mrb[44].mxu1  ;;  %v17248_v35 = vpop.f32.mrb[62].mxu0 }
 0x548   : > { %v11021_v37 = vcombine.low %v12626_v58, %v12640_v28  ;;  %v11022_v10 = vcombine.high %v12626_v58, %v12640_v28  ;;  %v8468_v52 = vpop.f32.mrb[45].mxu1  ;;  %v17256_v26 = vpop.f32.mrb[63].mxu0 }
 0x549   : > { %v10477_v42 = vcombine.low %v8306_v15, %v8468_v52  ;;  %v10478_v39 = vcombine.high %v8306_v15, %v8468_v52  ;;  %v17320_v52 = vrot.slane %v10494_v14, %v18426_v7 }
 0x54a   : > { %v11029_v61 = vrot.slane %v11021_v37, %v18429_v1  ;;  %v11036_v57 = vrot.slane %v11022_v10, %v18429_v1 }
 0x54b   : > { %v10485_v46 = vrot.slane %v10477_v42, %v18429_v1  ;;  %v10492_v47 = vrot.slane %v10478_v39, %v18429_v1  ;;  %v17272_v62 = vpop.f32.mrb[64].mxu0  ;;  %v17326_v42 = vrot.slane %v10509_v12, %v18426_v7  ;;  %v17332_v39 = vrot.slane %v10510_v20, %v18426_v7 }
 0x54c   : > { %v11069_v50 = vcombine.low %v11013_v59, %v11029_v61  ;;  %v11070_v13 = vcombine.high %v11013_v59, %v11029_v61  ;;  %v11085_v21 = vcombine.low %v11020_v29, %v11036_v57  ;;  %v11086_v53 = vcombine.high %v11020_v29, %v11036_v57  ;;  %v17274_v48 = vpop.f32.mrb[65].mxu0 }
 0x54d   : > { %v10525_v36 = vcombine.low %v10469_v8, %v10485_v46  ;;  %v10526_v43 = vcombine.high %v10469_v8, %v10485_v46  ;;  %v10541_v40 = vcombine.low %v10476_v31, %v10492_v47  ;;  %v10542_v49 = vcombine.high %v10476_v31, %v10492_v47 }
 0x54e   : > { %v17280_v9 = vrot.slane %v11069_v50, %v18426_v7  ;;  %v11084_v18 = vrot.slane %v11070_v13, %v18426_v7  ;;  %v17284_v0 = vrot.slane %v11085_v21, %v18426_v7  ;;  %v17287_v17 = vrot.slane %v11086_v53, %v18426_v7 }
 0x54f   : > { %v17290_v22 = vrot.slane %v10525_v36, %v18426_v7  ;;  %v17293_v33 = vrot.slane %v10526_v43, %v18426_v7  ;;  %v17296_v54 = vrot.slane %v10541_v40, %v18426_v7  ;;  %v12654_v51 = vpop.f32.mrb[46].mxu1  ;;  %v17298_v30 = vpop.f32.mrb[66].mxu0  ;;  %v11141_v41 = vcombine.low %v17248_v35, %v17272_v62 }
 0x550   : > { %v11142_v6 = vcombine.high %v17248_v35, %v17272_v62  ;;  %v10597_v38 = vcombine.low %v17256_v26, %v17274_v48  ;;  %v10598_v19 = vcombine.high %v17256_v26, %v17274_v48  ;;  %v8630_v2 = vpop.f32.mrb[47].mxu1  ;;  %v17308_v58 = vpop.f32.mrb[67].mxu0  ;;  %v11102_v15 = vcombine.high %v17251_v16, %v17280_v9 }
 0x551   : > { %v10558_v28 = vcombine.high %v17277_v11, %v17290_v22  ;;  %v11103_v37 = vcombine.low %v17254_v45, %v11084_v18  ;;  %v11104_v10 = vcombine.high %v17254_v45, %v11084_v18  ;;  %v17335_v45 = vrot.slane %v10542_v49, %v18426_v7 }
 0x552   : > { %11633 = vrot.lane.b32.xlu0 %v11102_v15, %s13430_s18  ;;  %v11105_v55 = vcombine.low %v17259_v32, %v17284_v0  ;;  %v11106_v14 = vcombine.high %v17259_v32, %v17284_v0  ;;  %v11107_v4 = vcombine.low %v17262_v56, %v17287_v17  ;;  %v11108_v59 = vcombine.high %v17262_v56, %v17287_v17 }
 0x553   : > { %v17338_v27 = vpop.f32.mrb[68].mxu0  ;;  %11521 = vrot.lane.b32.xlu1 %v10558_v28, %s13430_s18  ;;  %v10559_v29 = vcombine.low %v17320_v52, %v17293_v33  ;;  %v10560_v57 = vcombine.high %v17320_v52, %v17293_v33  ;;  %v10561_v8 = vcombine.low %v17326_v42, %v17296_v54  ;;  %v10562_v31 = vcombine.high %v17326_v42, %v17296_v54 }
 0x554   : > { %v11245_v44 = vcombine.low %v17298_v30, %v17338_v27  ;;  %v11246_v12 = vcombine.high %v17298_v30, %v17338_v27  ;;  %v17351_v20 = vpop.f32.mrb[69].mxu0  ;;  %v10563_v56 = vcombine.low %v17332_v39, %v17335_v45  ;;  %v10564_v47 = vcombine.high %v17332_v39, %v17335_v45 }
 0x555   : > { %v10701_v32 = vcombine.low %v17308_v58, %v17351_v20  ;;  %v10702_v61 = vcombine.high %v17308_v58, %v17351_v20  ;;  %v11101_v50 = vcombine.low %v17251_v16, %v17280_v9  ;;  %v11117_v0 = vrot.slane %v11109_v60, %v18429_v1 }
 0x556   : > { %11649 = vrot.lane.b32.xlu0 %v11103_v37, %s13428_s13  ;;  %v11124_v17 = vrot.slane %v11110_v3, %v18429_v1  ;;  %v11260_v54 = vrot.slane %v11246_v12, %v18429_v1 }
 0x557   : > { %v17370_v46 = vpop.f32.mrb[70].mxu0 }
 0x558   : > { %v17376_v13 = vpop.f32.mrb[71].mxu0 }
 0x55a   : > { %11665 = vrot.lane.b32.xlu0 %v11104_v10, %s13429_s14 }
 0x55b   : > { %v12668_v53 = vpop.f32.mrb[48].mxu1 }
 0x55c   : > { %v11125_v36 = vcombine.low %v12654_v51, %v12668_v53  ;;  %v11126_v43 = vcombine.high %v12654_v51, %v12668_v53  ;;  %v8792_v40 = vpop.f32.mrb[49].mxu1  ;;  %v10573_v51 = vrot.slane %v10565_v34, %v18429_v1 }
 0x55d   : > { %v10581_v49 = vcombine.low %v8630_v2, %v8792_v40  ;;  %v10582_v18 = vcombine.high %v8630_v2, %v8792_v40  ;;  %v10580_v2 = vrot.slane %v10566_v23, %v18429_v1 }
 0x55e   : > { %v11133_v15 = vrot.slane %v11125_v36, %v18429_v1  ;;  %v11140_v28 = vrot.slane %v11126_v43, %v18429_v1  ;;  %11681 = vrot.lane.b32.xlu0 %v11105_v55, %s13426_s9 }
 0x55f   : > { %v10589_v60 = vrot.slane %v10581_v49, %v18429_v1  ;;  %v10596_v37 = vrot.slane %v10582_v18, %v18429_v1  ;;  %v17402_v63 = vpop.f32.mrb[72].mxu0 }
 0x560   : > { %v11173_v24 = vcombine.low %v11117_v0, %v11133_v15  ;;  %v11174_v3 = vcombine.high %v11117_v0, %v11133_v15  ;;  %v11189_v10 = vcombine.low %v11124_v17, %v11140_v28  ;;  %v11190_v53 = vcombine.high %v11124_v17, %v11140_v28  ;;  %v17404_v36 = vpop.f32.mrb[73].mxu0 }
 0x561   : > { %v10629_v34 = vcombine.low %v10573_v51, %v10589_v60  ;;  %v10630_v43 = vcombine.high %v10573_v51, %v10589_v60  ;;  %v10645_v40 = vcombine.low %v10580_v2, %v10596_v37  ;;  %v10646_v21 = vcombine.high %v10580_v2, %v10596_v37 }
 0x562   : > { %11697 = vrot.lane.b32.xlu0 %v11106_v14, %s13427_s10  ;;  %v11277_v5 = vcombine.low %v17370_v46, %v17402_v63  ;;  %v11278_v25 = vcombine.high %v17370_v46, %v17402_v63  ;;  %v10733_v23 = vcombine.low %v17376_v13, %v17404_v36  ;;  %v10734_v55 = vcombine.high %v17376_v13, %v17404_v36 }
 0x563   : > { %v11149_v14 = vrot.slane %v11141_v41, %v18429_v1  ;;  %v11156_v0 = vrot.slane %v11142_v6, %v18429_v1  ;;  %v10605_v17 = vrot.slane %v10597_v38, %v18429_v1  ;;  %v17434_v41 = vrot.slane %v11173_v24, %v18426_v7 }
 0x564   : > { %v11188_v28 = vrot.slane %v11174_v3, %v18426_v7  ;;  %v17438_v51 = vrot.slane %v11189_v10, %v18426_v7  ;;  %v17441_v38 = vrot.slane %v11190_v53, %v18426_v7  ;;  %v17444_v48 = vrot.slane %v10629_v34, %v18426_v7 }
 0x565   : > { %v17452_v37 = vrot.slane %v10645_v40, %v18426_v7  ;;  %v17455_v24 = vrot.slane %v10646_v21, %v18426_v7  ;;  %v11285_v45 = vrot.slane %v11277_v5, %v18429_v1  ;;  %v11292_v20 = vrot.slane %v11278_v25, %v18429_v1 }
 0x566   : > { %11713 = vrot.lane.b32.xlu0 %v11107_v4, %s13424_s5  ;;  %v10612_v4 = vrot.slane %v10598_v19, %v18429_v1  ;;  %v17447_v19 = vrot.slane %v10630_v43, %v18426_v7 }
 0x567   : > { %v12682_v49 = vpop.f32.mrb[50].mxu1 }
 0x568   : > { %v8954_v18 = vpop.f32.mrb[51].mxu1 }
 0x56a   : > { %11729 = vrot.lane.b32.xlu0 %v11108_v59, %s13425_s6 }
 0x56b   : > { %v12696_v15 = vpop.f32.mrb[52].mxu1 }
 0x56c   : > { %v11157_v35 = vcombine.low %v12682_v49, %v12696_v15  ;;  %v11158_v62 = vcombine.high %v12682_v49, %v12696_v15  ;;  %v9116_v6 = vpop.f32.mrb[53].mxu1 }
 0x56d   : > { %v10613_v2 = vcombine.low %v8954_v18, %v9116_v6  ;;  %v10614_v26 = vcombine.high %v8954_v18, %v9116_v6 }
 0x56e   : > { %v11165_v59 = vrot.slane %v11157_v35, %v18429_v1  ;;  %v11172_v60 = vrot.slane %v11158_v62, %v18429_v1  ;;  %11537 = vrot.lane.b32.xlu0 %v10559_v29, %s13428_s13 }
 0x56f   : > { %v10621_v3 = vrot.slane %v10613_v2, %v18429_v1  ;;  %v10628_v10 = vrot.slane %v10614_v26, %v18429_v1 }
 0x570   : > { %v11205_v53 = vcombine.low %v11149_v14, %v11165_v59  ;;  %v11206_v34 = vcombine.high %v11149_v14, %v11165_v59  ;;  %v11221_v43 = vcombine.low %v11156_v0, %v11172_v60  ;;  %v11222_v49 = vcombine.high %v11156_v0, %v11172_v60 }
 0x571   : > { %v10661_v18 = vcombine.low %v10605_v17, %v10621_v3  ;;  %v10662_v15 = vcombine.high %v10605_v17, %v10621_v3  ;;  %v10677_v40 = vcombine.low %v10612_v4, %v10628_v10  ;;  %v10678_v35 = vcombine.high %v10612_v4, %v10628_v10 }
 0x572   : > { %v17464_v21 = vrot.slane %v11205_v53, %v18426_v7  ;;  %v11220_v62 = vrot.slane %v11206_v34, %v18426_v7  ;;  %v11229_v6 = vrot.slane %v11221_v43, %v18426_v7  ;;  %v11236_v2 = vrot.slane %v11222_v49, %v18426_v7  ;;  %11553 = vrot.lane.b32.xlu0 %v10560_v57, %s13429_s14 }
 0x573   : > { %v12710_v26 = vpop.f32.mrb[54].mxu1  ;;  %v17470_v29 = vrot.slane %v10661_v18, %v18426_v7  ;;  %v17473_v14 = vrot.slane %v10662_v15, %v18426_v7  ;;  %v17476_v0 = vrot.slane %v10677_v40, %v18426_v7  ;;  %v17479_v17 = vrot.slane %v10678_v35, %v18426_v7 }
 0x574   : > { %v9278_v4 = vpop.f32.mrb[55].mxu1  ;;  %v11238_v59 = vcombine.high %v17434_v41, %v17464_v21  ;;  %v11239_v60 = vcombine.low %v11188_v28, %v11220_v62  ;;  %v11240_v3 = vcombine.high %v11188_v28, %v11220_v62  ;;  %v11241_v10 = vcombine.low %v17438_v51, %v11229_v6 }
 0x575   : > { %v11242_v53 = vcombine.high %v17438_v51, %v11229_v6  ;;  %v10694_v34 = vcombine.high %v17444_v48, %v17470_v29  ;;  %v11243_v43 = vcombine.low %v17441_v38, %v11236_v2  ;;  %v11244_v49 = vcombine.high %v17441_v38, %v11236_v2 }
 0x576   : > { %11635 = vrot.lane.b32.xlu1 %v11238_v59, %s13430_s18  ;;  %v10695_v33 = vcombine.low %v17447_v19, %v17473_v14  ;;  %v10696_v52 = vcombine.high %v17447_v19, %v17473_v14  ;;  %v10697_v57 = vcombine.low %v17452_v37, %v17476_v0  ;;  %v10698_v28 = vcombine.high %v17452_v37, %v17476_v0 }
 0x577   : > { %11569 = vrot.lane.b32.xlu0 %v10561_v8, %s13426_s9  ;;  %v10699_v51 = vcombine.low %v17455_v24, %v17479_v17  ;;  %v10700_v38 = vcombine.high %v17455_v24, %v17479_v17  ;;  %v11237_v19 = vcombine.low %v17434_v41, %v17464_v21  ;;  %v10693_v18 = vcombine.low %v17444_v48, %v17470_v29 }
 0x578   : > { %v11253_v2 = vrot.slane %v11245_v44, %v18429_v1  ;;  %v10716_v44 = vrot.slane %v10702_v61, %v18429_v1  ;;  %v10741_v61 = vrot.slane %v10733_v23, %v18429_v1 }
 0x57a   : > { %11651 = vrot.lane.b32.xlu1 %v11239_v60, %s13428_s13 }
 0x57b   : > { %11585 = vrot.lane.b32.xlu0 %v10562_v31, %s13427_s10 }
 0x57e   : > { %11667 = vrot.lane.b32.xlu1 %v11240_v3, %s13429_s14 }
 0x57f   : > { %11601 = vrot.lane.b32.xlu0 %v10563_v56, %s13424_s5  ;;  %v10709_v56 = vrot.slane %v10701_v32, %v18429_v1 }
 0x581   : > { %v12724_v8 = vpop.f32.mrb[56].mxu1 }
 0x582   : > { %v11261_v15 = vcombine.low %v12710_v26, %v12724_v8  ;;  %v11262_v40 = vcombine.high %v12710_v26, %v12724_v8  ;;  %v9440_v35 = vpop.f32.mrb[57].mxu1  ;;  %11683 = vrot.lane.b32.xlu1 %v11241_v10, %s13426_s9 }
 0x583   : > { %v10717_v62 = vcombine.low %v9278_v4, %v9440_v35  ;;  %v10718_v6 = vcombine.high %v9278_v4, %v9440_v35  ;;  %11617 = vrot.lane.b32.xlu0 %v10564_v47, %s13425_s6  ;;  %v10748_v47 = vrot.slane %v10734_v55, %v18429_v1 }
 0x584   : > { %v11269_v42 = vrot.slane %v11261_v15, %v18429_v1  ;;  %v11276_v31 = vrot.slane %v11262_v40, %v18429_v1 }
 0x585   : > { %v10725_v30 = vrot.slane %v10717_v62, %v18429_v1  ;;  %v10732_v27 = vrot.slane %v10718_v6, %v18429_v1 }
 0x586   : > { %v11309_v12 = vcombine.low %v11253_v2, %v11269_v42  ;;  %v11310_v26 = vcombine.high %v11253_v2, %v11269_v42  ;;  %v11325_v14 = vcombine.low %v11260_v54, %v11276_v31  ;;  %v11326_v4 = vcombine.high %v11260_v54, %v11276_v31  ;;  %11699 = vrot.lane.b32.xlu1 %v11242_v53, %s13427_s10 }
 0x587   : > { %v10765_v59 = vcombine.low %v10709_v56, %v10725_v30  ;;  %v10766_v32 = vcombine.high %v10709_v56, %v10725_v30  ;;  %v10781_v60 = vcombine.low %v10716_v44, %v10732_v27  ;;  %v10782_v3 = vcombine.high %v10716_v44, %v10732_v27  ;;  %11523 = vrot.lane.b32.xlu0 %v10694_v34, %s13430_s18 }
 0x588   : > { %v17571_v53 = vrot.slane %v11309_v12, %v18426_v7  ;;  %v17574_v5 = vrot.slane %v11310_v26, %v18426_v7  ;;  %v17577_v25 = vrot.slane %v11325_v14, %v18426_v7  ;;  %v17580_v23 = vrot.slane %v11326_v4, %v18426_v7 }
 0x589   : > { %v12738_v58 = vpop.f32.mrb[58].mxu1  ;;  %v17583_v13 = vrot.slane %v10765_v59, %v18426_v7  ;;  %v10780_v36 = vrot.slane %v10766_v32, %v18426_v7  ;;  %v10789_v8 = vrot.slane %v10781_v60, %v18426_v7  ;;  %v17591_v15 = vrot.slane %v10782_v3, %v18426_v7 }
 0x58a   : > { %11715 = vrot.lane.b32.xlu1 %v11243_v43, %s13424_s5  ;;  %v9602_v39 = vpop.f32.mrb[59].mxu1 }
 0x58e   : > { %11731 = vrot.lane.b32.xlu1 %v11244_v49, %s13425_s6 }
 0x58f   : > { %v12752_v10 = vpop.f32.mrb[60].mxu1 }
 0x590   : > { %v11293_v34 = vcombine.low %v12738_v58, %v12752_v10  ;;  %v11294_v46 = vcombine.high %v12738_v58, %v12752_v10  ;;  %v9764_v63 = vpop.f32.mrb[61].mxu1 }
 0x591   : > { %v10749_v43 = vcombine.low %v9602_v39, %v9764_v63  ;;  %v10750_v49 = vcombine.high %v9602_v39, %v9764_v63 }
 0x592   : > { %11539 = vrot.lane.b32.xlu1 %v10695_v33, %s13428_s13  ;;  %v11301_v55 = vrot.slane %v11293_v34, %v18429_v1  ;;  %v11308_v33 = vrot.slane %v11294_v46, %v18429_v1 }
 0x593   : > { %v10757_v40 = vrot.slane %v10749_v43, %v18429_v1  ;;  %v10764_v35 = vrot.slane %v10750_v49, %v18429_v1 }
 0x594   : > { %v11341_v62 = vcombine.low %v11285_v45, %v11301_v55  ;;  %v11342_v6 = vcombine.high %v11285_v45, %v11301_v55  ;;  %v11357_v2 = vcombine.low %v11292_v20, %v11308_v33  ;;  %v11358_v54 = vcombine.high %v11292_v20, %v11308_v33 }
 0x595   : > { %v10797_v42 = vcombine.low %v10741_v61, %v10757_v40  ;;  %v10798_v31 = vcombine.high %v10741_v61, %v10757_v40  ;;  %v10813_v56 = vcombine.low %v10748_v47, %v10764_v35  ;;  %v10814_v44 = vcombine.high %v10748_v47, %v10764_v35 }
 0x596   : > { %11555 = vrot.lane.b32.xlu1 %v10696_v52, %s13429_s14  ;;  %v17596_v30 = vrot.slane %v11341_v62, %v18426_v7  ;;  %v11356_v52 = vrot.slane %v11342_v6, %v18426_v7  ;;  %v11365_v27 = vrot.slane %v11357_v2, %v18426_v7  ;;  %v11372_v12 = vrot.slane %v11358_v54, %v18426_v7 }
 0x597   : > { %v17606_v26 = vrot.slane %v10797_v42, %v18426_v7  ;;  %v10812_v14 = vrot.slane %v10798_v31, %v18426_v7  ;;  %v10821_v4 = vrot.slane %v10813_v56, %v18426_v7  ;;  %v10828_v59 = vrot.slane %v10814_v44, %v18426_v7 }
 0x598   : > { %v11374_v32 = vcombine.high %v17571_v53, %v17596_v30  ;;  %v11375_v60 = vcombine.low %v17574_v5, %v11356_v52  ;;  %v11376_v3 = vcombine.high %v17574_v5, %v11356_v52  ;;  %v11377_v58 = vcombine.low %v17577_v25, %v11365_v27 }
 0x599   : > { %v12759_v39 = vpop.f32.mrb[74].mxu0  ;;  %v11378_v45 = vcombine.high %v17577_v25, %v11365_v27  ;;  %v11379_v20 = vcombine.low %v17580_v23, %v11372_v12  ;;  %v10831_v61 = vcombine.low %v10780_v36, %v10812_v14  ;;  %v10832_v10 = vcombine.high %v10780_v36, %v10812_v14 }
 0x59a   : > { %11571 = vrot.lane.b32.xlu1 %v10697_v57, %s13426_s9  ;;  %v10830_v57 = vcombine.high %v17583_v13, %v17606_v26  ;;  %11637 = vrot.lane.b32.xlu0 %v11374_v32, %s13430_s18  ;;  %v9845_v47 = vpop.f32.mrb[75].mxu0  ;;  %v10833_v5 = vcombine.low %v10789_v8, %v10821_v4  ;;  %v10834_v34 = vcombine.high %v10789_v8, %v10821_v4 }
 0x59b   : > { %v10835_v46 = vcombine.low %v17591_v15, %v10828_v59  ;;  %v10836_v63 = vcombine.high %v17591_v15, %v10828_v59  ;;  %v11380_v25 = vcombine.high %v17580_v23, %v11372_v12  ;;  %v11373_v43 = vcombine.low %v17571_v53, %v17596_v30  ;;  %v10426_v30 = vld [vmem:[%s17690_s30 + $0x28] sm:$0xff] }
 0x59c   : > { %v10829_v49 = vcombine.low %v17583_v13, %v17606_v26  ;;  %v10425_v13 = vld [vmem:[%s17690_s30 + $0x20] sm:$0xff] }
 0x59d   : > { %v12773_v37 = vpop.f32.mrb[76].mxu0 }
 0x59e   : > { %11587 = vrot.lane.b32.xlu1 %v10698_v28, %s13427_s10  ;;  %v11381_v0 = vcombine.low %v12759_v39, %v12773_v37  ;;  %v11382_v28 = vcombine.high %v12759_v39, %v12773_v37  ;;  %11653 = vrot.lane.b32.xlu0 %v11375_v60, %s13428_s13  ;;  %v10007_v36 = vpop.f32.mrb[77].mxu0 }
 0x59f   : > { %v10837_v55 = vcombine.low %v9845_v47, %v10007_v36  ;;  %v10838_v33 = vcombine.high %v9845_v47, %v10007_v36 }
 0x5a0   : > { %v11389_v31 = vrot.slane %v11381_v0, %v18429_v1  ;;  %v11396_v56 = vrot.slane %v11382_v28, %v18429_v1 }
 0x5a1   : > { %v17637_v23 = vpop.f32.mrb[78].mxu0  ;;  %v17662_v27 = vrot.slane %v10837_v55, %v18429_v1  ;;  %v17665_v12 = vrot.slane %v10838_v33, %v18429_v1 }
 0x5a2   : > { %11603 = vrot.lane.b32.xlu1 %v10699_v51, %s13424_s5  ;;  %11669 = vrot.lane.b32.xlu0 %v11376_v3, %s13429_s14  ;;  %v17644_v8 = vpop.f32.mrb[79].mxu0 }
 0x5a6   : > { %11619 = vrot.lane.b32.xlu1 %v10700_v38, %s13425_s6  ;;  %11685 = vrot.lane.b32.xlu0 %v11377_v58, %s13426_s9 }
 0x5aa   : > { %11525 = vrot.lane.b32.xlu1 %v10830_v57, %s13430_s18  ;;  %11701 = vrot.lane.b32.xlu0 %v11378_v45, %s13427_s10 }
 0x5ae   : > { %11717 = vrot.lane.b32.xlu0 %v11379_v20, %s13424_s5 }
 0x5b2   : > { %11541 = vrot.lane.b32.xlu0 %v10831_v61, %s13428_s13 }
 0x5b6   : > { %11557 = vrot.lane.b32.xlu0 %v10832_v10, %s13429_s14 }
 0x5ba   : > { %11573 = vrot.lane.b32.xlu0 %v10833_v5, %s13426_s9 }
 0x5be   : > { %11589 = vrot.lane.b32.xlu0 %v10834_v34, %s13427_s10 }
 0x5c2   : > { %11605 = vrot.lane.b32.xlu0 %v10835_v46, %s13424_s5 }
 0x5c4   : > { %v11634_v24 = vpop.permute.xlu0 %11633 }
 0x5c5   : > { %v11774_v61 = vsel %vm4340_vm1, %v11101_v50, %v11634_v24  ;;  %v10422_v50 = vld [vmem:[%s17690_s30 + $0x8] sm:$0xff]  ;;  %v11522_v55 = vpop.permute.xlu1 %11521 }
 0x5c6   : > { %v12766_v17 = vpop.f32.mrb[62].mxu1  ;;  %11621 = vrot.lane.b32.xlu0 %v10836_v63, %s13425_s6 }
 0x5c7   : > { %v9926_v38 = vpop.f32.mrb[63].mxu1 }
 0x5c8   : > { %v11650_v51 = vpop.permute.xlu0 %11649 }
 0x5c9   : > { %v11778_v10 = vsel %vm310_vm0, %v11774_v61, %v11650_v51 }
 0x5ca   : > { %11733 = vrot.lane.b32.xlu0 %v11380_v25, %s13425_s6 }
 0x5cc   : > { %v11666_v15 = vpop.permute.xlu0 %11665 }
 0x5cd   : > { %v11782_v46 = vsel %vm11749_vm3, %v11778_v10, %v11666_v15  ;;  %v18536_v15 = vcombine.low %v17277_v11, %v17290_v22 }
 0x5ce   : > { %v12780_v40 = vpop.f32.mrb[64].mxu1 }
 0x5cf   : > { %v11397_v62 = vcombine.low %v12766_v17, %v12780_v40  ;;  %v11398_v6 = vcombine.high %v12766_v17, %v12780_v40  ;;  %v10088_v2 = vpop.f32.mrb[65].mxu1  ;;  %v11741_v40 = vsel %vm4340_vm1, %v18536_v15, %v11522_v55 }
 0x5d0   : > { %v11682_v35 = vpop.permute.xlu0 %11681  ;;  %v10853_v54 = vcombine.low %v9926_v38, %v10088_v2  ;;  %v10854_v42 = vcombine.high %v9926_v38, %v10088_v2 }
 0x5d1   : > { %v11405_v44 = vrot.slane %v11397_v62, %v18429_v1  ;;  %v11412_v52 = vrot.slane %v11398_v6, %v18429_v1  ;;  %v11786_v16 = vsel %vm11754_vm4, %v11782_v46, %v11682_v35 }
 0x5d2   : > { %v17668_v14 = vrot.slane %v10853_v54, %v18429_v1  ;;  %v17671_v4 = vrot.slane %v10854_v42, %v18429_v1 }
 0x5d3   : > { %v11445_v59 = vcombine.low %v11389_v31, %v11405_v44  ;;  %v11446_v32 = vcombine.high %v11389_v31, %v11405_v44  ;;  %v11461_v60 = vcombine.low %v11396_v56, %v11412_v52  ;;  %v11462_v3 = vcombine.high %v11396_v56, %v11412_v52 }
 0x5d4   : > { %v11698_v58 = vpop.permute.xlu0 %11697  ;;  %v10901_v39 = vcombine.low %v17662_v27, %v17668_v14  ;;  %v10902_v57 = vcombine.high %v17662_v27, %v17668_v14  ;;  %v10917_v45 = vcombine.low %v17665_v12, %v17671_v4  ;;  %v10918_v20 = vcombine.high %v17665_v12, %v17671_v4 }
 0x5d5   : > { %v11790_v9 = vsel %vm11759_vm5, %v11786_v16, %v11698_v58  ;;  %v17716_v35 = vrot.slane %v11445_v59, %v18426_v7  ;;  %v17719_v2 = vrot.slane %v11446_v32, %v18426_v7 }
 0x5d6   : > { %v12794_v47 = vpop.f32.mrb[66].mxu1  ;;  %v17728_v11 = vrot.slane %v10901_v39, %v18426_v7  ;;  %v17764_v15 = vrot.slane %v10917_v45, %v18426_v7 }
 0x5d7   : > { %v10250_v34 = vpop.f32.mrb[67].mxu1 }
 0x5d8   : > { %v11714_v5 = vpop.permute.xlu0 %11713 }
 0x5d9   : > { %v11794_v63 = vsel %vm11764_vm6, %v11790_v9, %v11714_v5 }
 0x5dc   : > { %v11730_v25 = vpop.permute.xlu0 %11729 }
 0x5dd   : > { %v11798_v37 = vsel %vm11769_vm7, %v11794_v63, %v11730_v25 }
 0x5de   : > { %v11803_v0 = vadd.f32 %v11798_v37, %v10422_v50 }
 0x5e0   : > { %11811 = vst [vmem:[%s17701_s11 + $0x8] sm:$0xff] %v11803_v0  ;;  %v17705_v28 = vpop.permute.xlu0 %11537 }
 0x5e1   : > { %v12801_v36 = vpop.f32.mrb[80].mxu0 }
 0x5e2   : > { %v11413_v33 = vcombine.low %v17637_v23, %v12801_v36  ;;  %v11414_v24 = vcombine.high %v17637_v23, %v12801_v36  ;;  %v10331_v17 = vpop.f32.mrb[81].mxu0  ;;  %v17722_v23 = vrot.slane %v11461_v60, %v18426_v7 }
 0x5e3   : > { %v10869_v51 = vcombine.low %v17644_v8, %v10331_v17  ;;  %v10870_v38 = vcombine.high %v17644_v8, %v10331_v17  ;;  %v17725_v8 = vrot.slane %v11462_v3, %v18426_v7 }
 0x5e4   : > { %v11554_v62 = vpop.permute.xlu0 %11553  ;;  %v11421_v44 = vrot.slane %v11413_v33, %v18429_v1  ;;  %v11428_v52 = vrot.slane %v11414_v24, %v18429_v1 }
 0x5e5   : > { %v12808_v6 = vpop.f32.mrb[68].mxu1  ;;  %v10877_v58 = vrot.slane %v10869_v51, %v18429_v1  ;;  %v10884_v61 = vrot.slane %v10870_v38, %v18429_v1  ;;  %v10916_v38 = vrot.slane %v10902_v57, %v18426_v7 }
 0x5e6   : > { %v11429_v54 = vcombine.low %v12794_v47, %v12808_v6  ;;  %v11430_v42 = vcombine.high %v12794_v47, %v12808_v6  ;;  %v10412_v31 = vpop.f32.mrb[69].mxu1 }
 0x5e7   : > { %v10885_v22 = vcombine.low %v10250_v34, %v10412_v31  ;;  %v10886_v56 = vcombine.high %v10250_v34, %v10412_v31 }
 0x5e8   : > { %v11437_v59 = vrot.slane %v11429_v54, %v18429_v1  ;;  %v11444_v32 = vrot.slane %v11430_v42, %v18429_v1  ;;  %v11636_v60 = vpop.permute.xlu1 %11635  ;;  %v17773_v42 = vrot.slane %v10918_v20, %v18426_v7 }
 0x5e9   : > { %v10893_v3 = vrot.slane %v10885_v22, %v18429_v1  ;;  %v10900_v39 = vrot.slane %v10886_v56, %v18429_v1  ;;  %v11570_v47 = vpop.permute.xlu0 %11569 }
 0x5ea   : > { %v11477_v10 = vcombine.low %v11421_v44, %v11437_v59  ;;  %v11478_v5 = vcombine.high %v11421_v44, %v11437_v59  ;;  %v11493_v34 = vcombine.low %v11428_v52, %v11444_v32  ;;  %v11494_v46 = vcombine.high %v11428_v52, %v11444_v32 }
 0x5eb   : > { %v10933_v16 = vcombine.low %v10877_v58, %v10893_v3  ;;  %v10934_v9 = vcombine.high %v10877_v58, %v10893_v3  ;;  %v10949_v50 = vcombine.low %v10884_v61, %v10900_v39  ;;  %v10950_v63 = vcombine.high %v10884_v61, %v10900_v39 }
 0x5ec   : > { %v17739_v25 = vrot.slane %v11477_v10, %v18426_v7  ;;  %v11492_v37 = vrot.slane %v11478_v5, %v18426_v7  ;;  %v11501_v0 = vrot.slane %v11493_v34, %v18426_v7  ;;  %v17744_v36 = vrot.slane %v11494_v46, %v18426_v7  ;;  %v11652_v1 = vpop.permute.xlu1 %11651 }
 0x5ed   : > { %v17747_v55 = vrot.slane %v10933_v16, %v18426_v7  ;;  %v10948_v33 = vrot.slane %v10934_v9, %v18426_v7  ;;  %v17751_v24 = vrot.slane %v10949_v50, %v18426_v7  ;;  %v17754_v17 = vrot.slane %v10950_v63, %v18426_v7  ;;  %v11586_v51 = vpop.permute.xlu0 %11585  ;;  %v10424_v63 = vld [vmem:[%s17690_s30 + $0x18] sm:$0xff] }
 0x5ee   : > { %v11510_v6 = vcombine.high %v17716_v35, %v17739_v25  ;;  %v11511_v54 = vcombine.low %v17719_v2, %v11492_v37  ;;  %v11512_v27 = vcombine.high %v17719_v2, %v11492_v37  ;;  %v11513_v14 = vcombine.low %v17722_v23, %v11501_v0 }
 0x5ef   : > { %v11514_v57 = vcombine.high %v17722_v23, %v11501_v0  ;;  %v11515_v45 = vcombine.low %v17725_v8, %v17744_v36  ;;  %v10966_v22 = vcombine.high %v17728_v11, %v17747_v55  ;;  %v10967_v56 = vcombine.low %v10916_v38, %v10948_v33 }
 0x5f0   : > { %v11668_v31 = vpop.permute.xlu1 %11667  ;;  %11639 = vrot.lane.b32.xlu1 %v11510_v6, %s13430_s18  ;;  %v10968_v12 = vcombine.high %v10916_v38, %v10948_v33  ;;  %v11745_v7 = vsel %vm310_vm0, %v11741_v40, %v17705_v28  ;;  %v10969_v20 = vcombine.low %v17764_v15, %v17751_v24  ;;  %v10970_v2 = vcombine.high %v17764_v15, %v17751_v24 }
 0x5f1   : > { %v11602_v4 = vpop.permute.xlu0 %11601  ;;  %v10971_v23 = vcombine.low %v17773_v42, %v17754_v17  ;;  %v11750_v44 = vsel %vm11749_vm3, %v11745_v7, %v11554_v62  ;;  %v10972_v52 = vcombine.high %v17773_v42, %v17754_v17  ;;  %v11516_v59 = vcombine.high %v17725_v8, %v17744_v36  ;;  %v10421_v62 = vld [vmem:[%s17690_s30] sm:$0xff] }
 0x5f2   : > { %v11509_v28 = vcombine.low %v17716_v35, %v17739_v25  ;;  %v11755_v40 = vsel %vm11754_vm4, %v11750_v44, %v11570_v47  ;;  %v10965_v32 = vcombine.low %v17728_v11, %v17747_v55  ;;  %v11775_v47 = vsel %vm4340_vm1, %v11237_v19, %v11636_v60  ;;  %v10427_v11 = vld [vmem:[%s17690_s30 + $0x30] sm:$0xff]  ;;  %v10428_v25 = vld [vmem:[%s17690_s30 + $0x38] sm:$0xff] }
 0x5f3   : > { %v11760_v58 = vsel %vm11759_vm5, %v11755_v40, %v11586_v51  ;;  %v11779_v34 = vsel %vm310_vm0, %v11775_v47, %v11652_v1 }
 0x5f4   : > { %v11684_v61 = vpop.permute.xlu1 %11683  ;;  %11655 = vrot.lane.b32.xlu1 %v11511_v54, %s13428_s13  ;;  %v11765_v3 = vsel %vm11764_vm6, %v11760_v58, %v11602_v4  ;;  %v11783_v16 = vsel %vm11749_vm3, %v11779_v34, %v11668_v31 }
 0x5f5   : > { %v11618_v39 = vpop.permute.xlu0 %11617  ;;  %v11787_v9 = vsel %vm11754_vm4, %v11783_v16, %v11684_v61 }
 0x5f6   : > { %v11770_v8 = vsel %vm11769_vm7, %v11765_v3, %v11618_v39 }
 0x5f7   : > { %v11802_v10 = vadd.f32 %v11770_v8, %v10421_v62 }
 0x5f8   : > { %v11700_v5 = vpop.permute.xlu1 %11699  ;;  %11671 = vrot.lane.b32.xlu1 %v11512_v27, %s13429_s14  ;;  %v10423_v27 = vld [vmem:[%s17690_s30 + $0x10] sm:$0xff] }
 0x5f9   : > { %11810 = vst [vmem:[%s17701_s11] sm:$0xff] %v11802_v10  ;;  %v11791_v50 = vsel %vm11759_vm5, %v11787_v9, %v11700_v5  ;;  %v11524_v36 = vpop.permute.xlu0 %11523 }
 0x5fa   : > { %v11742_v17 = vsel %vm4340_vm1, %v10693_v18, %v11524_v36 }
 0x5fc   : > { %v11716_v46 = vpop.permute.xlu1 %11715  ;;  %11687 = vrot.lane.b32.xlu1 %v11513_v14, %s13426_s9 }
 0x5fd   : > { %v11795_v37 = vsel %vm11764_vm6, %v11791_v50, %v11716_v46 }
 0x600   : > { %v11732_v0 = vpop.permute.xlu1 %11731  ;;  %11703 = vrot.lane.b32.xlu1 %v11514_v57, %s13427_s10 }
 0x601   : > { %v11799_v41 = vsel %vm11769_vm7, %v11795_v37, %v11732_v0 }
 0x602   : > { %v11805_v21 = vadd.f32 %v11799_v41, %v10424_v63 }
 0x604   : > { %11813 = vst [vmem:[%s17701_s11 + $0x18] sm:$0xff] %v11805_v21  ;;  %v11540_v19 = vpop.permute.xlu1 %11539  ;;  %11719 = vrot.lane.b32.xlu1 %v11515_v45, %s13424_s5 }
 0x605   : > { %v11746_v51 = vsel %vm310_vm0, %v11742_v17, %v11540_v19 }
 0x608   : > { %v11556_v60 = vpop.permute.xlu1 %11555  ;;  %11527 = vrot.lane.b32.xlu1 %v10966_v22, %s13430_s18 }
 0x609   : > { %v11751_v6 = vsel %vm11749_vm3, %v11746_v51, %v11556_v60 }
 0x60c   : > { %v11572_v1 = vpop.permute.xlu1 %11571  ;;  %11543 = vrot.lane.b32.xlu1 %v10967_v56, %s13428_s13  ;;  %v11638_v24 = vpop.permute.xlu0 %11637 }
 0x60d   : > { %v11756_v54 = vsel %vm11754_vm4, %v11751_v6, %v11572_v1  ;;  %v11776_v40 = vsel %vm4340_vm1, %v11373_v43, %v11638_v24 }
 0x610   : > { %v11588_v33 = vpop.permute.xlu1 %11587  ;;  %11559 = vrot.lane.b32.xlu1 %v10968_v12, %s13429_s14  ;;  %v11654_v15 = vpop.permute.xlu0 %11653 }
 0x611   : > { %v11761_v42 = vsel %vm11759_vm5, %v11756_v54, %v11588_v33  ;;  %v11780_v26 = vsel %vm310_vm0, %v11776_v40, %v11654_v15 }
 0x614   : > { %v11604_v38 = vpop.permute.xlu1 %11603  ;;  %11575 = vrot.lane.b32.xlu1 %v10969_v20, %s13426_s9  ;;  %v11670_v48 = vpop.permute.xlu0 %11669 }
 0x615   : > { %v11766_v14 = vsel %vm11764_vm6, %v11761_v42, %v11604_v38  ;;  %v11784_v62 = vsel %vm11749_vm3, %v11780_v26, %v11670_v48 }
 0x618   : > { %v11620_v57 = vpop.permute.xlu1 %11619  ;;  %11591 = vrot.lane.b32.xlu1 %v10970_v2, %s13427_s10  ;;  %v11686_v31 = vpop.permute.xlu0 %11685 }
 0x619   : > { %v11771_v29 = vsel %vm11769_vm7, %v11766_v14, %v11620_v57  ;;  %v11788_v39 = vsel %vm11754_vm4, %v11784_v62, %v11686_v31 }
 0x61a   : > { %v11804_v18 = vadd.f32 %v11771_v29, %v10423_v27 }
 0x61c   : > { %11812 = vst [vmem:[%s17701_s11 + $0x10] sm:$0xff] %v11804_v18  ;;  %11607 = vrot.lane.b32.xlu1 %v10971_v23, %s13424_s5  ;;  %v11702_v45 = vpop.permute.xlu0 %11701  ;;  %v11526_v4 = vpop.permute.xlu1 %11525 }
 0x61d   : > { %v11743_v2 = vsel %vm4340_vm1, %v10829_v49, %v11526_v4  ;;  %v11792_v53 = vsel %vm11759_vm5, %v11788_v39, %v11702_v45 }
 0x620   : > { %11623 = vrot.lane.b32.xlu1 %v10972_v52, %s13425_s6  ;;  %v11718_v22 = vpop.permute.xlu0 %11717 }
 0x621   : > { %v11796_v43 = vsel %vm11764_vm6, %v11792_v53, %v11718_v22 }
 0x624   : > { %11735 = vrot.lane.b32.xlu1 %v11516_v59, %s13425_s6  ;;  %v11542_v56 = vpop.permute.xlu0 %11541 }
 0x625   : > { %v11747_v23 = vsel %vm310_vm0, %v11743_v2, %v11542_v56 }
 0x628   : > { %v11558_v12 = vpop.permute.xlu0 %11557 }
 0x629   : > { %v11752_v52 = vsel %vm11749_vm3, %v11747_v23, %v11558_v12 }
 0x62c   : > { %v11574_v7 = vpop.permute.xlu0 %11573 }
 0x62d   : > { %v11757_v59 = vsel %vm11754_vm4, %v11752_v52, %v11574_v7 }
 0x630   : > { %v11590_v20 = vpop.permute.xlu0 %11589 }
 0x631   : > { %v11762_v58 = vsel %vm11759_vm5, %v11757_v59, %v11590_v20 }
 0x634   : > { %v11606_v44 = vpop.permute.xlu0 %11605 }
 0x635   : > { %v11767_v49 = vsel %vm11764_vm6, %v11762_v58, %v11606_v44 }
 0x638   : > { %v11622_v61 = vpop.permute.xlu0 %11621 }
 0x639   : > { %v11772_v3 = vsel %vm11769_vm7, %v11767_v49, %v11622_v61 }
 0x63a   : > { %v11806_v8 = vadd.f32 %v11772_v3, %v10425_v13 }
 0x63c   : > { %11814 = vst [vmem:[%s17701_s11 + $0x20] sm:$0xff] %v11806_v8  ;;  %v11734_v10 = vpop.permute.xlu0 %11733 }
 0x63d   : > { %v11800_v5 = vsel %vm11769_vm7, %v11796_v43, %v11734_v10 }
 0x63e   : > { %v11807_v47 = vadd.f32 %v11800_v5, %v10426_v30 }
 0x640   : > { %11815 = vst [vmem:[%s17701_s11 + $0x28] sm:$0xff] %v11807_v47 }
 0x662   : > { %v11640_v34 = vpop.permute.xlu1 %11639 }
 0x663   : > { %v11777_v17 = vsel %vm4340_vm1, %v11509_v28, %v11640_v34 }
 0x666   : > { %v11656_v46 = vpop.permute.xlu1 %11655 }
 0x667   : > { %v11781_v55 = vsel %vm310_vm0, %v11777_v17, %v11656_v46 }
 0x66a   : > { %v11672_v16 = vpop.permute.xlu1 %11671 }
 0x66b   : > { %v11785_v15 = vsel %vm11749_vm3, %v11781_v55, %v11672_v16 }
 0x66e   : > { %v11688_v9 = vpop.permute.xlu1 %11687 }
 0x66f   : > { %v11789_v54 = vsel %vm11754_vm4, %v11785_v15, %v11688_v9 }
 0x672   : > { %v11704_v50 = vpop.permute.xlu1 %11703 }
 0x673   : > { %v11793_v35 = vsel %vm11759_vm5, %v11789_v54, %v11704_v50 }
 0x676   : > { %v11720_v63 = vpop.permute.xlu1 %11719 }
 0x677   : > { %v11797_v28 = vsel %vm11764_vm6, %v11793_v35, %v11720_v63 }
 0x67a   : > { %v11528_v37 = vpop.permute.xlu1 %11527 }
 0x67b   : > { %v11744_v60 = vsel %vm4340_vm1, %v10965_v32, %v11528_v37 }
 0x67e   : > { %v11544_v0 = vpop.permute.xlu1 %11543 }
 0x67f   : > { %v11748_v36 = vsel %vm310_vm0, %v11744_v60, %v11544_v0 }
 0x682   : > { %v11560_v41 = vpop.permute.xlu1 %11559 }
 0x683   : > { %v11753_v33 = vsel %vm11749_vm3, %v11748_v36, %v11560_v41 }
 0x686   : > { %v11576_v21 = vpop.permute.xlu1 %11575 }
 0x687   : > { %v11758_v24 = vsel %vm11754_vm4, %v11753_v33, %v11576_v21 }
 0x68a   : > { %v11592_v19 = vpop.permute.xlu1 %11591 }
 0x68b   : > { %v11763_v51 = vsel %vm11759_vm5, %v11758_v24, %v11592_v19 }
 0x68e   : > { %v11608_v1 = vpop.permute.xlu1 %11607 }
 0x68f   : > { %v11768_v32 = vsel %vm11764_vm6, %v11763_v51, %v11608_v1 }
 0x692   : > { %v11624_v38 = vpop.permute.xlu1 %11623 }
 0x693   : > { %v11773_v6 = vsel %vm11769_vm7, %v11768_v32, %v11624_v38 }
 0x694   : > { %v11808_v42 = vadd.f32 %v11773_v6, %v10427_v11 }
 0x696   : > { %11816 = vst [vmem:[%s17701_s11 + $0x30] sm:$0xff] %v11808_v42  ;;  %v11736_v27 = vpop.permute.xlu1 %11735 }
 0x697   : > { %v11801_v14 = vsel %vm11769_vm7, %v11797_v28, %v11736_v27 }
 0x698   : > { %v11809_v57 = vadd.f32 %v11801_v14, %v10428_v25 }
 0x69a   : > { %11817 = vst [vmem:[%s17701_s11 + $0x38] sm:$0xff] %v11809_v57 }
 0x69b PF: > { %s14_s15 = sadd.s32 1, %s13420_s15  }
 0x69c   : > { %p11_p4 = scmp.ge.s32.totalorder %s14_s15, 4  }
 0x69e   :  { %13 = sbr.rel (!%p11_p4) target bundleno = 1 (0x1), region = 69 }

</bundles_post_ra>
